<compile_context>
chip_gen: v7x
topology: tpu7x:2x2x1
jax: 0.10.0
libtpu: 0.0.40
codegen_flags: <defaults>
</compile_context>

<pallas_src>
import jax
import jax.numpy as jnp
from jax.experimental import pallas as pl
from jax.experimental.pallas import tpu as pltpu


def _conv_up_kernel(x_ref, c_ref, r_ref, w_ref, y_ref, sum_ref, ssq_ref):
    """Fused nearest-2x upsample + 3x3 'same' conv for one (batch, row-block) tile.

    x_ref:   (1, Cin, H+2, W)   input with one zero row top/bottom (col pad in-kernel).
    c_ref:   (W, Wo+2)          0/1 matrix: column nearest-2x upsample + 1-col zero pad.
    r_ref:   (TH+2, NR)         0/1 matrix: row nearest-2x upsample incl. 1-row halo.
    w_ref:   (Cout, 9*Cin)      conv weights, columns ordered (kh, kw, ci).
    y_ref:   (1, Cout, TH*Wo)   lane-dense flat conv output tile.
    sum_ref: (1, 1, 1, Cout)    per-channel partial sum of this tile (fused BN stats).
    ssq_ref: (1, 1, 1, Cout)    per-channel partial sum of squares.
    """
    _, cout, flat = y_ref.shape
    cin, w_in = x_ref.shape[1], x_ref.shape[3]
    wo = 2 * w_in
    th = flat // wo
    nr = th // 2 + 2
    r = pl.program_id(1)
    row0 = pl.multiple_of(r * (th // 2), th // 2)

    # rows needed for this tile (incl. 1-row halo each side), all channels at once
    xr = x_ref[0, :, pl.ds(row0, nr), :]                              # (Cin, NR, W)

    # column nearest-2x upsample + zero pad: one batched MXU matmul (0/1 matrix, exact)
    up = jnp.dot(xr.reshape(cin * nr, w_in), c_ref[...],
                 preferred_element_type=jnp.float32)                  # (Cin*NR, Wo+2)
    up = up.reshape(cin, nr, wo + 2)

    # row nearest-2x upsample + halo via a constant 0/1 matmul (no 1-row slice concat)
    # TODO(synk): for large Cin, batch this over channels with a single dot_general.
    r_mat = r_ref[...]                                                # (TH+2, NR)
    u = jnp.concatenate(
        [jnp.dot(r_mat, up[ci], preferred_element_type=jnp.float32)[None]
         for ci in range(cin)], axis=0)                               # (Cin, TH+2, Wo+2)

    # im2col: stack the 9 shifted taps on the contraction axis, single MXU matmul
    taps = []
    for kh in range(3):
        for kw in range(3):
            taps.append(u[:, kh:kh + th, kw:kw + wo].reshape(cin, th * wo))
    patches = jnp.concatenate(taps, axis=0)                           # (9*Cin, TH*Wo)
    acc = jnp.dot(w_ref[...], patches,
                  preferred_element_type=jnp.float32)                 # (Cout, TH*Wo)

    # lane-dense flat store; conv bias dropped (cancelled by training-mode BN mean)
    y_ref[...] = acc[None].astype(y_ref.dtype)
    # fused BatchNorm partial statistics for this tile (kept in f32)
    sum_ref[0, 0, 0, :] = acc.sum(axis=-1)
    ssq_ref[0, 0, 0, :] = (acc * acc).sum(axis=-1)


def _bn_relu_kernel(y_ref, scale_ref, shift_ref, o_ref):
    """Pure streaming BatchNorm-apply + ReLU on a lane-dense flat tile (aliased in place).

    y_ref/o_ref:         (1, Cout, TBL)
    scale_ref/shift_ref: (Cout, 1)   precomputed per-channel scale / shift.
    """
    y = y_ref[0]                                                      # (Cout, TBL)
    o_ref[0] = jnp.maximum(y * scale_ref[...] + shift_ref[...], 0.0).astype(o_ref.dtype)


def _row_tile(ho, wo, cap=8192):
    """Largest even divisor TH of Ho with TH*Wo lane-aligned (%128 or TH==Ho) and
    TH*Wo <= cap (amortizes the ~600-cycle per-grid-step overhead)."""
    cands = [t for t in range(2, ho + 1, 2)
             if ho % t == 0 and ((t * wo) % 128 == 0 or t == ho)]
    if not cands:
        return ho
    fit = [t for t in cands if t * wo <= cap]
    return max(fit) if fit else min(cands)


def _lane_tile(p, cap=65536):
    """Flat BN/ReLU tile: full row if it fits, else largest multiple of 128 dividing p."""
    if p <= cap:
        return p
    for t in range(cap - cap % 128, 0, -128):
        if p % t == 0:
            return t
    return p


def up_conv_forward(x_nchw, weight_oihw, bias, gamma, beta, eps=1e-5):
    """Forward pass of up_conv. x: (N, Cin, H, W) -> (N, Cout, 2H, 2W), NCHW in/out."""
    del bias  # cancelled exactly by the training-mode BatchNorm mean subtraction
    N, Cin, H, W = x_nchw.shape
    Cout = weight_oihw.shape[0]
    Ho, Wo = 2 * H, 2 * W

    TH = _row_tile(Ho, Wo)                 # output rows per conv tile (even, divides Ho)
    R = Ho // TH
    NR = TH // 2 + 2                       # original rows needed per tile (incl. halo)
    TBL = _lane_tile(Ho * Wo)              # lane-dense flat tile for the BN/ReLU pass
    RB = (Ho * Wo) // TBL

    x32 = x_nchw.astype(jnp.float32)
    x_pad = jnp.pad(x32, ((0, 0), (0, 0), (1, 1), (0, 0)))            # (N, Cin, H+2, W)

    # constant 0/1 matrices (exact under any matmul precision)
    v = jnp.arange(Wo + 2)
    j = jnp.arange(W)
    c_mat = (((v[None, :] >= 1) & (v[None, :] <= Wo))
             & (((v[None, :] - 1) // 2) == j[:, None])).astype(jnp.float32)   # (W, Wo+2)
    s = jnp.arange(TH + 2)
    t = jnp.arange(NR)
    r_mat = ((((s[:, None] - 1) // 2) + 1) == t[None, :]).astype(jnp.float32) # (TH+2, NR)

    # weights -> (Cout, 9*Cin), columns ordered (kh, kw, ci) to match the im2col rows
    w2 = jnp.transpose(weight_oihw.astype(jnp.float32), (0, 2, 3, 1)).reshape(Cout, 9 * Cin)

    # --- kernel 1: fused upsample + 3x3 conv (MXU) + BN partial statistics ---
    y, psum, psq = pl.pallas_call(
        _conv_up_kernel,
        out_shape=(
            jax.ShapeDtypeStruct((N, Cout, Ho * Wo), jnp.float32),
            jax.ShapeDtypeStruct((N, R, 1, Cout), jnp.float32),
            jax.ShapeDtypeStruct((N, R, 1, Cout), jnp.float32),
        ),
        grid=(N, R),
        in_specs=[
            # TODO(synk): for decoder-scale images / v7x (64 MiB VMEM) block the H axis
            # with a 1-row halo via manual make_async_copy instead of the full padded
            # image, and use pipeline_mode=pl.Buffered(1) (block index changes with n only).
            pl.BlockSpec((1, Cin, H + 2, W), lambda n, r: (n, 0, 0, 0)),
            pl.BlockSpec((W, Wo + 2), lambda n, r: (0, 0)),
            pl.BlockSpec((TH + 2, NR), lambda n, r: (0, 0)),
            pl.BlockSpec((Cout, 9 * Cin), lambda n, r: (0, 0)),
        ],
        out_specs=[
            pl.BlockSpec((1, Cout, TH * Wo), lambda n, r: (n, 0, r)),
            pl.BlockSpec((1, 1, 1, Cout), lambda n, r: (n, r, 0, 0)),
            pl.BlockSpec((1, 1, 1, Cout), lambda n, r: (n, r, 0, 0)),
        ],
        compiler_params=pltpu.CompilerParams(
            dimension_semantics=("parallel", "parallel"),
            vmem_limit_bytes=32 * 1024 * 1024),
    )(x_pad, c_mat, r_mat, w2)

    # BN batch statistics -> per-channel scale/shift (two tiny vectors, plain jnp)
    count = float(N * Ho * Wo)
    tot = psum.sum(axis=(0, 1, 2))                        # (Cout,)
    totsq = psq.sum(axis=(0, 1, 2))                       # (Cout,)
    mean = tot / count
    var = jnp.maximum(totsq / count - mean * mean, 0.0)   # biased variance (BN forward)
    inv = jax.lax.rsqrt(var + eps)
    g32 = gamma.astype(jnp.float32)
    scale = (g32 * inv).reshape(Cout, 1)
    shift = (beta.astype(jnp.float32) - mean * g32 * inv).reshape(Cout, 1)

    # --- kernel 2: streaming normalize + ReLU, aliased in place on the conv output ---
    # TODO(synk): optionally write the conv intermediate in bf16 (stats stay f32) to cut
    # HBM traffic ~40% (biggest win on v5e); kept f32 here to preserve f32 module numerics.
    out_flat = pl.pallas_call(
        _bn_relu_kernel,
        out_shape=jax.ShapeDtypeStruct((N, Cout, Ho * Wo), jnp.float32),
        grid=(N, RB),
        in_specs=[
            pl.BlockSpec((1, Cout, TBL), lambda n, k: (n, 0, k)),
            pl.BlockSpec((Cout, 1), lambda n, k: (0, 0)),
            pl.BlockSpec((Cout, 1), lambda n, k: (0, 0)),
        ],
        out_specs=pl.BlockSpec((1, Cout, TBL), lambda n, k: (n, 0, k)),
        input_output_aliases={0: 0},
        compiler_params=pltpu.CompilerParams(
            dimension_semantics=("parallel", "parallel"),
            vmem_limit_bytes=32 * 1024 * 1024),
    )(y, scale, shift)

    return out_flat.reshape(N, Cout, Ho, Wo)


def up_conv_reference(x_nchw, weight_oihw, bias, gamma, beta, eps=1e-5):
    """Pure-JAX reference of the same forward pass (with the bias, for the check)."""
    x = jnp.repeat(jnp.repeat(x_nchw, 2, axis=2), 2, axis=3).astype(jnp.float32)
    y = jax.lax.conv_general_dilated(
        x, weight_oihw.astype(jnp.float32),
        window_strides=(1, 1), padding="SAME",
        dimension_numbers=("NCHW", "OIHW", "NCHW"),
        precision=jax.lax.Precision.HIGHEST)
    y = y + bias[None, :, None, None]
    mean = jnp.mean(y, axis=(0, 2, 3), keepdims=True)
    var = jnp.mean((y - mean) ** 2, axis=(0, 2, 3), keepdims=True)
    y = (y - mean) * jax.lax.rsqrt(var + eps)
    y = y * gamma[None, :, None, None] + beta[None, :, None, None]
    return jnp.maximum(y, 0.0)


if __name__ == "__main__":
    # small shapes consistent with the module: N=2, in_ch=4, out_ch=8, spatial=16
    N, in_ch, out_ch, H, W = 2, 4, 8, 16, 16

    key = jax.random.PRNGKey(0)
    kx, kw, kb = jax.random.split(key, 3)
    x = jax.random.normal(kx, (N, in_ch, H, W), dtype=jnp.float32)
    # Conv2d(in_ch, out_ch, 3, bias=True): weight (out_ch, in_ch, 3, 3), bias (out_ch,)
    weight = 0.1 * jax.random.normal(kw, (out_ch, in_ch, 3, 3), dtype=jnp.float32)
    bias = 0.1 * jax.random.normal(kb, (out_ch,), dtype=jnp.float32)
    # BatchNorm2d(out_ch) default init: gamma=1, beta=0
    gamma = jnp.ones((out_ch,), dtype=jnp.float32)
    beta = jnp.zeros((out_ch,), dtype=jnp.float32)

    forward = jax.jit(up_conv_forward)
    out = jax.block_until_ready(forward(x, weight, bias, gamma, beta))

    ref = up_conv_reference(x, weight, bias, gamma, beta)
    assert out.shape == (N, out_ch, 2 * H, 2 * W), out.shape
    err = float(jnp.max(jnp.abs(out - ref)))
    # tolerance covers MXU f32 matmul pass decomposition vs HIGHEST-precision XLA conv
    assert jnp.allclose(out, ref, rtol=5e-3, atol=5e-3), err

    print("KERNEL_OK")
</pallas_src>

<mosaic_0001>
module attributes {stable_mosaic.version = 11 : i64} {
  func.func @_conv_up_kernel(%arg0: i32, %arg1: i32, %arg2: memref<1x4x18x16xf32, #tpu.memory_space<vmem>>, %arg3: memref<16x34xf32, #tpu.memory_space<vmem>>, %arg4: memref<34x18xf32, #tpu.memory_space<vmem>>, %arg5: memref<8x36xf32, #tpu.memory_space<vmem>>, %arg6: memref<1x8x1024xf32, #tpu.memory_space<vmem>>, %arg7: memref<1x1x1x8xf32, #tpu.memory_space<vmem>>, %arg8: memref<1x1x1x8xf32, #tpu.memory_space<vmem>>) attributes {dimension_semantics = [#tpu.dimension_semantics<parallel>, #tpu.dimension_semantics<parallel>], iteration_bounds = array<i64: 2, 1>, scalar_prefetch = 0 : i64, scratch_operands = 0 : i64, tpu.core_type = #tpu.core_type<tc>, window_params = [{transform_indices = @transform_0, window_bounds = array<i64: 1, 4, 18, 16>}, {pipeline_mode = #tpu.pipeline_mode<synchronous>, transform_indices = @transform_1, window_bounds = array<i64: 16, 34>}, {pipeline_mode = #tpu.pipeline_mode<synchronous>, transform_indices = @transform_2, window_bounds = array<i64: 34, 18>}, {pipeline_mode = #tpu.pipeline_mode<synchronous>, transform_indices = @transform_3, window_bounds = array<i64: 8, 36>}, {transform_indices = @transform_4, window_bounds = array<i64: 1, 8, 1024>}, {transform_indices = @transform_5, window_bounds = array<i64: 1, 1, 1, 8>}, {transform_indices = @transform_6, window_bounds = array<i64: 1, 1, 1, 8>}]} {
    %c16_i32 = arith.constant 16 : i32
    %0 = arith.muli %arg1, %c16_i32 : i32
    %1 = tpu.assume_multiple %0, 16 : i32
    %c0 = arith.constant 0 : index
    %c0_0 = arith.constant 0 : index
    %2 = arith.index_cast %1 : i32 to index
    %c0_1 = arith.constant 0 : index
    %3 = vector.load %arg2[%c0, %c0_0, %2, %c0_1] : memref<1x4x18x16xf32, #tpu.memory_space<vmem>>, vector<1x4x18x16xf32>
    %4 = vector.shape_cast %3 : vector<1x4x18x16xf32> to vector<4x18x16xf32>
    %5 = vector.shape_cast %4 : vector<4x18x16xf32> to vector<72x16xf32>
    %c0_2 = arith.constant 0 : index
    %c0_3 = arith.constant 0 : index
    %6 = vector.load %arg3[%c0_2, %c0_3] : memref<16x34xf32, #tpu.memory_space<vmem>>, vector<16x34xf32>
    %cst = arith.constant dense<0.000000e+00> : vector<72x34xf32>
    %7 = tpu.matmul %5, %6, %cst {dimension_numbers = #tpu.dot_dimension_numbers<[1], [0], [0], [1], [0, 0, 1, 1], [], []>} : vector<72x16xf32>, vector<16x34xf32>, vector<72x34xf32> -> vector<72x34xf32>
    %8 = vector.shape_cast %7 : vector<72x34xf32> to vector<4x18x34xf32>
    %c0_4 = arith.constant 0 : index
    %c0_5 = arith.constant 0 : index
    %9 = vector.load %arg4[%c0_4, %c0_5] : memref<34x18xf32, #tpu.memory_space<vmem>>, vector<34x18xf32>
    %10 = vector.extract_strided_slice %8 {offsets = [0, 0, 0], sizes = [1, 18, 34], strides = [1, 1, 1]} : vector<4x18x34xf32> to vector<1x18x34xf32>
    %11 = vector.shape_cast %10 : vector<1x18x34xf32> to vector<18x34xf32>
    %cst_6 = arith.constant dense<0.000000e+00> : vector<34x34xf32>
    %12 = tpu.matmul %9, %11, %cst_6 {dimension_numbers = #tpu.dot_dimension_numbers<[1], [0], [0], [1], [0, 0, 1, 1], [], []>} : vector<34x18xf32>, vector<18x34xf32>, vector<34x34xf32> -> vector<34x34xf32>
    %13 = vector.shape_cast %12 : vector<34x34xf32> to vector<1x34x34xf32>
    %14 = vector.extract_strided_slice %8 {offsets = [1, 0, 0], sizes = [1, 18, 34], strides = [1, 1, 1]} : vector<4x18x34xf32> to vector<1x18x34xf32>
    %15 = vector.shape_cast %14 : vector<1x18x34xf32> to vector<18x34xf32>
    %cst_7 = arith.constant dense<0.000000e+00> : vector<34x34xf32>
    %16 = tpu.matmul %9, %15, %cst_7 {dimension_numbers = #tpu.dot_dimension_numbers<[1], [0], [0], [1], [0, 0, 1, 1], [], []>} : vector<34x18xf32>, vector<18x34xf32>, vector<34x34xf32> -> vector<34x34xf32>
    %17 = vector.shape_cast %16 : vector<34x34xf32> to vector<1x34x34xf32>
    %18 = vector.extract_strided_slice %8 {offsets = [2, 0, 0], sizes = [1, 18, 34], strides = [1, 1, 1]} : vector<4x18x34xf32> to vector<1x18x34xf32>
    %19 = vector.shape_cast %18 : vector<1x18x34xf32> to vector<18x34xf32>
    %cst_8 = arith.constant dense<0.000000e+00> : vector<34x34xf32>
    %20 = tpu.matmul %9, %19, %cst_8 {dimension_numbers = #tpu.dot_dimension_numbers<[1], [0], [0], [1], [0, 0, 1, 1], [], []>} : vector<34x18xf32>, vector<18x34xf32>, vector<34x34xf32> -> vector<34x34xf32>
    %21 = vector.shape_cast %20 : vector<34x34xf32> to vector<1x34x34xf32>
    %22 = vector.extract_strided_slice %8 {offsets = [3, 0, 0], sizes = [1, 18, 34], strides = [1, 1, 1]} : vector<4x18x34xf32> to vector<1x18x34xf32>
    %23 = vector.shape_cast %22 : vector<1x18x34xf32> to vector<18x34xf32>
    %cst_9 = arith.constant dense<0.000000e+00> : vector<34x34xf32>
    %24 = tpu.matmul %9, %23, %cst_9 {dimension_numbers = #tpu.dot_dimension_numbers<[1], [0], [0], [1], [0, 0, 1, 1], [], []>} : vector<34x18xf32>, vector<18x34xf32>, vector<34x34xf32> -> vector<34x34xf32>
    %25 = vector.shape_cast %24 : vector<34x34xf32> to vector<1x34x34xf32>
    %26 = tpu.concatenate %13, %17, %21, %25 in 0 : vector<1x34x34xf32>, vector<1x34x34xf32>, vector<1x34x34xf32>, vector<1x34x34xf32> -> vector<4x34x34xf32>
    %27 = vector.extract_strided_slice %26 {offsets = [0, 0, 0], sizes = [4, 32, 32], strides = [1, 1, 1]} : vector<4x34x34xf32> to vector<4x32x32xf32>
    %28 = vector.shape_cast %27 : vector<4x32x32xf32> to vector<4x1024xf32>
    %29 = vector.extract_strided_slice %26 {offsets = [0, 0, 1], sizes = [4, 32, 32], strides = [1, 1, 1]} : vector<4x34x34xf32> to vector<4x32x32xf32>
    %30 = vector.shape_cast %29 : vector<4x32x32xf32> to vector<4x1024xf32>
    %31 = vector.extract_strided_slice %26 {offsets = [0, 0, 2], sizes = [4, 32, 32], strides = [1, 1, 1]} : vector<4x34x34xf32> to vector<4x32x32xf32>
    %32 = vector.shape_cast %31 : vector<4x32x32xf32> to vector<4x1024xf32>
    %33 = vector.extract_strided_slice %26 {offsets = [0, 1, 0], sizes = [4, 32, 32], strides = [1, 1, 1]} : vector<4x34x34xf32> to vector<4x32x32xf32>
    %34 = vector.shape_cast %33 : vector<4x32x32xf32> to vector<4x1024xf32>
    %35 = vector.extract_strided_slice %26 {offsets = [0, 1, 1], sizes = [4, 32, 32], strides = [1, 1, 1]} : vector<4x34x34xf32> to vector<4x32x32xf32>
    %36 = vector.shape_cast %35 : vector<4x32x32xf32> to vector<4x1024xf32>
    %37 = vector.extract_strided_slice %26 {offsets = [0, 1, 2], sizes = [4, 32, 32], strides = [1, 1, 1]} : vector<4x34x34xf32> to vector<4x32x32xf32>
    %38 = vector.shape_cast %37 : vector<4x32x32xf32> to vector<4x1024xf32>
    %39 = vector.extract_strided_slice %26 {offsets = [0, 2, 0], sizes = [4, 32, 32], strides = [1, 1, 1]} : vector<4x34x34xf32> to vector<4x32x32xf32>
    %40 = vector.shape_cast %39 : vector<4x32x32xf32> to vector<4x1024xf32>
    %41 = vector.extract_strided_slice %26 {offsets = [0, 2, 1], sizes = [4, 32, 32], strides = [1, 1, 1]} : vector<4x34x34xf32> to vector<4x32x32xf32>
    %42 = vector.shape_cast %41 : vector<4x32x32xf32> to vector<4x1024xf32>
    %43 = vector.extract_strided_slice %26 {offsets = [0, 2, 2], sizes = [4, 32, 32], strides = [1, 1, 1]} : vector<4x34x34xf32> to vector<4x32x32xf32>
    %44 = vector.shape_cast %43 : vector<4x32x32xf32> to vector<4x1024xf32>
    %45 = tpu.concatenate %28, %30, %32, %34, %36, %38, %40, %42, %44 in 0 : vector<4x1024xf32>, vector<4x1024xf32>, vector<4x1024xf32>, vector<4x1024xf32>, vector<4x1024xf32>, vector<4x1024xf32>, vector<4x1024xf32>, vector<4x1024xf32>, vector<4x1024xf32> -> vector<36x1024xf32>
    %c0_10 = arith.constant 0 : index
    %c0_11 = arith.constant 0 : index
    %46 = vector.load %arg5[%c0_10, %c0_11] : memref<8x36xf32, #tpu.memory_space<vmem>>, vector<8x36xf32>
    %cst_12 = arith.constant dense<0.000000e+00> : vector<8x1024xf32>
    %47 = tpu.matmul %46, %45, %cst_12 {dimension_numbers = #tpu.dot_dimension_numbers<[1], [0], [0], [1], [0, 0, 1, 1], [], []>} : vector<8x36xf32>, vector<36x1024xf32>, vector<8x1024xf32> -> vector<8x1024xf32>
    %48 = vector.shape_cast %47 : vector<8x1024xf32> to vector<1x8x1024xf32>
    %c0_13 = arith.constant 0 : index
    %c0_14 = arith.constant 0 : index
    %c0_15 = arith.constant 0 : index
    %49 = vector.load %arg6[%c0_13, %c0_14, %c0_15] : memref<1x8x1024xf32, #tpu.memory_space<vmem>>, vector<1x8x1024xf32>
    tpu.vector_store %arg6[%c0_13, %c0_14, %c0_15], %48 {strides = array<i32>} : memref<1x8x1024xf32, #tpu.memory_space<vmem>>, vector<1x8x1024xf32>,
    %cst_16 = arith.constant dense<0.000000e+00> : vector<8xf32>
    %50 = vector.multi_reduction <add>, %47, %cst_16 [1] : vector<8x1024xf32> to vector<8xf32>
    %c0_17 = arith.constant 0 : index
    %c0_18 = arith.constant 0 : index
    %c0_19 = arith.constant 0 : index
    %c0_20 = arith.constant 0 : index
    %51 = vector.load %arg7[%c0_17, %c0_18, %c0_19, %c0_20] : memref<1x1x1x8xf32, #tpu.memory_space<vmem>>, vector<1x1x1x8xf32>
    %52 = vector.shape_cast %51 : vector<1x1x1x8xf32> to vector<8xf32>
    %53 = vector.shape_cast %50 : vector<8xf32> to vector<1x1x1x8xf32>
    tpu.vector_store %arg7[%c0_17, %c0_18, %c0_19, %c0_20], %53 {strides = array<i32>} : memref<1x1x1x8xf32, #tpu.memory_space<vmem>>, vector<1x1x1x8xf32>,
    %54 = arith.mulf %47, %47 : vector<8x1024xf32>
    %cst_21 = arith.constant dense<0.000000e+00> : vector<8xf32>
    %55 = vector.multi_reduction <add>, %54, %cst_21 [1] : vector<8x1024xf32> to vector<8xf32>
    %c0_22 = arith.constant 0 : index
    %c0_23 = arith.constant 0 : index
    %c0_24 = arith.constant 0 : index
    %c0_25 = arith.constant 0 : index
    %56 = vector.load %arg8[%c0_22, %c0_23, %c0_24, %c0_25] : memref<1x1x1x8xf32, #tpu.memory_space<vmem>>, vector<1x1x1x8xf32>
    %57 = vector.shape_cast %56 : vector<1x1x1x8xf32> to vector<8xf32>
    %58 = vector.shape_cast %55 : vector<8xf32> to vector<1x1x1x8xf32>
    tpu.vector_store %arg8[%c0_22, %c0_23, %c0_24, %c0_25], %58 {strides = array<i32>} : memref<1x1x1x8xf32, #tpu.memory_space<vmem>>, vector<1x1x1x8xf32>,
    return
  }
  func.func @transform_0(%arg0: i32, %arg1: i32) -> (i32, i32, i32, i32) {
    %c0_i32 = arith.constant 0 : i32
    %c0_i32_0 = arith.constant 0 : i32
    %c0_i32_1 = arith.constant 0 : i32
    %c0_i32_2 = arith.constant 0 : i32
    return %arg0, %c0_i32, %c0_i32_0, %c0_i32_1 : i32, i32, i32, i32
  }
  func.func @transform_1(%arg0: i32, %arg1: i32) -> (i32, i32) {
    %c0_i32 = arith.constant 0 : i32
    %c0_i32_0 = arith.constant 0 : i32
    %c0_i32_1 = arith.constant 0 : i32
    return %c0_i32, %c0_i32_0 : i32, i32
  }
  func.func @transform_2(%arg0: i32, %arg1: i32) -> (i32, i32) {
    %c0_i32 = arith.constant 0 : i32
    %c0_i32_0 = arith.constant 0 : i32
    %c0_i32_1 = arith.constant 0 : i32
    return %c0_i32, %c0_i32_0 : i32, i32
  }
  func.func @transform_3(%arg0: i32, %arg1: i32) -> (i32, i32) {
    %c0_i32 = arith.constant 0 : i32
    %c0_i32_0 = arith.constant 0 : i32
    %c0_i32_1 = arith.constant 0 : i32
    return %c0_i32, %c0_i32_0 : i32, i32
  }
  func.func @transform_4(%arg0: i32, %arg1: i32) -> (i32, i32, i32) {
    %c0_i32 = arith.constant 0 : i32
    %c0_i32_0 = arith.constant 0 : i32
    return %arg0, %c0_i32, %arg1 : i32, i32, i32
  }
  func.func @transform_5(%arg0: i32, %arg1: i32) -> (i32, i32, i32, i32) {
    %c0_i32 = arith.constant 0 : i32
    %c0_i32_0 = arith.constant 0 : i32
    %c0_i32_1 = arith.constant 0 : i32
    return %arg0, %arg1, %c0_i32, %c0_i32_0 : i32, i32, i32, i32
  }
  func.func @transform_6(%arg0: i32, %arg1: i32) -> (i32, i32, i32, i32) {
    %c0_i32 = arith.constant 0 : i32
    %c0_i32_0 = arith.constant 0 : i32
    %c0_i32_1 = arith.constant 0 : i32
    return %arg0, %arg1, %c0_i32, %c0_i32_0 : i32, i32, i32, i32
  }
}

module attributes {stable_mosaic.version = 11 : i64} {
  func.func @_bn_relu_kernel(%arg0: i32, %arg1: i32, %arg2: memref<1x8x1024xf32, #tpu.memory_space<vmem>>, %arg3: memref<8x1xf32, #tpu.memory_space<vmem>>, %arg4: memref<8x1xf32, #tpu.memory_space<vmem>>, %arg5: memref<1x8x1024xf32, #tpu.memory_space<vmem>>) attributes {dimension_semantics = [#tpu.dimension_semantics<parallel>, #tpu.dimension_semantics<parallel>], iteration_bounds = array<i64: 2, 1>, scalar_prefetch = 0 : i64, scratch_operands = 0 : i64, tpu.core_type = #tpu.core_type<tc>, window_params = [{transform_indices = @transform_0, window_bounds = array<i64: 1, 8, 1024>}, {pipeline_mode = #tpu.pipeline_mode<synchronous>, transform_indices = @transform_1, window_bounds = array<i64: 8, 1>}, {pipeline_mode = #tpu.pipeline_mode<synchronous>, transform_indices = @transform_2, window_bounds = array<i64: 8, 1>}, {transform_indices = @transform_3, window_bounds = array<i64: 1, 8, 1024>}]} {
    %c0 = arith.constant 0 : index
    %c0_0 = arith.constant 0 : index
    %c0_1 = arith.constant 0 : index
    %0 = vector.load %arg2[%c0, %c0_0, %c0_1] : memref<1x8x1024xf32, #tpu.memory_space<vmem>>, vector<1x8x1024xf32>
    %1 = vector.shape_cast %0 : vector<1x8x1024xf32> to vector<8x1024xf32>
    %c0_2 = arith.constant 0 : index
    %c0_3 = arith.constant 0 : index
    %2 = vector.load %arg3[%c0_2, %c0_3] : memref<8x1xf32, #tpu.memory_space<vmem>>, vector<8x1xf32>
    %3 = vector.broadcast %2 : vector<8x1xf32> to vector<8x1024xf32>
    %4 = arith.mulf %1, %3 : vector<8x1024xf32>
    %c0_4 = arith.constant 0 : index
    %c0_5 = arith.constant 0 : index
    %5 = vector.load %arg4[%c0_4, %c0_5] : memref<8x1xf32, #tpu.memory_space<vmem>>, vector<8x1xf32>
    %6 = vector.broadcast %5 : vector<8x1xf32> to vector<8x1024xf32>
    %7 = arith.addf %4, %6 : vector<8x1024xf32>
    %cst = arith.constant 0.000000e+00 : f32
    %8 = vector.broadcast %cst : f32 to vector<8x1024xf32>
    %9 = arith.maximumf %7, %8 : vector<8x1024xf32>
    %c0_6 = arith.constant 0 : index
    %c0_7 = arith.constant 0 : index
    %c0_8 = arith.constant 0 : index
    %10 = vector.load %arg5[%c0_6, %c0_7, %c0_8] : memref<1x8x1024xf32, #tpu.memory_space<vmem>>, vector<1x8x1024xf32>
    %11 = vector.shape_cast %10 : vector<1x8x1024xf32> to vector<8x1024xf32>
    %12 = vector.shape_cast %9 : vector<8x1024xf32> to vector<1x8x1024xf32>
    tpu.vector_store %arg5[%c0_6, %c0_7, %c0_8], %12 {strides = array<i32>} : memref<1x8x1024xf32, #tpu.memory_space<vmem>>, vector<1x8x1024xf32>,
    return
  }
  func.func @transform_0(%arg0: i32, %arg1: i32) -> (i32, i32, i32) {
    %c0_i32 = arith.constant 0 : i32
    %c0_i32_0 = arith.constant 0 : i32
    return %arg0, %c0_i32, %arg1 : i32, i32, i32
  }
  func.func @transform_1(%arg0: i32, %arg1: i32) -> (i32, i32) {
    %c0_i32 = arith.constant 0 : i32
    %c0_i32_0 = arith.constant 0 : i32
    %c0_i32_1 = arith.constant 0 : i32
    return %c0_i32, %c0_i32_0 : i32, i32
  }
  func.func @transform_2(%arg0: i32, %arg1: i32) -> (i32, i32) {
    %c0_i32 = arith.constant 0 : i32
    %c0_i32_0 = arith.constant 0 : i32
    %c0_i32_1 = arith.constant 0 : i32
    return %c0_i32, %c0_i32_0 : i32, i32
  }
  func.func @transform_3(%arg0: i32, %arg1: i32) -> (i32, i32, i32) {
    %c0_i32 = arith.constant 0 : i32
    %c0_i32_0 = arith.constant 0 : i32
    return %arg0, %c0_i32, %arg1 : i32, i32, i32
  }
}

</mosaic_0001>

<bundles_post_ra>
// kernel: up_conv_forward.3
= control target key start
LH: loop header
LB: loop body
LE: loop exit
PB: predicated region body
PF: predicated region fallthrough
CT: control target
= control target key end

     0   :  { %s433_s12 = smov 0   ;;  %s435_s13 = smov 0   ;;  %s472_s0 = inlined_call_operand.vmem [shape: f32[2,8,1024], index: 0, kind: input, shape index: {}, may-alias: {0,3}]   ;;  %s473_s1 = inlined_call_operand.vmem [shape: f32[8,1], index: 1, kind: input, shape index: {}]   ;;  %s474_s2 = inlined_call_operand.vmem [shape: f32[8,1], index: 2, kind: input, shape index: {}]   ;;  %s475_s3 = inlined_call_operand.vmem [shape: f32[2,8,1024], index: 3, kind: output, shape index: {}, may-alias: {0,3}]  }
   0x1   :  { %s437_s14 = smov 0  }
   0x2 LB: > { %s25_s15 = sadd.s32 1, %s406_s13  ;;  %p353_p0 = scmp.ge.s32.totalorder %s410_s14, 1  ;;  %s410_s14 = sphi %s437_s14, %s13_s14   ;;  %s406_s13 = sphi %s435_s13, %s477_s13   ;;  %s402_s12 = sphi %s433_s12, %s476_s12  }
   0x3   : > { %p27_p1 = scmp.ge.s32.totalorder %s25_s15, 2  ;;  %p158_p2 = scmp.lt.s32.totalorder %s410_s14, 3 }
   0x5   : > { %s479_s15 = smov (%p27_p1, %s25_s15), 0  ;;  %p159_p3 = pnand %p353_p0, %p158_p2 }
   0x6   : > { %v218_v0 = vld [vmem:[%s473_s1] sm:$0xff] (!%p159_p3)  ;;  %v412_v1 = vmov (!%p159_p3), 0   ;;  %p191_p4 = scmp.lt.s32.totalorder (!%p159_p3), %s402_s12, 1 }
   0x7   : > { %162 = sbr.rel (%p159_p3) target bundleno = 148 (0x94), region = 32  ;;  %387 = vset.pattern.permute.xlu0 (!%p159_p3), %v412_v1  ;;  %v232_v2 = vld [vmem:[%s474_s2] sm:$0xff] (!%p159_p3) }
   0x8   : > { %221 = vperm.xlu0 (!%p159_p3), %387, %v218_v0  }
   0xc   : > { %235 = vperm.xlu0 (!%p159_p3), %387, %v232_v2  }
   0xe   : > { %s481_s12 = smov (!%p191_p4, %s402_s12), 1 }
   0xf   : > { %s360_s20 = sshll.u32 %s481_s12, 6 }
  0x10   : > { %s198_s23 = scalar_lea.vmem %s472_s0, %s360_s20  ;;  %s208_s26 = scalar_lea.vmem %s475_s3, %s360_s20 }
  0x11   : > { %v210_v3 = vld [vmem:[%s198_s23] sm:$0xff]  ;;  %v211_v4 = vld [vmem:[%s198_s23 + $0x8] sm:$0xff]  ;;  %v212_v6 = vld [vmem:[%s198_s23 + $0x10] sm:$0xff] }
  0x12   : > { %v213_v7 = vld [vmem:[%s198_s23 + $0x18] sm:$0xff]  ;;  %v214_v8 = vld [vmem:[%s198_s23 + $0x20] sm:$0xff]  ;;  %v215_v9 = vld [vmem:[%s198_s23 + $0x28] sm:$0xff] }
  0x13   : > { %v216_v10 = vld [vmem:[%s198_s23 + $0x30] sm:$0xff]  ;;  %v217_v11 = vld [vmem:[%s198_s23 + $0x38] sm:$0xff] }
  0x87   : > { %v222_v5 = vpop.permute.xlu0 %221 }
  0x88   : > { %v224_v12 = vmul.f32 %v222_v5, %v210_v3  ;;  %v225_v13 = vmul.f32 %v222_v5, %v211_v4  ;;  %v226_v14 = vmul.f32 %v222_v5, %v212_v6  ;;  %v227_v15 = vmul.f32 %v222_v5, %v213_v7 }
  0x89   : > { %v228_v17 = vmul.f32 %v222_v5, %v214_v8  ;;  %v229_v18 = vmul.f32 %v222_v5, %v215_v9  ;;  %v230_v19 = vmul.f32 %v222_v5, %v216_v10  ;;  %v231_v20 = vmul.f32 %v222_v5, %v217_v11 }
  0x8b   : > { %v236_v16 = vpop.permute.xlu0 %235 }
  0x8c   : > { %v238_v21 = vadd.f32 %v236_v16, %v224_v12  ;;  %v239_v22 = vadd.f32 %v236_v16, %v225_v13  ;;  %v240_v23 = vadd.f32 %v236_v16, %v226_v14  ;;  %v241_v24 = vadd.f32 %v236_v16, %v227_v15 }
  0x8d   : > { %v242_v25 = vadd.f32 %v236_v16, %v228_v17  ;;  %v243_v26 = vadd.f32 %v236_v16, %v229_v18  ;;  %v244_v27 = vadd.f32 %v236_v16, %v230_v19  ;;  %v245_v28 = vadd.f32 %v236_v16, %v231_v20 }
  0x8e   : > { %v246_v29 = vmax.f32 %v238_v21, 0.0  ;;  %v247_v30 = vmax.f32 %v239_v22, 0.0  ;;  %v248_v31 = vmax.f32 %v240_v23, 0.0  ;;  %v249_v32 = vmax.f32 %v241_v24, 0.0 }
  0x8f   : > { %v250_v33 = vmax.f32 %v242_v25, 0.0  ;;  %v251_v34 = vmax.f32 %v243_v26, 0.0  ;;  %v252_v35 = vmax.f32 %v244_v27, 0.0  ;;  %v253_v36 = vmax.f32 %v245_v28, 0.0 }
  0x90   : > { %254 = vst [vmem:[%s208_s26] sm:$0xff] %v246_v29  ;;  %255 = vst [vmem:[%s208_s26 + $0x8] sm:$0xff] %v247_v30 }
  0x91   : > { %256 = vst [vmem:[%s208_s26 + $0x10] sm:$0xff] %v248_v31  ;;  %257 = vst [vmem:[%s208_s26 + $0x18] sm:$0xff] %v249_v32 }
  0x92   : > { %258 = vst [vmem:[%s208_s26 + $0x20] sm:$0xff] %v250_v33  ;;  %259 = vst [vmem:[%s208_s26 + $0x28] sm:$0xff] %v251_v34 }
  0x93   : > { %260 = vst [vmem:[%s208_s26 + $0x30] sm:$0xff] %v252_v35  ;;  %261 = vst [vmem:[%s208_s26 + $0x38] sm:$0xff] %v253_v36 }
  0x94 PF: > { %s13_s14 = sadd.s32 1, %s410_s14   ;;  %s476_s12 = smov %s406_s13 }
  0x95   : > { %p10_p5 = scmp.ge.s32.totalorder %s13_s14, 4   ;;  %s477_s13 = smov %s479_s15 }
  0x97   :  { %12 = sbr.rel (!%p10_p5) target bundleno = 2 (0x2), region = 62 }

// kernel: up_conv_forward.2
= control target key start
LH: loop header
LB: loop body
LE: loop exit
PB: predicated region body
PF: predicated region fallthrough
CT: control target
= control target key end

     0   :  { %s6954_s21 = smov 0   ;;  %s6956_s22 = smov 0   ;;  %s10562_s0 = inlined_call_operand.vmem [shape: f32[2,4,18,16], index: 0, kind: input, shape index: {}]   ;;  %s10563_s1 = inlined_call_operand.vmem [shape: f32[16,34], index: 1, kind: input, shape index: {}]   ;;  %s10564_s2 = inlined_call_operand.vmem [shape: f32[34,18], index: 2, kind: input, shape index: {}]   ;;  %s10565_s3 = inlined_call_operand.vmem [shape: f32[8,36], index: 3, kind: input, shape index: {}]   ;;  %s10566_s4 = inlined_call_operand.vmem [shape: f32[2,8,1024], index: 4, kind: output, shape index: {0}]   ;;  %s10567_s5 = inlined_call_operand.vmem [shape: f32[2,1,1,8], index: 5, kind: output, shape index: {1}]   ;;  %s10568_s6 = inlined_call_operand.vmem [shape: f32[2,1,1,8], index: 6, kind: output, shape index: {2}]  }
   0x1   :  { %s6958_s23 = smov 0  }
   0x2 LB: > { %s29_s24 = sadd.s32 1, %s6903_s22  ;;  %p6101_p0 = scmp.ge.s32.totalorder %s6907_s23, 1  ;;  %s6907_s23 = sphi %s6958_s23, %s17_s23   ;;  %s6903_s22 = sphi %s6956_s22, %s11333_s22   ;;  %s6899_s21 = sphi %s6954_s21, %s11332_s21  }
   0x3   : > { %p31_p1 = scmp.ge.s32.totalorder %s29_s24, 2  ;;  %p235_p2 = scmp.lt.s32.totalorder %s6907_s23, 3 }
   0x5   : > { %s11335_s24 = smov (%p31_p1, %s29_s24), 0  ;;  %p236_p3 = pnand %p6101_p0, %p235_p2 }
   0x7   : > { %239 = sbr.rel (%p236_p3) target bundleno = 1475 (0x5c3), region = 36 }
   0xe   : > { %v498_v0 = vld [vmem:[%s10563_s1] sm:$0xff]  ;;  %v499_v1 = vld [vmem:[%s10563_s1 + $0x8] sm:$0xff]  ;;  %p281_p4 = scmp.lt.s32.totalorder %s6899_s21, 1  ;;  %v10569_v2 = vlaneseq  ;;  %v6909_v3 = vmov 0.0|0.0   ;;  %vm6910_vm0 = vmmov 0   ;;  %v10570_v5 = vmov 0.0  }
   0xf   : > { %6315 = vmatprep.subr.bf16.mxu0 %v6909_v3  ;;  %v6316_v4 = vpack.c.bf16 %v499_v1, %v498_v0  ;;  %6204 = vmatprep.mubr.msk.f32.mxu0 %vm6910_vm0, %v10570_v5  ;;  %v6912_v6 = vmov 1983009808   ;;  %vm653_vm1 = vcmask 130048   ;;  %vm1008_vm2 = vcmask 1041408   ;;  %s6913_s19 = smov 127   ;;  %s6914_s20 = smov 126  }
  0x10   : > { %s11337_s21 = smov (!%p281_p4, %s6899_s21), 1  ;;  %v336_v7 = vunpack.c.l.s4 %v6912_v6  ;;  %v6984_v8 = vshrl.u32 %v10569_v2, 7  ;;  %6318 = vmatprep.subr.bf16.mxu1 %v6909_v3  ;;  %6237 = vmatprep.mubr.msk.f32.mxu1 %vm6910_vm0, %v10570_v5  ;;  %vm992_vm3 = vcmask 146432   ;;  %vm2801_vm4 = vcmask 1046528   ;;  %s6916_s25 = smov 64  }
  0x11   : > { %6317 = vmatpush3.bf16.msra.mxu0 %v6316_v4  ;;  %s6362_s29 = smul.u32 96, %s11337_s21  ;;  %vm4126_vm5 = vcmask 1045504   ;;  %s6917_s26 = smov 32   ;;  %vm1874_vm6 = vcmask 261120   ;;  %vm1876_vm7 = vcmask 523264   ;;  %vm1878_vm8 = vcmask 785408  }
  0x12   : > { %10814 = vst [vmem:[#allocation2_spill] sm:$0xff] %v6984_v8  ;;  %v337_v9 = vunpack.c.0.s8 %v336_v7  ;;  %6324 = vmatprep.subr.bf16.mxu0 %v6909_v3  ;;  %s6918_s27 = smov 96   ;;  %vm5547_vm9 = vcmask 1043456   ;;  %vm5581_vm10 = vcmask 293888   ;;  %s6156_s30 = sshll.u32 %s11337_s21, 6  ;;  %vm5918_vm11 = vcmask 57344  }
  0x13   : > { %s6994_s8 = scalar_lea.vmem %s10562_s0, %s6362_s29  ;;  %s10533_s9 = scalar_lea.vmem %s10566_s4, %s6156_s30 }
  0x14   : > { %v6997_v10 = vsub.s32 %v337_v9, %v6984_v8  ;;  %v310_v11 = vld [vmem:[%s6994_s8] sm:$0xff]  ;;  %v311_v12 = vld [vmem:[%s6994_s8 + $0x8] sm:$0xff]  ;;  %v313_v17 = vld [vmem:[%s6994_s8 + $0x18] sm:$0xff]  ;;  %s301_s12 = scalar_lea.vmem %s10567_s5, %s11337_s21  ;;  %s307_s15 = scalar_lea.vmem %s10568_s6, %s11337_s21 }
  0x15   : > { %v334_v13 = vcombine.high %v310_v11, %v310_v11  ;;  %v351_v15 = vcombine.high %v311_v12, %v311_v12  ;;  %v314_v18 = vld [vmem:[%s6994_s8 + $0x20] sm:$0xff]  ;;  %v375_v19 = vcombine.high %v313_v17, %v313_v17  ;;  %v6105_v33 = vld.sshfl [vmem:[%s6994_s8 + $0x10] sm:$0x3 pattern:$0x76325410]  ;;  %v317_v48 = vld [vmem:[%s6994_s8 + $0x38] sm:$0xff] }
  0x16   : > { %10815 = vst [vmem:[#allocation3_spill] sm:$0xff] %v6997_v10  ;;  %v341_v14 = vrot.slane %v310_v11, %v6997_v10  ;;  %v358_v16 = vrot.slane %v311_v12, %v6997_v10  ;;  %v382_v20 = vrot.slane %v313_v17, %v6997_v10  ;;  %v392_v21 = vcombine.high %v314_v18, %v314_v18  ;;  %v316_v36 = vld [vmem:[%s6994_s8 + $0x30] sm:$0xff]  ;;  %v6106_v57 = vld.sshfl [vmem:[%s6994_s8 + $0x28] sm:$0x3 pattern:$0x76325410] }
  0x17   : > { %v399_v22 = vrot.slane %v314_v18, %v6997_v10  ;;  %v348_v23 = vrot.slane %v334_v13, %v6997_v10  ;;  %v365_v25 = vrot.slane %v351_v15, %v6997_v10  ;;  %v389_v27 = vrot.slane %v375_v19, %v6997_v10  ;;  %v319_v4 = vld [vmem:[%s6994_s8 + $0x48] sm:$0xff]  ;;  %v320_v11 = vld [vmem:[%s6994_s8 + $0x50] sm:$0xff] }
  0x18   : > { %v349_v24 = vcombine.high %v341_v14, %v341_v14  ;;  %v366_v26 = vcombine.high %v358_v16, %v358_v16  ;;  %v390_v28 = vcombine.high %v382_v20, %v382_v20  ;;  %v406_v35 = vrot.slane %v392_v21, %v6997_v10 }
  0x19   : > { %v350_v29 = vcombine.high %v348_v23, %v348_v23  ;;  %v367_v31 = vcombine.high %v365_v25, %v365_v25  ;;  %v391_v34 = vcombine.high %v389_v27, %v389_v27  ;;  %v407_v40 = vcombine.high %v399_v22, %v399_v22 }
  0x1a   : > { %v500_v30 = vcombine.low %v341_v14, %v349_v24  ;;  %v517_v32 = vcombine.low %v358_v16, %v366_v26  ;;  %v534_v42 = vcombine.low %v6105_v33, %v382_v20  ;;  %v535_v43 = vcombine.low %v390_v28, %v389_v27  ;;  %v6107_v20 = vld.sshfl [vmem:[%s6994_s8 + $0x40] sm:$0x3 pattern:$0x76325410] }
  0x1b   : > { %v501_v37 = vcombine.low %v348_v23, %v350_v29  ;;  %v518_v39 = vcombine.low %v365_v25, %v367_v31  ;;  %v423_v46 = vrot.slane %v316_v36, %v6997_v10  ;;  %v416_v47 = vcombine.high %v316_v36, %v316_v36 }
  0x1c   : > { %v508_v38 = vrot.slane %v500_v30, %v6997_v10  ;;  %v525_v41 = vrot.slane %v517_v32, %v6997_v10  ;;  %v551_v50 = vcombine.low %v391_v34, %v399_v22  ;;  %v552_v51 = vcombine.low %v407_v40, %v406_v35 }
  0x1d   : > { %v515_v44 = vrot.slane %v501_v37, %v6997_v10  ;;  %v532_v45 = vrot.slane %v518_v39, %v6997_v10  ;;  %v542_v52 = vrot.slane %v534_v42, %v6997_v10  ;;  %v549_v53 = vrot.slane %v535_v43, %v6997_v10  ;;  %v6108_v39 = vld.sshfl [vmem:[%s6994_s8 + $0x58] sm:$0x3 pattern:$0x76325410] }
  0x1e   : > { %v408_v54 = vcombine.high %v406_v35, %v406_v35  ;;  %v431_v55 = vcombine.high %v423_v46, %v423_v46  ;;  %v430_v58 = vrot.slane %v416_v47, %v6997_v10  ;;  %v440_v59 = vrot.slane %v317_v48, %v6997_v10 }
  0x1f   : > { %v516_v49 = vcombine.low %v508_v38, %v515_v44  ;;  %v533_v56 = vcombine.low %v525_v41, %v532_v45  ;;  %v433_v60 = vcombine.high %v317_v48, %v317_v48  ;;  %v559_v61 = vrot.slane %v551_v50, %v6997_v10 }
  0x20   : > { %v566_v62 = vrot.slane %v552_v51, %v6997_v10  ;;  %v550_v63 = vcombine.low %v542_v52, %v549_v53  ;;  %v568_v0 = vcombine.low %v408_v54, %v6106_v57  ;;  %v569_v1 = vcombine.low %v423_v46, %v431_v55 }
  0x21   : > { %6205 = vmatmul.mubr.msk.f32.vlgmr.msra.gmra.mrb[0].mxu0 %vm653_vm1, %v516_v49  ;;  %v432_v6 = vcombine.high %v430_v58, %v430_v58  ;;  %v448_v7 = vcombine.high %v440_v59, %v440_v59  ;;  %v447_v9 = vrot.slane %v433_v60, %v6997_v10  ;;  %v457_v12 = vcombine.high %v319_v4, %v319_v4 }
  0x22   : > { %6207 = vmatprep.mubr.msk.f32.mxu0 %vm6910_vm0, %v10570_v5  ;;  %v567_v13 = vcombine.low %v559_v61, %v566_v62  ;;  %v576_v14 = vrot.slane %v568_v0, %v6997_v10  ;;  %v583_v15 = vrot.slane %v569_v1, %v6997_v10  ;;  %v464_v16 = vrot.slane %v319_v4, %v6997_v10 }
  0x23   : > { %v474_v17 = vcombine.high %v320_v11, %v320_v11  ;;  %v585_v18 = vcombine.low %v430_v58, %v432_v6  ;;  %v586_v19 = vcombine.low %v440_v59, %v448_v7  ;;  %v449_v21 = vcombine.high %v447_v9, %v447_v9 }
  0x24   : > { %v471_v22 = vrot.slane %v457_v12, %v6997_v10  ;;  %v481_v23 = vrot.slane %v320_v11, %v6997_v10  ;;  %v584_v24 = vcombine.low %v576_v14, %v583_v15  ;;  %v603_v25 = vcombine.low %v6107_v20, %v464_v16 }
  0x25   : > { %6208 = vmatmul.mubr.msk.f32.gmra.mrb[2].mxu0 %vm653_vm1, %v533_v56  ;;  %v472_v26 = vcombine.high %v464_v16, %v464_v16  ;;  %v488_v27 = vrot.slane %v474_v17, %v6997_v10  ;;  %v593_v28 = vrot.slane %v585_v18, %v6997_v10  ;;  %v600_v29 = vrot.slane %v586_v19, %v6997_v10 }
  0x26   : > { %6210 = vmatprep.mubr.msk.f32.mxu0 %vm6910_vm0, %v10570_v5  ;;  %v602_v30 = vcombine.low %v447_v9, %v449_v21  ;;  %v473_v31 = vcombine.high %v471_v22, %v471_v22  ;;  %v617_v32 = vrot.slane %v603_v25, %v6997_v10  ;;  %v489_v34 = vcombine.high %v481_v23, %v481_v23 }
  0x27   : > { %v619_v33 = vcombine.low %v472_v26, %v471_v22  ;;  %v601_v35 = vcombine.low %v593_v28, %v600_v29  ;;  %v490_v38 = vcombine.high %v488_v27, %v488_v27 }
  0x28   : > { %v610_v36 = vrot.slane %v602_v30, %v6997_v10  ;;  %v620_v37 = vcombine.low %v473_v31, %v481_v23  ;;  %v636_v43 = vcombine.low %v489_v34, %v488_v27 }
  0x29   : > { %6211 = vmatmul.mubr.msk.f32.gmra.mrb[4].mxu0 %vm653_vm1, %v550_v63  ;;  %v627_v40 = vrot.slane %v619_v33, %v6997_v10  ;;  %v637_v44 = vcombine.low %v490_v38, %v6108_v39 }
  0x2a   : > { %6213 = vmatprep.mubr.msk.f32.mxu0 %vm6910_vm0, %v10570_v5  ;;  %v618_v41 = vcombine.low %v610_v36, %v617_v32  ;;  %v634_v42 = vrot.slane %v620_v37, %v6997_v10  ;;  %v644_v46 = vrot.slane %v636_v43, %v6997_v10 }
  0x2b   : > { %v651_v47 = vrot.slane %v637_v44, %v6997_v10 }
  0x2c   : > { %v635_v45 = vcombine.low %v627_v40, %v634_v42 }
  0x2d   : > { %6214 = vmatmul.mubr.msk.f32.gmra.mrb[6].mxu0 %vm653_vm1, %v567_v13  ;;  %v652_v48 = vcombine.low %v644_v46, %v651_v47 }
  0x2e   : > { %6216 = vmatprep.mubr.msk.f32.mxu0 %vm6910_vm0, %v10570_v5 }
  0x31   : > { %6217 = vmatmul.mubr.msk.f32.gmra.mrb[8].mxu0 %vm653_vm1, %v584_v24 }
  0x32   : > { %6219 = vmatprep.mubr.msk.f32.mxu0 %vm6910_vm0, %v10570_v5 }
  0x35   : > { %6220 = vmatmul.mubr.msk.f32.gmra.mrb[10].mxu0 %vm653_vm1, %v601_v35 }
  0x36   : > { %6222 = vmatprep.mubr.msk.f32.mxu0 %vm6910_vm0, %v10570_v5 }
  0x39   : > { %6223 = vmatmul.mubr.msk.f32.gmra.mrb[12].mxu0 %vm653_vm1, %v618_v41 }
  0x3a   : > { %6225 = vmatprep.mubr.msk.f32.mxu0 %vm6910_vm0, %v10570_v5 }
  0x3d   : > { %6226 = vmatmul.mubr.msk.f32.gmra.mrb[14].mxu0 %vm653_vm1, %v635_v45 }
  0x3e   : > { %6228 = vmatprep.mubr.msk.f32.mxu0 %vm6910_vm0, %v10570_v5 }
  0x41   : > { %6229 = vmatmul.mubr.msk.f32.gmra.mrb[16].mxu0 %vm653_vm1, %v652_v48 }
  0x42   : > { %6279 = vmatprep.mubr.msk.f32.mxu0 %vm6910_vm0, %v10570_v5 }
  0xf4   : > { %v738_v49 = vpop.f32.mrb[0].mxu0 }
  0xf5   : > { %v791_v50 = vcombine.high %v738_v49, %v738_v49  ;;  %v6206_v51 = vpop.f32.mrb[1].mxu0  ;;  %v798_v52 = vrot.slane %v738_v49, %v6997_v10  ;;  %v7096_v49 = vld [vmem:[%s10564_s2] sm:$0xff] }
  0xf7   : > { %v805_v53 = vrot.slane %v791_v50, %v6997_v10  ;;  %v806_v59 = vcombine.high %v798_v52, %v798_v52 }
  0xf8   : > { %v743_v54 = vpop.f32.mrb[2].mxu0 }
  0xf9   : > { %v807_v55 = vcombine.high %v805_v53, %v805_v53  ;;  %v808_v56 = vcombine.high %v743_v54, %v743_v54  ;;  %v815_v57 = vrot.slane %v743_v54, %v6997_v10  ;;  %v6209_v58 = vpop.f32.mrb[3].mxu0  ;;  %v949_v7 = vcombine.low %v798_v52, %v806_v59 }
  0xfb   : > { %v822_v60 = vrot.slane %v808_v56, %v6997_v10  ;;  %v823_v61 = vcombine.high %v815_v57, %v815_v57  ;;  %v950_v62 = vcombine.low %v805_v53, %v807_v55  ;;  %v957_v21 = vrot.slane %v949_v7, %v6997_v10 }
  0xfc   : > { %v748_v63 = vpop.f32.mrb[4].mxu0 }
  0xfd   : > { %v824_v0 = vcombine.high %v822_v60, %v822_v60  ;;  %v825_v1 = vcombine.high %v748_v63, %v748_v63  ;;  %v832_v4 = vrot.slane %v748_v63, %v6997_v10  ;;  %v6212_v6 = vpop.f32.mrb[5].mxu0  ;;  %v966_v9 = vcombine.low %v815_v57, %v823_v61 }
  0xfe   : > { %v964_v15 = vrot.slane %v950_v62, %v6997_v10  ;;  %v7109_v62 = vld [vmem:[%s10564_s2 + $0x8] sm:$0xff] }
  0xff   : > { %v967_v11 = vcombine.low %v822_v60, %v824_v0  ;;  %v839_v12 = vrot.slane %v825_v1, %v6997_v10  ;;  %v840_v13 = vcombine.high %v832_v4, %v832_v4  ;;  %v974_v22 = vrot.slane %v966_v9, %v6997_v10 }
 0x100   : > { %v753_v14 = vpop.f32.mrb[6].mxu0  ;;  %v965_v28 = vcombine.low %v957_v21, %v964_v15  ;;  %v989_v40 = vrot.slane %v832_v4, %v6997_v10  ;;  %v7124_v15 = vld [vmem:[%s10564_s2 + $0x10] sm:$0xff] }
 0x101   : > { %v1101_v16 = vcombine.low %v840_v13, %v839_v12  ;;  %v841_v17 = vcombine.high %v839_v12, %v839_v12  ;;  %v842_v18 = vcombine.high %v753_v14, %v753_v14  ;;  %v849_v19 = vrot.slane %v753_v14, %v6997_v10  ;;  %v6215_v20 = vpop.f32.mrb[7].mxu0 }
 0x102   : > { %v981_v23 = vrot.slane %v967_v11, %v6997_v10 }
 0x103   : > { %v1109_v24 = vrot.slane %v1101_v16, %v6997_v10  ;;  %v856_v25 = vrot.slane %v842_v18, %v6997_v10  ;;  %v857_v26 = vcombine.high %v849_v19, %v849_v19  ;;  %v1102_v27 = vcombine.low %v841_v17, %v849_v19 }
 0x104   : > { %v982_v29 = vcombine.low %v974_v22, %v981_v23  ;;  %v758_v30 = vpop.f32.mrb[8].mxu0 }
 0x105   : > { %v1116_v31 = vrot.slane %v1102_v27, %v6997_v10  ;;  %v1118_v32 = vcombine.low %v857_v26, %v856_v25  ;;  %v858_v33 = vcombine.high %v856_v25, %v856_v25  ;;  %v859_v34 = vcombine.high %v758_v30, %v758_v30  ;;  %v6218_v35 = vpop.f32.mrb[9].mxu0 }
 0x106   : > { %v6319_v36 = vpack.c.bf16 %v982_v29, %v965_v28  ;;  %v866_v37 = vrot.slane %v758_v30, %v6997_v10  ;;  %v947_v28 = vld [vmem:[%s10564_s2 + $0x18] sm:$0xff] }
 0x107   : > { %v1117_v38 = vcombine.low %v1109_v24, %v1116_v31  ;;  %v873_v39 = vrot.slane %v859_v34, %v6997_v10  ;;  %v1126_v41 = vrot.slane %v1118_v32, %v6997_v10 }
 0x108   : > { %6320 = vmatpush3.bf16.msra.mxu1 %v6319_v36  ;;  %v1119_v42 = vcombine.low %v858_v33, %v866_v37  ;;  %v763_v43 = vpop.f32.mrb[10].mxu0  ;;  %v874_v53 = vcombine.high %v866_v37, %v866_v37 }
 0x109   : > { %v875_v44 = vcombine.high %v873_v39, %v873_v39  ;;  %v876_v45 = vcombine.high %v763_v43, %v763_v43  ;;  %v883_v46 = vrot.slane %v763_v43, %v6997_v10  ;;  %6235 = vmatprep.subr.mxu1 %v10570_v5  ;;  %v6221_v47 = vpop.f32.mrb[11].mxu0 }
 0x10a   : > { %v1133_v48 = vrot.slane %v1119_v42, %v6997_v10  ;;  %v1141_v4 = vrot.slane %v874_v53, %v6997_v10 }
 0x10b   : > { %v1236_v50 = vcombine.low %v873_v39, %v875_v44  ;;  %v890_v51 = vrot.slane %v876_v45, %v6997_v10  ;;  %v891_v52 = vcombine.high %v883_v46, %v883_v46 }
 0x10c   : > { %v1134_v54 = vcombine.low %v1126_v41, %v1133_v48  ;;  %6236 = vmatpush3.msk.msra.mxu1 %vm1008_vm2, %v989_v40  ;;  %v768_v55 = vpop.f32.mrb[12].mxu0 }
 0x10d   : > { %v1244_v56 = vrot.slane %v1236_v50, %v6997_v10  ;;  %v892_v57 = vcombine.high %v890_v51, %v890_v51  ;;  %v1237_v58 = vcombine.low %v883_v46, %v891_v52  ;;  %v893_v59 = vcombine.high %v768_v55, %v768_v55  ;;  %6238 = vmatmul.mubr.msk.f32.vlgmr.msra.gmra.mrb[0].mxu1 %vm992_vm3, %v7096_v49  ;;  %v6224_v60 = vpop.f32.mrb[13].mxu0 }
 0x10e   : > { %v900_v61 = vrot.slane %v768_v55, %v6997_v10  ;;  %6240 = vmatprep.mubr.msk.f32.mxu1 %vm6910_vm0, %v10570_v5  ;;  %6321 = vmatprep.subr.bf16.mxu1 %v6909_v3  ;;  %v6322_v63 = vpack.c.bf16 %v1134_v54, %v1117_v38  ;;  %v948_v38 = vld [vmem:[%s10564_s2 + $0x20] sm:$0x3] }
 0x10f   : > { %v1251_v0 = vrot.slane %v1237_v58, %v6997_v10  ;;  %v1253_v1 = vcombine.low %v890_v51, %v892_v57  ;;  %v907_v6 = vrot.slane %v893_v59, %v6997_v10 }
 0x110   : > { %v908_v7 = vcombine.high %v900_v61, %v900_v61  ;;  %6323 = vmatpush3.bf16.msra.mxu1 %v6322_v63  ;;  %v773_v9 = vpop.f32.mrb[14].mxu0 }
 0x111   : > { %v1252_v11 = vcombine.low %v1244_v56, %v1251_v0  ;;  %v1261_v12 = vrot.slane %v1253_v1, %v6997_v10  ;;  %6241 = vmatmul.mubr.msk.f32.gmra.mrb[2].mxu1 %vm992_vm3, %v7109_v62  ;;  %6256 = vmatprep.subr.mxu1 %v10570_v5  ;;  %v6227_v13 = vpop.f32.mrb[15].mxu0  ;;  %v909_v16 = vcombine.high %v907_v6, %v907_v6 }
 0x112   : > { %v1254_v14 = vcombine.low %v900_v61, %v908_v7  ;;  %6243 = vmatprep.mubr.msk.f32.mxu1 %vm6910_vm0, %v10570_v5  ;;  %v910_v17 = vcombine.high %v773_v9, %v773_v9  ;;  %v917_v18 = vrot.slane %v773_v9, %v6997_v10  ;;  %v1276_v37 = vrot.slane %v907_v6, %v6997_v10 }
 0x114   : > { %v1268_v19 = vrot.slane %v1254_v14, %v6997_v10  ;;  %6257 = vmatpush3.msk.msra.mxu1 %vm1008_vm2, %v1141_v4  ;;  %v924_v20 = vrot.slane %v910_v17, %v6997_v10  ;;  %v925_v21 = vcombine.high %v917_v18, %v917_v18  ;;  %v1371_v22 = vcombine.low %v909_v16, %v917_v18  ;;  %v778_v23 = vpop.f32.mrb[16].mxu0 }
 0x115   : > { %6244 = vmatmul.mubr.msk.f32.gmra.mrb[4].mxu1 %vm992_vm3, %v7124_v15  ;;  %v927_v24 = vcombine.high %v778_v23, %v778_v23  ;;  %v934_v25 = vrot.slane %v778_v23, %v6997_v10  ;;  %6327 = vmatprep.subr.bf16.mxu1 %v6909_v3  ;;  %v6230_v26 = vpop.f32.mrb[17].mxu0 }
 0x116   : > { %v1269_v27 = vcombine.low %v1261_v12, %v1268_v19  ;;  %6246 = vmatprep.mubr.msk.f32.mxu1 %vm6910_vm0, %v10570_v5  ;;  %v1372_v29 = vcombine.low %v925_v21, %v924_v20  ;;  %v1379_v30 = vrot.slane %v1371_v22, %v6997_v10  ;;  %v926_v31 = vcombine.high %v924_v20, %v924_v20 }
 0x117   : > { %v941_v32 = vrot.slane %v927_v24, %v6997_v10  ;;  %v942_v33 = vcombine.high %v934_v25, %v934_v25 }
 0x118   : > { %v6325_v34 = vpack.c.bf16 %v1269_v27, %v1252_v11  ;;  %v1386_v35 = vrot.slane %v1372_v29, %v6997_v10  ;;  %v1388_v3 = vcombine.low %v926_v31, %v934_v25 }
 0x119   : > { %6247 = vmatmul.mubr.msk.f32.gmra.mrb[6].mxu1 %vm992_vm3, %v947_v28  ;;  %v1389_v36 = vcombine.low %v942_v33, %v941_v32  ;;  %v943_v43 = vcombine.high %v941_v32, %v941_v32  ;;  %v6915_v32 = vmov 1934713408  }
 0x11a   : > { %6326 = vmatpush3.bf16.msra.mxu0 %v6325_v34  ;;  %6249 = vmatprep.mubr.msk.f32.mxu1 %vm6910_vm0, %v10570_v5  ;;  %v1387_v39 = vcombine.low %v1379_v30, %v1386_v35  ;;  %v1396_v40 = vrot.slane %v1388_v3, %v6997_v10  ;;  %v1541_v33 = vunpack.c.l.s4 %v6915_v32 }
 0x11b   : > { %6277 = vmatprep.subr.mxu0 %v10570_v5  ;;  %v1403_v41 = vrot.slane %v1389_v36, %v6997_v10  ;;  %v1411_v45 = vrot.slane %v943_v43, %v6997_v10 }
 0x11d   : > { %6250 = vmatmul.mubr.msk.f32.gmra.mrb[8].mxu1 %vm992_vm3, %v948_v38  ;;  %v1404_v42 = vcombine.low %v1396_v40, %v1403_v41 }
 0x11e   : > { %6278 = vmatpush3.msk.msra.mxu0 %vm1008_vm2, %v1276_v37  ;;  %6258 = vmatprep.mubr.msk.f32.mxu1 %vm6910_vm0, %v10570_v5 }
 0x11f   : > { %6280 = vmatmul.mubr.msk.f32.vlgmr.msra.gmra.mrb[18].mxu0 %vm992_vm3, %v7096_v49  ;;  %v6328_v44 = vpack.c.bf16 %v1404_v42, %v1387_v39 }
 0x120   : > { %6282 = vmatprep.mubr.msk.f32.mxu0 %vm6910_vm0, %v10570_v5 }
 0x121   : > { %6259 = vmatmul.mubr.msk.f32.vlgmr.msra.gmra.mrb[10].mxu1 %vm992_vm3, %v7096_v49 }
 0x122   : > { %6261 = vmatprep.mubr.msk.f32.mxu1 %vm6910_vm0, %v10570_v5  ;;  %6329 = vmatpush3.bf16.msra.mxu1 %v6328_v44 }
 0x123   : > { %6283 = vmatmul.mubr.msk.f32.gmra.mrb[20].mxu0 %vm992_vm3, %v7109_v62  ;;  %6298 = vmatprep.subr.mxu1 %v10570_v5 }
 0x124   : > { %6285 = vmatprep.mubr.msk.f32.mxu0 %vm6910_vm0, %v10570_v5 }
 0x125   : > { %6262 = vmatmul.mubr.msk.f32.gmra.mrb[12].mxu1 %vm992_vm3, %v7109_v62 }
 0x126   : > { %6264 = vmatprep.mubr.msk.f32.mxu1 %vm6910_vm0, %v10570_v5  ;;  %6299 = vmatpush3.msk.msra.mxu1 %vm1008_vm2, %v1411_v45  ;;  %v1542_v45 = vunpack.c.0.s8 %v1541_v33 }
 0x127   : > { %6286 = vmatmul.mubr.msk.f32.gmra.mrb[22].mxu0 %vm992_vm3, %v7124_v15 }
 0x128   : > { %6288 = vmatprep.mubr.msk.f32.mxu0 %vm6910_vm0, %v10570_v5 }
 0x129   : > { %6265 = vmatmul.mubr.msk.f32.gmra.mrb[14].mxu1 %vm992_vm3, %v7124_v15 }
 0x12a   : > { %6267 = vmatprep.mubr.msk.f32.mxu1 %vm6910_vm0, %v10570_v5 }
 0x12b   : > { %6289 = vmatmul.mubr.msk.f32.gmra.mrb[24].mxu0 %vm992_vm3, %v947_v28 }
 0x12c   : > { %6291 = vmatprep.mubr.msk.f32.mxu0 %vm6910_vm0, %v10570_v5 }
 0x12d   : > { %6268 = vmatmul.mubr.msk.f32.gmra.mrb[16].mxu1 %vm992_vm3, %v947_v28 }
 0x12e   : > { %6270 = vmatprep.mubr.msk.f32.mxu1 %vm6910_vm0, %v10570_v5 }
 0x12f   : > { %6292 = vmatmul.mubr.msk.f32.gmra.mrb[26].mxu0 %vm992_vm3, %v948_v38 }
 0x130   : > { %5673 = vmatprep.mubr.f32.mxu0 %v10570_v5 }
 0x131   : > { %6271 = vmatmul.mubr.msk.f32.gmra.mrb[18].mxu1 %vm992_vm3, %v948_v38 }
 0x132   : > { %6300 = vmatprep.mubr.msk.f32.mxu1 %vm6910_vm0, %v10570_v5 }
 0x135   : > { %6301 = vmatmul.mubr.msk.f32.vlgmr.msra.gmra.mrb[20].mxu1 %vm992_vm3, %v7096_v49 }
 0x136   : > { %6303 = vmatprep.mubr.msk.f32.mxu1 %vm6910_vm0, %v10570_v5 }
 0x139   : > { %6304 = vmatmul.mubr.msk.f32.gmra.mrb[22].mxu1 %vm992_vm3, %v7109_v62 }
 0x13a   : > { %6306 = vmatprep.mubr.msk.f32.mxu1 %vm6910_vm0, %v10570_v5 }
 0x13d   : > { %6307 = vmatmul.mubr.msk.f32.gmra.mrb[24].mxu1 %vm992_vm3, %v7124_v15 }
 0x13e   : > { %6309 = vmatprep.mubr.msk.f32.mxu1 %vm6910_vm0, %v10570_v5 }
 0x141   : > { %6310 = vmatmul.mubr.msk.f32.gmra.mrb[26].mxu1 %vm992_vm3, %v947_v28 }
 0x142   : > { %6312 = vmatprep.mubr.msk.f32.mxu1 %vm6910_vm0, %v10570_v5 }
 0x145   : > { %6313 = vmatmul.mubr.msk.f32.gmra.mrb[28].mxu1 %vm992_vm3, %v948_v38 }
 0x146   : > { %5744 = vmatprep.mubr.f32.mxu1 %v10570_v5 }
 0x1e0   : > { %v7211_v46 = vpop.f32.mrb[0].mxu1 }
 0x1e1   : > { %1917 = vrot.lane.b32.xlu0 %v7211_v46, %s6913_s19  ;;  %v6239_v47 = vpop.f32.mrb[1].mxu1  ;;  %v2802_v50 = vrot.slane %v7211_v46, 1  ;;  %v4127_v52 = vrot.slane %v7211_v46, 2 }
 0x1e4   : > { %v7215_v48 = vpop.f32.mrb[2].mxu1 }
 0x1e5   : > { %2357 = vrot.lane.b32.xlu0 %v7211_v46, %s6914_s20  ;;  %1919 = vrot.lane.b32.xlu1 %v7215_v48, %s6913_s19  ;;  %v6242_v49 = vpop.f32.mrb[3].mxu1  ;;  %v2803_v51 = vrot.slane %v7215_v48, 1  ;;  %v4128_v53 = vrot.slane %v7215_v48, 2 }
 0x1e7   : > { %v7226_v54 = vsel %vm2801_vm4, %v2802_v50, %v2803_v51  ;;  %v7229_v55 = vsel %vm4126_vm5, %v4127_v52, %v4128_v53 }
 0x1e8   : > { %v7231_v56 = vpop.f32.mrb[4].mxu1 }
 0x1e9   : > { %2359 = vrot.lane.b32.xlu1 %v7215_v48, %s6914_s20  ;;  %1921 = vrot.lane.b32.xlu0 %v7231_v56, %s6913_s19  ;;  %v6245_v57 = vpop.f32.mrb[5].mxu1  ;;  %v2805_v58 = vrot.slane %v7231_v56, 1  ;;  %v4130_v59 = vrot.slane %v7231_v56, 2 }
 0x1eb   : > { %v7240_v60 = vsel %vm2801_vm4, %v2803_v51, %v2805_v58  ;;  %v7243_v61 = vsel %vm4126_vm5, %v4128_v53, %v4130_v59 }
 0x1ec   : > { %v7245_v62 = vpop.f32.mrb[6].mxu1 }
 0x1ed   : > { %3686 = vrot.lane.b32.xlu1 %v7226_v54, %s6914_s20  ;;  %2361 = vrot.lane.b32.xlu0 %v7231_v56, %s6914_s20  ;;  %v6248_v63 = vpop.f32.mrb[7].mxu1  ;;  %v2807_v0 = vrot.slane %v7245_v62, 1  ;;  %v4132_v1 = vrot.slane %v7245_v62, 2 }
 0x1ef   : > { %v7254_v4 = vsel %vm2801_vm4, %v2805_v58, %v2807_v0  ;;  %v7257_v6 = vsel %vm4126_vm5, %v4130_v59, %v4132_v1 }
 0x1f0   : > { %v1097_v7 = vpop.f32.mrb[8].mxu1 }
 0x1f1   : > { %4571 = vrot.lane.b32.xlu1 %v7229_v55, %s6913_s19  ;;  %v2809_v9 = vrot.slane %v1097_v7, 1  ;;  %v4134_v11 = vrot.slane %v1097_v7, 2  ;;  %v6251_v12 = vpop.f32.mrb[9].mxu1 }
 0x1f2   : > { %v7261_v13 = vpop.f32.mrb[18].mxu0 }
 0x1f3   : > { %v1506_v14 = vcombine.low %v7211_v46, %v7261_v13  ;;  %v1507_v15 = vcombine.high %v7211_v46, %v7261_v13  ;;  %1933 = vrot.lane.b32.xlu0 %v7261_v13, %s6913_s19  ;;  %v6281_v16 = vpop.f32.mrb[19].mxu0  ;;  %v7270_v17 = vsel %vm2801_vm4, %v2807_v0, %v2809_v9  ;;  %v7273_v18 = vsel %vm4126_vm5, %v4132_v1, %v4134_v11 }
 0x1f4   : > { %v7275_v19 = vpop.f32.mrb[10].mxu1  ;;  %v2820_v21 = vrot.slane %v7261_v13, 1  ;;  %v4145_v22 = vrot.slane %v7261_v13, 2 }
 0x1f5   : > { %3246 = vrot.lane.b32.xlu1 %v7226_v54, %s6913_s19  ;;  %v6260_v20 = vpop.f32.mrb[11].mxu1  ;;  %v2811_v24 = vrot.slane %v7275_v19, 1  ;;  %v4136_v25 = vrot.slane %v7275_v19, 2 }
 0x1f6   : > { %v7281_v23 = vpop.f32.mrb[20].mxu0 }
 0x1f7   : > { %v1574_v26 = vcombine.low %v7215_v48, %v7281_v23  ;;  %v1575_v27 = vcombine.high %v7215_v48, %v7281_v23  ;;  %2373 = vrot.lane.b32.xlu0 %v7261_v13, %s6914_s20  ;;  %v6284_v28 = vpop.f32.mrb[21].mxu0  ;;  %v2821_v29 = vrot.slane %v7281_v23, 1  ;;  %v4146_v30 = vrot.slane %v7281_v23, 2 }
 0x1f8   : > { %v7293_v31 = vpop.f32.mrb[12].mxu1 }
 0x1f9   : > { %5011 = vrot.lane.b32.xlu1 %v7229_v55, %s6914_s20  ;;  %v6263_v34 = vpop.f32.mrb[13].mxu1  ;;  %v2812_v35 = vrot.slane %v7293_v31, 1  ;;  %v4137_v3 = vrot.slane %v7293_v31, 2  ;;  %v7300_v36 = vsel %vm2801_vm4, %v2820_v21, %v2821_v29  ;;  %v7303_v37 = vsel %vm4126_vm5, %v4145_v22, %v4146_v30 }
 0x1fa   : > { %10816 = vst [vmem:[#allocation4_spill] sm:$0xff] %v7300_v36  ;;  %10817 = vst [vmem:[#allocation5_spill] sm:$0xff] %v7303_v37  ;;  %v7305_v38 = vpop.f32.mrb[22].mxu0  ;;  %v7356_v22 = vsub.s32 %v1542_v45, %v6984_v8  ;;  %v2855_v28 = vcombine.high %v7226_v54, %v7300_v36  ;;  %v4180_v45 = vcombine.high %v7229_v55, %v7303_v37 }
 0x1fb   : > { %v1642_v39 = vcombine.low %v7231_v56, %v7305_v38  ;;  %v1643_v40 = vcombine.high %v7231_v56, %v7305_v38  ;;  %1925 = vrot.lane.b32.xlu0 %v7275_v19, %s6913_s19  ;;  %v6287_v41 = vpop.f32.mrb[23].mxu0  ;;  %v7314_v42 = vsel %vm2801_vm4, %v2811_v24, %v2812_v35  ;;  %v7317_v43 = vsel %vm4126_vm5, %v4136_v25, %v4137_v3 }
 0x1fc   : > { %v7319_v44 = vpop.f32.mrb[14].mxu1  ;;  %v2823_v51 = vrot.slane %v7305_v38, 1  ;;  %v4148_v52 = vrot.slane %v7305_v38, 2  ;;  %v2854_v25 = vcombine.low %v7226_v54, %v7300_v36  ;;  %v4179_v54 = vcombine.low %v7229_v55, %v7303_v37 }
 0x1fd   : > { %3688 = vrot.lane.b32.xlu1 %v7240_v60, %s6914_s20  ;;  %v6266_v47 = vpop.f32.mrb[15].mxu1  ;;  %v2814_v49 = vrot.slane %v7319_v44, 1  ;;  %v4139_v50 = vrot.slane %v7319_v44, 2  ;;  %v7458_v48 = vrot.slane %v1643_v40, %v6997_v10 }
 0x1fe   : > { %v7327_v53 = vpop.f32.mrb[24].mxu0  ;;  %v7344_v7 = vsel %vm2801_vm4, %v2821_v29, %v2823_v51  ;;  %v7347_v9 = vsel %vm4126_vm5, %v4146_v30, %v4148_v52  ;;  %v7384_v47 = vrot.slane %v1506_v14, %v6997_v10 }
 0x1ff   : > { %2365 = vrot.lane.b32.xlu0 %v7275_v19, %s6914_s20  ;;  %v6290_v59 = vpop.f32.mrb[25].mxu0  ;;  %v7336_v63 = vsel %vm2801_vm4, %v2812_v35, %v2814_v49  ;;  %v7339_v0 = vsel %vm4126_vm5, %v4137_v3, %v4139_v50  ;;  %10818 = vst [vmem:[#allocation6_spill] sm:$0xff] %v7344_v7  ;;  %10819 = vst [vmem:[#allocation7_spill] sm:$0xff] %v7347_v9  ;;  %v2825_v11 = vrot.slane %v7327_v53, 1  ;;  %v4150_v12 = vrot.slane %v7327_v53, 2 }
 0x200   : > { %v7341_v1 = vpop.f32.mrb[16].mxu1  ;;  %10822 = vst [vmem:[#allocation10_spill] sm:$0xff] %v7384_v47  ;;  %v2922_v55 = vcombine.low %v7240_v60, %v7344_v7  ;;  %v2923_v59 = vcombine.high %v7240_v60, %v7344_v7  ;;  %v4247_v14 = vcombine.low %v7243_v61, %v7347_v9  ;;  %v4248_v46 = vcombine.high %v7243_v61, %v7347_v9 }
 0x201   : > { %4573 = vrot.lane.b32.xlu1 %v7243_v61, %s6913_s19  ;;  %v6269_v16 = vpop.f32.mrb[17].mxu1  ;;  %v2816_v20 = vrot.slane %v7341_v1, 1  ;;  %v4141_v21 = vrot.slane %v7341_v1, 2  ;;  %v7363_v29 = vsel %vm2801_vm4, %v2823_v51, %v2825_v11  ;;  %v7366_v30 = vsel %vm4126_vm5, %v4148_v52, %v4150_v12 }
 0x202   : > { %v1367_v24 = vpop.f32.mrb[26].mxu0  ;;  %10820 = vst [vmem:[#allocation8_spill] sm:$0xff] %v7363_v29  ;;  %10821 = vst [vmem:[#allocation9_spill] sm:$0xff] %v7366_v30 }
 0x203   : > { %1937 = vrot.lane.b32.xlu0 %v7305_v38, %s6913_s19  ;;  %v2827_v32 = vrot.slane %v1367_v24, 1  ;;  %v4152_v33 = vrot.slane %v1367_v24, 2  ;;  %v7371_v34 = vsel %vm2801_vm4, %v2814_v49, %v2816_v20  ;;  %v7374_v35 = vsel %vm4126_vm5, %v4139_v50, %v4141_v21  ;;  %v6293_v3 = vpop.f32.mrb[27].mxu0 }
 0x204   : > { %v1232_v41 = vpop.f32.mrb[18].mxu1  ;;  %v7390_v49 = vrot.slane %v1507_v15, %v6997_v10  ;;  %v7417_v24 = vrot.slane %v2855_v28, %v6997_v10 }
 0x205   : > { %3248 = vrot.lane.b32.xlu1 %v7240_v60, %s6913_s19  ;;  %v2818_v50 = vrot.slane %v1232_v41, 1  ;;  %v4143_v51 = vrot.slane %v1232_v41, 2  ;;  %v6272_v52 = vpop.f32.mrb[19].mxu1  ;;  %v7403_v13 = vsel %vm2801_vm4, %v2825_v11, %v2827_v32  ;;  %v7406_v15 = vsel %vm4126_vm5, %v4150_v12, %v4152_v33 }
 0x206   : > { %10823 = vst [vmem:[#allocation11_spill] sm:$0xff] %v7390_v49  ;;  %v7414_v60 = vrot.slane %v2854_v25, %v6997_v10  ;;  %10825 = vst [vmem:[#allocation13_spill] sm:$0xff] %v7417_v24  ;;  %v7425_v12 = vrot.slane %v4179_v54, %v6997_v10  ;;  %v7428_v32 = vrot.slane %v4180_v45, %v6997_v10 }
 0x207   : > { %2377 = vrot.lane.b32.xlu0 %v7305_v38, %s6914_s20  ;;  %v7411_v16 = vsel %vm2801_vm4, %v2816_v20, %v2818_v50  ;;  %v7420_v3 = vsel %vm4126_vm5, %v4141_v21, %v4143_v51  ;;  %v7434_v20 = vrot.slane %v1574_v26, %v6997_v10  ;;  %v7440_v21 = vrot.slane %v1575_v27, %v6997_v10 }
 0x208   : > { %10824 = vst [vmem:[#allocation12_spill] sm:$0xff] %v7414_v60  ;;  %v7422_v11 = vpop.f32.mrb[20].mxu1  ;;  %v7452_v26 = vrot.slane %v1642_v39, %v6997_v10  ;;  %v7461_v27 = vrot.slane %v2922_v55, %v6997_v10  ;;  %v7470_v41 = vrot.slane %v4248_v46, %v6997_v10  ;;  %v2990_v45 = vcombine.low %v7254_v4, %v7363_v29 }
 0x209   : > { %10826 = vst [vmem:[#allocation14_spill] sm:$0xff] %v7422_v11  ;;  %10827 = vst [vmem:[#allocation15_spill] sm:$0xff] %v7434_v20  ;;  %v1522_v25 = vcombine.low %v7275_v19, %v7422_v11  ;;  %v1523_v28 = vcombine.high %v7275_v19, %v7422_v11  ;;  %5013 = vrot.lane.b32.xlu1 %v7243_v61, %s6914_s20  ;;  %v6302_v33 = vpop.f32.mrb[21].mxu1  ;;  %v7464_v19 = vrot.slane %v2923_v59, %v6997_v10 }
 0x20a   : > { %10828 = vst [vmem:[#allocation16_spill] sm:$0xff] %v7440_v21  ;;  %v7467_v61 = vrot.slane %v4247_v14, %v6997_v10  ;;  %10830 = vst [vmem:[#allocation18_spill] sm:$0xff] %v7470_v41  ;;  %v2829_v39 = vrot.slane %v7422_v11, 1  ;;  %v4154_v56 = vrot.slane %v7422_v11, 2  ;;  %v2991_v50 = vcombine.high %v7254_v4, %v7363_v29 }
 0x20b   : > { %3694 = vrot.lane.b32.xlu0 %v7314_v42, %s6914_s20  ;;  %v7477_v38 = vrot.slane %v1522_v25, %v6997_v10  ;;  %v7480_v40 = vrot.slane %v1523_v28, %v6997_v10  ;;  %v4315_v51 = vcombine.low %v7257_v6, %v7366_v30  ;;  %v4316_v52 = vcombine.high %v7257_v6, %v7366_v30 }
 0x20c   : > { %10829 = vst [vmem:[#allocation17_spill] sm:$0xff] %v7467_v61  ;;  %v7482_v54 = vpop.f32.mrb[22].mxu1 }
 0x20d   : > { %10831 = vst [vmem:[#allocation19_spill] sm:$0xff] %v7477_v38  ;;  %10832 = vst [vmem:[#allocation20_spill] sm:$0xff] %v7480_v40  ;;  %v1590_v55 = vcombine.low %v7293_v31, %v7482_v54  ;;  %v1591_v59 = vcombine.high %v7293_v31, %v7482_v54  ;;  %1923 = vrot.lane.b32.xlu1 %v7245_v62, %s6913_s19  ;;  %v6305_v14 = vpop.f32.mrb[23].mxu1  ;;  %v2830_v46 = vrot.slane %v7482_v54, 1  ;;  %v4155_v25 = vrot.slane %v7482_v54, 2 }
 0x20e   : > { %10833 = vst [vmem:[#allocation21_spill] sm:$0xff] %v7482_v54  ;;  %v1539_v28 = vcombine.high %v7384_v47, %v7477_v38  ;;  %v1555_v33 = vcombine.high %v7390_v49, %v7480_v40 }
 0x20f   : > { %4579 = vrot.lane.b32.xlu0 %v7317_v43, %s6913_s19  ;;  %v7511_v14 = vsel %vm2801_vm4, %v2829_v39, %v2830_v46  ;;  %v7514_v57 = vsel %vm4126_vm5, %v4154_v56, %v4155_v25  ;;  %v7517_v5 = vrot.slane %v1590_v55, %v6997_v10  ;;  %v7520_v8 = vrot.slane %v1591_v59, %v6997_v10 }
 0x210   : > { %10834 = vst [vmem:[#allocation22_spill] sm:$0xff] %v7511_v14  ;;  %10835 = vst [vmem:[#allocation23_spill] sm:$0xff] %v7514_v57  ;;  %v7522_v54 = vpop.f32.mrb[24].mxu1  ;;  %v2870_v58 = vcombine.low %v7314_v42, %v7511_v14  ;;  %v2871_v2 = vcombine.high %v7314_v42, %v7511_v14  ;;  %v4195_v39 = vcombine.low %v7317_v43, %v7514_v57 }
 0x211   : > { %10836 = vst [vmem:[#allocation24_spill] sm:$0xff] %v7517_v5  ;;  %10837 = vst [vmem:[#allocation25_spill] sm:$0xff] %v7520_v8  ;;  %v4196_v56 = vcombine.high %v7317_v43, %v7514_v57  ;;  %2363 = vrot.lane.b32.xlu1 %v7245_v62, %s6914_s20  ;;  %v6308_v30 = vpop.f32.mrb[25].mxu1  ;;  %v7539_v29 = vrot.slane %v1539_v28, %v7356_v22  ;;  %v7542_v40 = vrot.slane %v1555_v33, %v7356_v22 }
 0x212   : > { %v7545_v49 = vrot.slane %v2870_v58, %v6997_v10  ;;  %v7548_v38 = vrot.slane %v2871_v2, %v6997_v10  ;;  %v7551_v55 = vrot.slane %v4195_v39, %v6997_v10  ;;  %v7561_v28 = vrot.slane %v2990_v45, %v6997_v10 }
 0x213   : > { %10838 = vst [vmem:[#allocation26_spill] sm:$0xff] %v7539_v29  ;;  %v7554_v59 = vrot.slane %v4196_v56, %v6997_v10  ;;  %3254 = vrot.lane.b32.xlu0 %v7314_v42, %s6913_s19  ;;  %v7564_v58 = vrot.slane %v2991_v50, %v6997_v10  ;;  %v2832_v2 = vrot.slane %v7522_v54, 1  ;;  %v7584_v39 = vrot.slane %v4315_v51, %v6997_v10 }
 0x214   : > { %10839 = vst [vmem:[#allocation27_spill] sm:$0xff] %v7545_v49  ;;  %10840 = vst [vmem:[#allocation28_spill] sm:$0xff] %v7548_v38  ;;  %v7567_v33 = vpop.f32.mrb[26].mxu1  ;;  %v7587_v56 = vrot.slane %v4316_v52, %v6997_v10  ;;  %v4157_v45 = vrot.slane %v7522_v54, 2  ;;  %v1607_v50 = vcombine.high %v7434_v20, %v7517_v5  ;;  %v10849_v20 = vmov 0.0  }
 0x215   : > { %10841 = vst [vmem:[#allocation29_spill] sm:$0xff] %v7561_v28  ;;  %10842 = vst [vmem:[#allocation30_spill] sm:$0xff] %v7564_v58  ;;  %3690 = vrot.lane.b32.xlu1 %v7254_v4, %s6914_s20  ;;  %v6311_v47 = vpop.f32.mrb[27].mxu1  ;;  %v7590_v42 = vsel %vm2801_vm4, %v2830_v46, %v2832_v2  ;;  %v1623_v46 = vcombine.high %v7440_v21, %v7520_v8  ;;  %v2834_v9 = vrot.slane %v7567_v33, 1 }
 0x216   : > { %10843 = vst [vmem:[#allocation31_spill] sm:$0xff] %v7584_v39  ;;  %10844 = vst [vmem:[#allocation32_spill] sm:$0xff] %v7587_v56  ;;  %v2938_v47 = vcombine.low %v7336_v63, %v7590_v42  ;;  %v2939_v51 = vcombine.high %v7336_v63, %v7590_v42  ;;  %v7610_v14 = vsel %vm4126_vm5, %v4155_v25, %v4157_v45 }
 0x217   : > { %10845 = vst [vmem:[#allocation33_spill] sm:$0xff] %v7590_v42  ;;  %5019 = vrot.lane.b32.xlu0 %v7317_v43, %s6914_s20  ;;  %10846 = vst [vmem:[#allocation34_spill] sm:$0xff] %v7610_v14  ;;  %v7613_v30 = vrot.slane %v1607_v50, %v7356_v22  ;;  %v3059_v25 = vcombine.high %v7270_v17, %v7403_v13  ;;  %v4263_v43 = vcombine.low %v7339_v0, %v7610_v14 }
 0x218   : > { %v7607_v57 = vpop.f32.mrb[28].mxu1  ;;  %v7622_v52 = vrot.slane %v2938_v47, %v6997_v10  ;;  %v7625_v8 = vrot.slane %v2939_v51, %v6997_v10  ;;  %v4264_v21 = vcombine.high %v7339_v0, %v7610_v14  ;;  %v7634_v5 = vrot.slane %v1623_v46, %v7356_v22 }
 0x219   : > { %10847 = vst [vmem:[#allocation35_spill] sm:$0xff] %v7613_v30  ;;  %v2836_v42 = vrot.slane %v7607_v57, 1  ;;  %4575 = vrot.lane.b32.xlu1 %v7257_v6, %s6913_s19  ;;  %v6314_v50 = vpop.f32.mrb[29].mxu1  ;;  %v7638_v47 = vcombine.high %v7613_v30, %v10849_v20  ;;  %v7647_v7 = vsel %vm2801_vm4, %v2832_v2, %v2834_v9  ;;  %v4159_v14 = vrot.slane %v7567_v33, 2 }
 0x21a   : > { %10848 = vst [vmem:[#allocation36_spill] sm:$0xff] %v7634_v5  ;;  %10851 = vst [vmem:[#allocation38_spill] sm:$0xff] %v7647_v7  ;;  %v7651_v46 = vrot.slane %v4263_v43, %v6997_v10  ;;  %v7654_v11 = vrot.slane %v4264_v21, %v6997_v10  ;;  %v7658_v37 = vcombine.high %v7634_v5, %v10849_v20 }
 0x21b   : > { %10850 = vst [vmem:[#allocation37_spill] sm:$0xff] %v7638_v47  ;;  %1929 = vrot.lane.b32.xlu0 %v7319_v44, %s6913_s19  ;;  %v3006_v2 = vcombine.low %v7371_v34, %v7647_v7  ;;  %v3007_v43 = vcombine.high %v7371_v34, %v7647_v7  ;;  %v7669_v50 = vsel %vm4126_vm5, %v4157_v45, %v4159_v14 }
 0x21c   : > { %10852 = vst [vmem:[#allocation39_spill] sm:$0xff] %v7651_v46  ;;  %10853 = vst [vmem:[#allocation40_spill] sm:$0xff] %v7654_v11  ;;  %v7673_v21 = vcombine.high %v7539_v29, %v10849_v20  ;;  %v4331_v30 = vcombine.low %v7374_v35, %v7669_v50  ;;  %v4332_v36 = vcombine.high %v7374_v35, %v7669_v50 }
 0x21d   : > { %10854 = vst [vmem:[#allocation41_spill] sm:$0xff] %v7658_v37  ;;  %3250 = vrot.lane.b32.xlu1 %v7254_v4, %s6913_s19  ;;  %10855 = vst [vmem:[#allocation42_spill] sm:$0xff] %v7669_v50  ;;  %v7686_v45 = vrot.slane %v3006_v2, %v6997_v10  ;;  %v7689_v7 = vrot.slane %v3007_v43, %v6997_v10  ;;  %v7695_v51 = vcombine.high %v7542_v40, %v10849_v20 }
 0x21e   : > { %10856 = vst [vmem:[#allocation43_spill] sm:$0xff] %v7673_v21  ;;  %v7698_v4 = vrot.slane %v4331_v30, %v6997_v10  ;;  %v2887_v5 = vcombine.high %v7414_v60, %v7545_v49  ;;  %v2903_v2 = vcombine.high %v7417_v24, %v7548_v38  ;;  %v10861_v43 = vcombine.low %v7319_v44, %v7522_v54 }
 0x21f   : > { %2369 = vrot.lane.b32.xlu0 %v7319_v44, %s6914_s20  ;;  %10857 = vst [vmem:[#allocation44_spill] sm:$0xff] %v7686_v45  ;;  %10858 = vst [vmem:[#allocation45_spill] sm:$0xff] %v7689_v7  ;;  %v3023_v30 = vcombine.high %v7561_v28, %v7686_v45  ;;  %v7719_v38 = vrot.slane %v4332_v36, %v6997_v10  ;;  %v10865_v36 = vcombine.high %v7319_v44, %v7522_v54 }
 0x220   : > { %10859 = vst [vmem:[#allocation46_spill] sm:$0xff] %v7695_v51  ;;  %10860 = vst [vmem:[#allocation47_spill] sm:$0xff] %v7698_v4  ;;  %v7708_v29 = vrot.slane %v10861_v43, %v6997_v10  ;;  %v7729_v50 = vrot.slane %v2903_v2, %v7356_v22  ;;  %v4161_v2 = vrot.slane %v7607_v57, 2  ;;  %v10866_v43 = vcombine.low %v7270_v17, %v7403_v13 }
 0x221   : > { %5015 = vrot.lane.b32.xlu1 %v7257_v6, %s6914_s20  ;;  %10862 = vst [vmem:[#allocation48_spill] sm:$0xff] %v7719_v38  ;;  %v7726_v6 = vrot.slane %v2887_v5, %v7356_v22  ;;  %v7739_v24 = vrot.slane %v10865_v36, %v6997_v10  ;;  %v4383_v45 = vcombine.low %v7273_v18, %v7406_v15 }
 0x222   : > { %10864 = vst [vmem:[#allocation50_spill] sm:$0xff] %v7729_v50  ;;  %v1675_v5 = vcombine.high %v7452_v26, %v7708_v29  ;;  %v7761_v57 = vrot.slane %v10866_v43, %v6997_v10  ;;  %v7766_v28 = vsel %vm2801_vm4, %v2834_v9, %v2836_v42  ;;  %v4384_v60 = vcombine.high %v7273_v18, %v7406_v15 }
 0x223   : > { %10863 = vst [vmem:[#allocation49_spill] sm:$0xff] %v7726_v6  ;;  %3696 = vrot.lane.b32.xlu0 %v7336_v63, %s6914_s20  ;;  %v1691_v36 = vcombine.high %v7458_v48, %v7739_v24  ;;  %10868 = vst [vmem:[#allocation52_spill] sm:$0xff] %v7766_v28  ;;  %v7786_v9 = vcombine.high %v7729_v50, %v10849_v20  ;;  %v3074_v42 = vcombine.low %v7411_v16, %v7766_v28 }
 0x224   : > { %v7753_v44 = vrot.slane %v1675_v5, %v7356_v22  ;;  %10867 = vst [vmem:[#allocation51_spill] sm:$0xff] %v7761_v57  ;;  %v7773_v5 = vrot.slane %v3059_v25, %v6997_v10  ;;  %v3075_v25 = vcombine.high %v7411_v16, %v7766_v28  ;;  %v7793_v49 = vsel %vm4126_vm5, %v4159_v14, %v4161_v2  ;;  %v10894_v57 = vld [vmem:[#allocation19_spill] sm:$0xff] }
 0x225   : > { %3692 = vrot.lane.b32.xlu1 %v7270_v17, %s6914_s20  ;;  %v7778_v43 = vrot.slane %v1691_v36, %v7356_v22  ;;  %10870 = vst [vmem:[#allocation54_spill] sm:$0xff] %v7786_v9  ;;  %10871 = vst [vmem:[#allocation55_spill] sm:$0xff] %v7793_v49  ;;  %v7799_v36 = vcombine.high %v7726_v6, %v10849_v20  ;;  %v4399_v37 = vcombine.low %v7420_v3, %v7793_v49 }
 0x226   : > { %10869 = vst [vmem:[#allocation53_spill] sm:$0xff] %v7773_v5  ;;  %v7782_v21 = vcombine.high %v7753_v44, %v10849_v20  ;;  %v4400_v28 = vcombine.high %v7420_v3, %v7793_v49  ;;  %v7810_v14 = vrot.slane %v4383_v45, %v6997_v10  ;;  %v7813_v2 = vrot.slane %v3074_v42, %v6997_v10 }
 0x227   : > { %4581 = vrot.lane.b32.xlu0 %v7339_v0, %s6913_s19  ;;  %v7803_v47 = vcombine.high %v7778_v43, %v10849_v20  ;;  %v7816_v50 = vrot.slane %v3075_v25, %v6997_v10  ;;  %v7823_v51 = vrot.slane %v4384_v60, %v6997_v10  ;;  %v7828_v45 = vrot.slane %v4399_v37, %v6997_v10 }
 0x228   : > { %10872 = vst [vmem:[#allocation56_spill] sm:$0xff] %v7810_v14  ;;  %10873 = vst [vmem:[#allocation57_spill] sm:$0xff] %v7813_v2  ;;  %v7831_v42 = vrot.slane %v4400_v28, %v6997_v10  ;;  %v10879_v6 = vcombine.low %v7341_v1, %v7567_v33  ;;  %v10881_v37 = vcombine.high %v7341_v1, %v7567_v33 }
 0x229   : > { %4577 = vrot.lane.b32.xlu1 %v7273_v18, %s6913_s19  ;;  %10874 = vst [vmem:[#allocation58_spill] sm:$0xff] %v7816_v50  ;;  %10875 = vst [vmem:[#allocation59_spill] sm:$0xff] %v7823_v51  ;;  %v7870_v25 = vrot.slane %v3023_v30, %v7356_v22  ;;  %v10886_v30 = vld [vmem:[#allocation14_spill] sm:$0xff]  ;;  %v10898_v50 = vld [vmem:[#allocation20_spill] sm:$0xff] }
 0x22a   : > { %10876 = vst [vmem:[#allocation60_spill] sm:$0xff] %v7828_v45  ;;  %10877 = vst [vmem:[#allocation61_spill] sm:$0xff] %v7831_v42  ;;  %v7855_v49 = vrot.slane %v10879_v6, %v6997_v10  ;;  %v7867_v28 = vrot.slane %v10881_v37, %v6997_v10 }
 0x22b   : > { %3256 = vrot.lane.b32.xlu0 %v7336_v63, %s6913_s19  ;;  %v10878_v63 = vcombine.low %v7245_v62, %v7327_v53 }
 0x22d   : > { %v7841_v60 = vrot.slane %v10878_v63, %v6997_v10  ;;  %3252 = vrot.lane.b32.xlu1 %v7270_v17, %s6913_s19  ;;  %v10880_v63 = vcombine.high %v7245_v62, %v7327_v53 }
 0x22f   : > { %v7861_v17 = vrot.slane %v10880_v63, %v6997_v10  ;;  %5021 = vrot.lane.b32.xlu0 %v7339_v0, %s6914_s20  ;;  %v1743_v6 = vcombine.high %v7841_v60, %v7855_v49  ;;  %v10882_v63 = vcombine.high %v7470_v41, %v7654_v11  ;;  %v7890_v0 = vcombine.high %v7870_v25, %v10849_v20  ;;  %v10890_v41 = vld [vmem:[#allocation23_spill] sm:$0xff] }
 0x231   : > { %v7882_v9 = vrot.slane %v10882_v63, %v7356_v22  ;;  %v1759_v37 = vcombine.high %v7861_v17, %v7867_v28  ;;  %5017 = vrot.lane.b32.xlu1 %v7273_v18, %s6914_s20  ;;  %v7895_v62 = vrot.slane %v1743_v6, %v7356_v22  ;;  %v10884_v6 = vld [vmem:[#allocation4_spill] sm:$0xff] }
 0x233   : > { %10883 = vst [vmem:[#allocation62_spill] sm:$0xff] %v7882_v9  ;;  %v7899_v63 = vcombine.high %v7882_v9, %v10849_v20  ;;  %v7904_v11 = vrot.slane %v1759_v37, %v7356_v22  ;;  %3698 = vrot.lane.b32.xlu0 %v7371_v34, %s6914_s20  ;;  %v7912_v18 = vcombine.high %v7895_v62, %v10849_v20 }
 0x235   : > { %v7920_v37 = vcombine.high %v7904_v11, %v10849_v20  ;;  %1935 = vrot.lane.b32.xlu1 %v7281_v23, %s6913_s19 }
 0x237   : > { %4583 = vrot.lane.b32.xlu0 %v7374_v35, %s6913_s19 }
 0x239   : > { %2375 = vrot.lane.b32.xlu1 %v7281_v23, %s6914_s20 }
 0x23b   : > { %3258 = vrot.lane.b32.xlu0 %v7371_v34, %s6913_s19  ;;  %v10887_v34 = vld [vmem:[#allocation6_spill] sm:$0xff] }
 0x23d   : > { %1927 = vrot.lane.b32.xlu1 %v7293_v31, %s6913_s19 }
 0x23f   : > { %5023 = vrot.lane.b32.xlu0 %v7374_v35, %s6914_s20  ;;  %v10885_v35 = vld [vmem:[#allocation5_spill] sm:$0xff] }
 0x241   : > { %2367 = vrot.lane.b32.xlu1 %v7293_v31, %s6914_s20 }
 0x243   : > { %3700 = vrot.lane.b32.xlu0 %v7411_v16, %s6914_s20 }
 0x245   : > { %3702 = vrot.lane.b32.xlu1 %v10884_v6, %s6914_s20 }
 0x247   : > { %4585 = vrot.lane.b32.xlu0 %v7420_v3, %s6913_s19 }
 0x249   : > { %4587 = vrot.lane.b32.xlu1 %v10885_v35, %s6913_s19 }
 0x24b   : > { %3260 = vrot.lane.b32.xlu0 %v7411_v16, %s6913_s19 }
 0x24d   : > { %3262 = vrot.lane.b32.xlu1 %v10884_v6, %s6913_s19 }
 0x24f   : > { %5025 = vrot.lane.b32.xlu0 %v7420_v3, %s6914_s20  ;;  %v10888_v3 = vld [vmem:[#allocation7_spill] sm:$0xff] }
 0x251   : > { %5027 = vrot.lane.b32.xlu1 %v10885_v35, %s6914_s20  ;;  %v10889_v35 = vld [vmem:[#allocation22_spill] sm:$0xff] }
 0x253   : > { %v7976_v31 = vpop.permute.xlu0 %1917  ;;  %1941 = vrot.lane.b32.xlu0 %v10886_v30, %s6913_s19 }
 0x255   : > { %3704 = vrot.lane.b32.xlu1 %v10887_v34, %s6914_s20 }
 0x257   : > { %v7982_v23 = vpop.permute.xlu0 %2357  ;;  %v7984_v16 = vpop.permute.xlu1 %1919  ;;  %2381 = vrot.lane.b32.xlu0 %v10886_v30, %s6914_s20 }
 0x259   : > { %4589 = vrot.lane.b32.xlu1 %v10888_v3, %s6913_s19 }
 0x25b   : > { %v7990_v6 = vpop.permute.xlu1 %2359  ;;  %3710 = vrot.lane.b32.xlu0 %v10889_v35, %s6914_s20  ;;  %v7994_v9 = vpop.permute.xlu0 %1921 }
 0x25d   : > { %3264 = vrot.lane.b32.xlu1 %v10887_v34, %s6913_s19 }
 0x25f   : > { %v7998_v10 = vpop.permute.xlu1 %3686  ;;  %4595 = vrot.lane.b32.xlu0 %v10890_v41, %s6913_s19  ;;  %v8002_v45 = vpop.permute.xlu0 %2361 }
 0x261   : > { %5029 = vrot.lane.b32.xlu1 %v10888_v3, %s6914_s20 }
 0x263   : > { %v8006_v30 = vpop.permute.xlu1 %4571  ;;  %3270 = vrot.lane.b32.xlu0 %v10889_v35, %s6913_s19  ;;  %v10891_v35 = vld [vmem:[#allocation26_spill] sm:$0xff] }
 0x264   : > { %v10892_v51 = vpack.i.bf16 %v7542_v40, %v10891_v35 }
 0x265   : > { %v8010_v14 = vpop.permute.xlu0 %1933  ;;  %1939 = vrot.lane.b32.xlu1 %v7327_v53, %s6913_s19 }
 0x267   : > { %v8014_v34 = vpop.permute.xlu1 %3246  ;;  %5035 = vrot.lane.b32.xlu0 %v10890_v41, %s6914_s20  ;;  %v10893_v41 = vld [vmem:[#allocation10_spill] sm:$0xff] }
 0x268   : > { %v10895_v4 = vcombine.low %v10893_v41, %v10894_v57 }
 0x269   : > { %v8018_v42 = vpop.permute.xlu0 %2373  ;;  %2379 = vrot.lane.b32.xlu1 %v7327_v53, %s6914_s20  ;;  %v10897_v53 = vld [vmem:[#allocation11_spill] sm:$0xff] }
 0x26a   : > { %v8036_v39 = vrot.slane %v10895_v4, %v7356_v22  ;;  %v10899_v5 = vcombine.low %v10897_v53, %v10898_v50  ;;  %v10905_v53 = vld [vmem:[#allocation9_spill] sm:$0xff] }
 0x26b   : > { %v8022_v3 = vpop.permute.xlu1 %5011  ;;  %6398 = vrot.lane.b32.xlu0 %v10892_v51, %s6916_s25 }
 0x26c   : > { %10896 = vst [vmem:[#allocation4_spill] sm:$0xff] %v8036_v39  ;;  %v8042_v38 = vrot.slane %v10899_v5, %v7356_v22  ;;  %v1570_v51 = vcombine.high %v8036_v39, %v10849_v20  ;;  %v10903_v5 = vld [vmem:[#allocation8_spill] sm:$0xff] }
 0x26d   : > { %v8028_v2 = vpop.permute.xlu0 %1925  ;;  %1931 = vrot.lane.b32.xlu1 %v7341_v1, %s6913_s19 }
 0x26e   : > { %10900 = vst [vmem:[#allocation5_spill] sm:$0xff] %v8042_v38  ;;  %v1572_v4 = vcombine.high %v8042_v38, %v10849_v20 }
 0x26f   : > { %v8044_v56 = vpop.permute.xlu1 %3688  ;;  %1945 = vrot.lane.b32.xlu0 %v7522_v54, %s6913_s19 }
 0x270   : > { %10901 = vst [vmem:[#allocation14_spill] sm:$0xff] %v8044_v56  ;;  %v6402_v35 = vpack.i.bf16 %v1572_v4, %v1570_v51  ;;  %v10909_v4 = vld [vmem:[#allocation34_spill] sm:$0xff] }
 0x271   : > { %v8048_v40 = vpop.permute.xlu0 %2365  ;;  %2371 = vrot.lane.b32.xlu1 %v7341_v1, %s6914_s20 }
 0x273   : > { %v8056_v57 = vpop.permute.xlu1 %4573  ;;  %2385 = vrot.lane.b32.xlu0 %v7522_v54, %s6914_s20  ;;  %v10907_v54 = vld [vmem:[#allocation33_spill] sm:$0xff] }
 0x274   : > { %10902 = vst [vmem:[#allocation6_spill] sm:$0xff] %v8056_v57 }
 0x275   : > { %v8060_v50 = vpop.permute.xlu0 %1937  ;;  %3706 = vrot.lane.b32.xlu1 %v10903_v5, %s6914_s20 }
 0x277   : > { %v8064_v41 = vpop.permute.xlu1 %3248  ;;  %6403 = vrot.lane.b32.xlu0 %v6402_v35, %s6917_s26 }
 0x278   : > { %10904 = vst [vmem:[#allocation7_spill] sm:$0xff] %v8064_v41 }
 0x279   : > { %v8067_v1 = vpop.permute.xlu0 %2377  ;;  %4591 = vrot.lane.b32.xlu1 %v10905_v53, %s6913_s19 }
 0x27b   : > { %v8071_v46 = vpop.permute.xlu1 %5013  ;;  %3712 = vrot.lane.b32.xlu0 %v10907_v54, %s6914_s20 }
 0x27c   : > { %10906 = vst [vmem:[#allocation22_spill] sm:$0xff] %v8071_v46 }
 0x27d   : > { %v8075_v61 = vpop.permute.xlu0 %3694  ;;  %3266 = vrot.lane.b32.xlu1 %v10903_v5, %s6913_s19 }
 0x27f   : > { %v8079_v51 = vpop.permute.xlu1 %1923  ;;  %4597 = vrot.lane.b32.xlu0 %v10909_v4, %s6913_s19 }
 0x280   : > { %10908 = vst [vmem:[#allocation23_spill] sm:$0xff] %v8079_v51 }
 0x281   : > { %v8083_v35 = vpop.permute.xlu0 %4579  ;;  %5031 = vrot.lane.b32.xlu1 %v10905_v53, %s6914_s20 }
 0x283   : > { %v8087_v39 = vpop.permute.xlu1 %2363  ;;  %3272 = vrot.lane.b32.xlu0 %v10907_v54, %s6913_s19  ;;  %v10914_v54 = vld [vmem:[#allocation35_spill] sm:$0xff] }
 0x284   : > { %10910 = vst [vmem:[#allocation26_spill] sm:$0xff] %v8087_v39  ;;  %v10913_v39 = vld [vmem:[#allocation36_spill] sm:$0xff] }
 0x285   : > { %v8091_v38 = vpop.permute.xlu0 %3254  ;;  %3708 = vrot.lane.b32.xlu1 %v7403_v13, %s6914_s20  ;;  %v10915_v46 = vpack.i.bf16 %v10913_v39, %v10914_v54  ;;  %v10919_v39 = vld [vmem:[#allocation42_spill] sm:$0xff]  ;;  %v10921_v54 = vld [vmem:[#allocation21_spill] sm:$0xff] }
 0x287   : > { %v8095_v5 = vpop.permute.xlu1 %3690  ;;  %5037 = vrot.lane.b32.xlu0 %v10909_v4, %s6914_s20  ;;  %v10917_v4 = vld [vmem:[#allocation38_spill] sm:$0xff] }
 0x288   : > { %10911 = vst [vmem:[#allocation10_spill] sm:$0xff] %v8095_v5 }
 0x289   : > { %v8099_v51 = vpop.permute.xlu0 %5019  ;;  %4593 = vrot.lane.b32.xlu1 %v7406_v15, %s6913_s19 }
 0x28b   : > { %v8103_v53 = vpop.permute.xlu1 %4575  ;;  %6413 = vrot.lane.b32.xlu0 %v10915_v46, %s6916_s25 }
 0x28c   : > { %10912 = vst [vmem:[#allocation19_spill] sm:$0xff] %v8103_v53 }
 0x28d   : > { %v8109_v41 = vpop.permute.xlu0 %1929  ;;  %3268 = vrot.lane.b32.xlu1 %v7403_v13, %s6913_s19 }
 0x28f   : > { %v8113_v5 = vpop.permute.xlu1 %3250  ;;  %3714 = vrot.lane.b32.xlu0 %v10917_v4, %s6914_s20 }
 0x290   : > { %10916 = vst [vmem:[#allocation11_spill] sm:$0xff] %v8113_v5 }
 0x291   : > { %v8117_v57 = vpop.permute.xlu0 %2369  ;;  %5033 = vrot.lane.b32.xlu1 %v7406_v15, %s6914_s20  ;;  %v10924_v15 = vcombine.low %v7452_v26, %v7708_v29 }
 0x293   : > { %v8121_v53 = vpop.permute.xlu1 %5015  ;;  %4599 = vrot.lane.b32.xlu0 %v10919_v39, %s6913_s19 }
 0x294   : > { %10918 = vst [vmem:[#allocation20_spill] sm:$0xff] %v8121_v53  ;;  %v8141_v53 = vrot.slane %v10924_v15, %v7356_v22  ;;  %v10935_v15 = vld [vmem:[#allocation50_spill] sm:$0xff] }
 0x295   : > { %v8125_v46 = vpop.permute.xlu0 %3696  ;;  %1943 = vrot.lane.b32.xlu1 %v10921_v54, %s6913_s19 }
 0x296   : > { %10920 = vst [vmem:[#allocation8_spill] sm:$0xff] %v8125_v46  ;;  %10925 = vst [vmem:[#allocation34_spill] sm:$0xff] %v8141_v53  ;;  %v10926_v46 = vcombine.low %v7458_v48, %v7739_v24  ;;  %v1706_v26 = vcombine.high %v8141_v53, %v10849_v20 }
 0x297   : > { %v8129_v13 = vpop.permute.xlu1 %3692  ;;  %3274 = vrot.lane.b32.xlu0 %v10917_v4, %s6913_s19 }
 0x298   : > { %10922 = vst [vmem:[#allocation9_spill] sm:$0xff] %v8129_v13  ;;  %v8147_v56 = vrot.slane %v10926_v46, %v7356_v22  ;;  %v10934_v46 = vld [vmem:[#allocation49_spill] sm:$0xff] }
 0x299   : > { %v8133_v5 = vpop.permute.xlu0 %4581  ;;  %2383 = vrot.lane.b32.xlu1 %v10921_v54, %s6914_s20  ;;  %v10930_v54 = vld [vmem:[#allocation46_spill] sm:$0xff] }
 0x29a   : > { %10923 = vst [vmem:[#allocation33_spill] sm:$0xff] %v8133_v5  ;;  %10927 = vst [vmem:[#allocation36_spill] sm:$0xff] %v8147_v56  ;;  %v10931_v5 = vld [vmem:[#allocation43_spill] sm:$0xff]  ;;  %v1708_v24 = vcombine.high %v8147_v56, %v10849_v20 }
 0x29b   : > { %v8149_v13 = vpop.permute.xlu1 %4577  ;;  %5039 = vrot.lane.b32.xlu0 %v10919_v39, %s6914_s20  ;;  %v10932_v29 = vpack.i.bf16 %v10930_v54, %v10931_v5  ;;  %v10936_v39 = vpack.i.bf16 %v10934_v46, %v10935_v15  ;;  %v10941_v5 = vld [vmem:[#allocation16_spill] sm:$0xff]  ;;  %v10942_v54 = vld [vmem:[#allocation25_spill] sm:$0xff] }
 0x29c   : > { %10928 = vst [vmem:[#allocation35_spill] sm:$0xff] %v8149_v13  ;;  %v10937_v13 = vld [vmem:[#allocation15_spill] sm:$0xff] }
 0x29d   : > { %v8153_v4 = vpop.permute.xlu0 %3256  ;;  %6408 = vrot.lane.b32.xlu1 %v10932_v29, %s6918_s27  ;;  %v10943_v29 = vcombine.low %v10941_v5, %v10942_v54  ;;  %v10950_v5 = vld [vmem:[#allocation52_spill] sm:$0xff] }
 0x29e   : > { %10929 = vst [vmem:[#allocation38_spill] sm:$0xff] %v8153_v4  ;;  %v10938_v4 = vld [vmem:[#allocation24_spill] sm:$0xff] }
 0x29f   : > { %v8163_v48 = vpop.permute.xlu1 %3252  ;;  %6428 = vrot.lane.b32.xlu0 %v10936_v39, %s6916_s25  ;;  %v10939_v7 = vcombine.low %v10937_v13, %v10938_v4  ;;  %v8179_v53 = vrot.slane %v10943_v29, %v7356_v22  ;;  %v10951_v54 = vld [vmem:[#allocation12_spill] sm:$0xff] }
 0x2a0   : > { %10933 = vst [vmem:[#allocation42_spill] sm:$0xff] %v8163_v48  ;;  %v6447_v48 = vpack.i.bf16 %v1708_v24, %v1706_v26  ;;  %v10948_v26 = vpack.i.bf16 %v7803_v47, %v7782_v21  ;;  %v10956_v47 = vld [vmem:[#allocation28_spill] sm:$0xff] }
 0x2a1   : > { %v8173_v58 = vrot.slane %v10939_v7, %v7356_v22  ;;  %10944 = vst [vmem:[#allocation46_spill] sm:$0xff] %v8179_v53  ;;  %v8181_v56 = vpop.permute.xlu0 %5021  ;;  %1947 = vrot.lane.b32.xlu1 %v7567_v33, %s6913_s19  ;;  %v1640_v13 = vcombine.high %v8179_v53, %v10849_v20 }
 0x2a2   : > { %10945 = vst [vmem:[#allocation43_spill] sm:$0xff] %v8181_v56 }
 0x2a3   : > { %10940 = vst [vmem:[#allocation21_spill] sm:$0xff] %v8173_v58  ;;  %v8185_v46 = vpop.permute.xlu1 %5017  ;;  %6448 = vrot.lane.b32.xlu0 %v6447_v48, %s6917_s26  ;;  %v1638_v7 = vcombine.high %v8173_v58, %v10849_v20  ;;  %v10955_v58 = vld [vmem:[#allocation13_spill] sm:$0xff] }
 0x2a4   : > { %10946 = vst [vmem:[#allocation49_spill] sm:$0xff] %v8185_v46  ;;  %v10957_v21 = vcombine.low %v10955_v58, %v10956_v47 }
 0x2a5   : > { %v8192_v4 = vpop.permute.xlu0 %3698  ;;  %2387 = vrot.lane.b32.xlu1 %v7567_v33, %s6914_s20  ;;  %v6417_v24 = vpack.i.bf16 %v1640_v13, %v1638_v7  ;;  %v10952_v33 = vld [vmem:[#allocation27_spill] sm:$0xff] }
 0x2a6   : > { %10947 = vst [vmem:[#allocation50_spill] sm:$0xff] %v8192_v4  ;;  %v10953_v29 = vcombine.low %v10951_v54, %v10952_v33  ;;  %v8219_v7 = vrot.slane %v10957_v21, %v7356_v22  ;;  %v10966_v21 = vcombine.low %v7841_v60, %v7855_v49 }
 0x2a7   : > { %v8196_v15 = vpop.permute.xlu1 %1935  ;;  %6453 = vrot.lane.b32.xlu0 %v10948_v26, %s6918_s27  ;;  %v10960_v26 = vld [vmem:[#allocation41_spill] sm:$0xff] }
 0x2a8   : > { %v8213_v53 = vrot.slane %v10953_v29, %v7356_v22  ;;  %10958 = vst [vmem:[#allocation16_spill] sm:$0xff] %v8219_v7  ;;  %v2920_v58 = vcombine.high %v8219_v7, %v10849_v20  ;;  %v10965_v29 = vpack.i.bf16 %v7778_v43, %v7753_v44 }
 0x2a9   : > { %v8202_v48 = vpop.permute.xlu0 %4583  ;;  %6418 = vrot.lane.b32.xlu1 %v6417_v24, %s6917_s26  ;;  %v10961_v24 = vld [vmem:[#allocation37_spill] sm:$0xff] }
 0x2aa   : > { %10949 = vst [vmem:[#allocation15_spill] sm:$0xff] %v8202_v48  ;;  %10954 = vst [vmem:[#allocation24_spill] sm:$0xff] %v8213_v53  ;;  %v10962_v46 = vpack.i.bf16 %v10960_v26, %v10961_v24  ;;  %v10963_v48 = vld [vmem:[#allocation55_spill] sm:$0xff]  ;;  %v2918_v54 = vcombine.high %v8213_v53, %v10849_v20  ;;  %v8249_v26 = vrot.slane %v10966_v21, %v7356_v22 }
 0x2ab   : > { %v8205_v39 = vpop.permute.xlu1 %2375  ;;  %3716 = vrot.lane.b32.xlu0 %v10950_v5, %s6914_s20  ;;  %v10968_v24 = vcombine.low %v7861_v17, %v7867_v28  ;;  %v10972_v28 = vld [vmem:[#allocation54_spill] sm:$0xff]  ;;  %v10976_v21 = vpack.i.bf16 %v7890_v0, %v7899_v63 }
 0x2ac   : > { %10967 = vst [vmem:[#allocation12_spill] sm:$0xff] %v8249_v26  ;;  %v1774_v49 = vcombine.high %v8249_v26, %v10849_v20  ;;  %v10973_v17 = vpack.i.bf16 %v7799_v36, %v10972_v28  ;;  %v10977_v36 = vld [vmem:[#allocation29_spill] sm:$0xff]  ;;  %v10989_v26 = vld [vmem:[#allocation3_spill] sm:$0xff] }
 0x2ad   : > { %v8221_v13 = vpop.permute.xlu0 %3258  ;;  %6423 = vrot.lane.b32.xlu1 %v10962_v46, %s6918_s27  ;;  %v6437_v46 = vpack.i.bf16 %v2918_v54, %v2920_v58  ;;  %v10974_v58 = vpack.i.bf16 %v7904_v11, %v7895_v62  ;;  %v10982_v62 = vpack.i.bf16 %v7920_v37, %v7912_v18  ;;  %v10987_v18 = vld [vmem:[#allocation62_spill] sm:$0xff] }
 0x2ae   : > { %10959 = vst [vmem:[#allocation25_spill] sm:$0xff] %v8221_v13  ;;  %v10988_v37 = vpack.i.bf16 %v7870_v25, %v10987_v18 }
 0x2af   : > { %v8227_v4 = vpop.permute.xlu1 %1927  ;;  %4601 = vrot.lane.b32.xlu0 %v10963_v48, %s6913_s19 }
 0x2b1   : > { %v8235_v33 = vpop.permute.xlu0 %5023  ;;  %6433 = vrot.lane.b32.xlu1 %v10965_v29, %s6916_s25 }
 0x2b2   : > { %10964 = vst [vmem:[#allocation52_spill] sm:$0xff] %v8235_v33  ;;  %v8255_v33 = vrot.slane %v10968_v24, %v7356_v22  ;;  %v10978_v24 = vld [vmem:[#allocation44_spill] sm:$0xff] }
 0x2b3   : > { %v8241_v47 = vpop.permute.xlu1 %2367  ;;  %3276 = vrot.lane.b32.xlu0 %v10950_v5, %s6913_s19  ;;  %v10979_v28 = vcombine.low %v10977_v36, %v10978_v24  ;;  %v1966_v36 = vcombine.high %v7976_v31, %v8010_v14 }
 0x2b4   : > { %10969 = vst [vmem:[#allocation27_spill] sm:$0xff] %v8255_v33  ;;  %v1776_v60 = vcombine.high %v8255_v33, %v10849_v20 }
 0x2b5   : > { %v8257_v44 = vpop.permute.xlu0 %3700  ;;  %6438 = vrot.lane.b32.xlu1 %v6437_v46, %s6917_s26 }
 0x2b6   : > { %10970 = vst [vmem:[#allocation13_spill] sm:$0xff] %v8257_v44 }
 0x2b7   : > { %v8260_v43 = vpop.permute.xlu1 %3702  ;;  %5041 = vrot.lane.b32.xlu0 %v10963_v48, %s6914_s20  ;;  %v6462_v48 = vpack.i.bf16 %v1776_v60, %v1774_v49  ;;  %v10983_v49 = vld [vmem:[#allocation18_spill] sm:$0xff]  ;;  %v10984_v60 = vld [vmem:[#allocation40_spill] sm:$0xff] }
 0x2b9   : > { %v8268_v5 = vpop.permute.xlu0 %4585  ;;  %6443 = vrot.lane.b32.xlu1 %v10973_v17, %s6918_s27  ;;  %v8293_v17 = vrot.slane %v10979_v28, %v7356_v22 }
 0x2ba   : > { %10971 = vst [vmem:[#allocation28_spill] sm:$0xff] %v8268_v5 }
 0x2bb   : > { %v8274_v54 = vpop.permute.xlu1 %4587  ;;  %6458 = vrot.lane.b32.xlu0 %v10974_v58, %s6916_s25  ;;  %10980 = vst [vmem:[#allocation37_spill] sm:$0xff] %v8293_v17  ;;  %v10985_v58 = vcombine.low %v10983_v49, %v10984_v60  ;;  %v3054_v63 = vcombine.high %v8293_v17, %v10849_v20 }
 0x2bd   : > { %v8280_v29 = vpop.permute.xlu0 %3260  ;;  %6463 = vrot.lane.b32.xlu1 %v6462_v48, %s6917_s26  ;;  %v8305_v48 = vrot.slane %v10985_v58, %v7356_v22 }
 0x2be   : > { %10975 = vst [vmem:[#allocation41_spill] sm:$0xff] %v8280_v29 }
 0x2bf   : > { %v8283_v46 = vpop.permute.xlu1 %3262  ;;  %6483 = vrot.lane.b32.xlu0 %v10976_v21, %s6918_s27  ;;  %10986 = vst [vmem:[#allocation54_spill] sm:$0xff] %v8305_v48  ;;  %v1965_v21 = vcombine.low %v7976_v31, %v8010_v14  ;;  %v4313_v28 = vcombine.high %v8305_v48, %v10849_v20  ;;  %v1980_v14 = vrot.slane %v1966_v36, %v10989_v26 }
 0x2c0   : > { %v2406_v36 = vcombine.high %v7982_v23, %v8018_v42 }
 0x2c1   : > { %v8295_v11 = vpop.permute.xlu0 %5025  ;;  %6468 = vrot.lane.b32.xlu1 %v10982_v62, %s6918_s27  ;;  %v6477_v58 = vpack.i.bf16 %v3054_v63, %v4313_v28  ;;  %v1973_v33 = vrot.slane %v1965_v21, %v10989_v26 }
 0x2c2   : > { %10981 = vst [vmem:[#allocation55_spill] sm:$0xff] %v8295_v11 }
 0x2c3   : > { %v8307_v0 = vpop.permute.xlu1 %5027 }
 0x2c5   : > { %v1942_v24 = vpop.permute.xlu0 %1941  ;;  %6473 = vrot.lane.b32.xlu1 %v10988_v37, %s6916_s25 }
 0x2c6   : > { %v1981_v62 = vcombine.low %v8028_v2, %v1942_v24  ;;  %v1982_v49 = vcombine.high %v8028_v2, %v1942_v24  ;;  %v2405_v2 = vcombine.low %v7982_v23, %v8018_v42  ;;  %v2420_v42 = vrot.slane %v2406_v36, %v10989_v26 }
 0x2c7   : > { %v8323_v60 = vpop.permute.xlu1 %3704 }
 0x2c8   : > { %v1989_v31 = vrot.slane %v1981_v62, %v10989_v26  ;;  %v1996_v17 = vrot.slane %v1982_v49, %v10989_v26 }
 0x2c9   : > { %v2382_v25 = vpop.permute.xlu0 %2381  ;;  %6478 = vrot.lane.b32.xlu1 %v6477_v58, %s6917_s26 }
 0x2ca   : > { %v1997_v18 = vcombine.low %v1973_v33, %v1989_v31  ;;  %v1998_v37 = vcombine.high %v1973_v33, %v1989_v31  ;;  %v2014_v48 = vcombine.high %v1980_v14, %v1996_v17  ;;  %v2421_v24 = vcombine.low %v8048_v40, %v2382_v25 }
 0x2cb   : > { %v2422_v63 = vcombine.high %v8048_v40, %v2382_v25  ;;  %v8334_v21 = vpop.permute.xlu1 %4589  ;;  %v2013_v28 = vcombine.low %v1980_v14, %v1996_v17  ;;  %v2413_v40 = vrot.slane %v2405_v2, %v10989_v26 }
 0x2cc   : > { %v2429_v62 = vrot.slane %v2421_v24, %v10989_v26  ;;  %v2012_v33 = vrot.slane %v1998_v37, %v7356_v22  ;;  %v2028_v58 = vrot.slane %v2014_v48, %v7356_v22  ;;  %v8344_v31 = vrot.slane %v1997_v18, %v7356_v22 }
 0x2cd   : > { %v8339_v49 = vpop.permute.xlu0 %3710  ;;  %v2436_v11 = vrot.slane %v2422_v63, %v10989_v26  ;;  %v8352_v23 = vrot.slane %v2013_v28, %v7356_v22 }
 0x2ce   : > { %10990 = vst [vmem:[#allocation29_spill] sm:$0xff] %v8344_v31  ;;  %v2438_v17 = vcombine.high %v2413_v40, %v2429_v62  ;;  %v6487_v14 = vpack.i.bf16 %v2028_v58, %v2012_v33  ;;  %v2029_v48 = vcombine.high %v8344_v31, %v10849_v20  ;;  %v2437_v63 = vcombine.low %v2413_v40, %v2429_v62 }
 0x2cf   : > { %v8348_v25 = vpop.permute.xlu1 %3264  ;;  %10991 = vst [vmem:[#allocation44_spill] sm:$0xff] %v8352_v23  ;;  %v2454_v37 = vcombine.high %v2420_v42, %v2436_v11  ;;  %v2031_v2 = vcombine.high %v8352_v23, %v10849_v20  ;;  %v2453_v29 = vcombine.low %v2420_v42, %v2436_v11  ;;  %v2030_v7 = vcombine.high %v2012_v33, %v10849_v20 }
 0x2d0   : > { %6488 = vrot.lane.b32.xlu1 %v6487_v14, %s6916_s25  ;;  %v2452_v36 = vrot.slane %v2438_v17, %v7356_v22  ;;  %v8371_v14 = vrot.slane %v2437_v63, %v7356_v22  ;;  %v2032_v62 = vcombine.high %v2028_v58, %v10849_v20 }
 0x2d1   : > { %v8354_v24 = vpop.permute.xlu0 %4595  ;;  %v6497_v5 = vpack.i.bf16 %v2031_v2, %v2029_v48  ;;  %v2468_v44 = vrot.slane %v2454_v37, %v7356_v22  ;;  %v8378_v17 = vrot.slane %v2453_v29, %v7356_v22 }
 0x2d2   : > { %10992 = vst [vmem:[#allocation18_spill] sm:$0xff] %v8371_v14  ;;  %v6502_v11 = vpack.i.bf16 %v2032_v62, %v2030_v7  ;;  %v2470_v29 = vcombine.high %v2452_v36, %v10849_v20 }
 0x2d3   : > { %v8359_v18 = vpop.permute.xlu1 %5029  ;;  %6498 = vrot.lane.b32.xlu0 %v6497_v5, %s6917_s26  ;;  %v6492_v31 = vpack.i.bf16 %v2468_v44, %v2452_v36  ;;  %10993 = vst [vmem:[#allocation40_spill] sm:$0xff] %v8378_v17  ;;  %v2469_v5 = vcombine.high %v8371_v14, %v10849_v20  ;;  %v2471_v33 = vcombine.high %v8378_v17, %v10849_v20 }
 0x2d5   : > { %v8364_v28 = vpop.permute.xlu0 %3270  ;;  %6493 = vrot.lane.b32.xlu1 %v6492_v31, %s6916_s25  ;;  %v6507_v48 = vpack.i.bf16 %v2471_v33, %v2469_v5  ;;  %v2472_v31 = vcombine.high %v2468_v44, %v10849_v20 }
 0x2d7   : > { %v8367_v13 = vpop.permute.xlu1 %1939  ;;  %6503 = vrot.lane.b32.xlu0 %v6502_v11, %s6918_s27  ;;  %v6512_v63 = vpack.i.bf16 %v2472_v31, %v2470_v29 }
 0x2d9   : > { %v8375_v40 = vpop.permute.xlu0 %5035 }
 0x2db   : > { %v8381_v42 = vpop.permute.xlu1 %2379  ;;  %6508 = vrot.lane.b32.xlu0 %v6507_v48, %s6917_s26 }
 0x2dc   : > { %10994 = vst [vmem:[#allocation62_spill] sm:$0xff] %v8381_v42 }
 0x2dd   : > { %v8386_v37 = vpop.permute.xlu0 %6398 }
 0x2de   : > { %10995 = vst [vmem:[#allocation3_spill] sm:$0xff] %v8386_v37  ;;  %v4620_v37 = vcombine.high %v8006_v30, %v8274_v54 }
 0x2df   : > { %v8390_v58 = vpop.permute.xlu1 %1931  ;;  %6513 = vrot.lane.b32.xlu0 %v6512_v63, %s6918_s27 }
 0x2e0   : > { %10996 = vst [vmem:[#allocation63_spill] sm:$0xff] %v8390_v58 }
 0x2e1   : > { %v8394_v7 = vpop.permute.xlu0 %1945 }
 0x2e3   : > { %v8397_v2 = vpop.permute.xlu1 %2371 }
 0x2e4   : > { %10997 = vst [vmem:[#allocation64_spill] sm:$0xff] %v8397_v2 }
 0x2e5   : > { %v8399_v62 = vpop.permute.xlu0 %2385 }
 0x2e7   : > { %v8402_v11 = vpop.permute.xlu1 %3706 }
 0x2e8   : > { %10998 = vst [vmem:[#allocation65_spill] sm:$0xff] %v8402_v11 }
 0x2e9   : > { %v8404_v14 = vpop.permute.xlu0 %6403 }
 0x2ea   : > { %10999 = vst [vmem:[#allocation66_spill] sm:$0xff] %v8404_v14  ;;  %v11023_v14 = vcombine.high %v7461_v27, %v7622_v52 }
 0x2eb   : > { %v8406_v5 = vpop.permute.xlu1 %4591 }
 0x2ec   : > { %11000 = vst [vmem:[#allocation67_spill] sm:$0xff] %v8406_v5 }
 0x2ed   : > { %v8408_v36 = vpop.permute.xlu0 %3712 }
 0x2ee   : > { %11001 = vst [vmem:[#allocation68_spill] sm:$0xff] %v8408_v36 }
 0x2ef   : > { %v8410_v44 = vpop.permute.xlu1 %3266 }
 0x2f0   : > { %11002 = vst [vmem:[#allocation69_spill] sm:$0xff] %v8410_v44 }
 0x2f1   : > { %v8412_v33 = vpop.permute.xlu0 %4597 }
 0x2f2   : > { %11003 = vst [vmem:[#allocation70_spill] sm:$0xff] %v8412_v33 }
 0x2f3   : > { %v8414_v48 = vpop.permute.xlu1 %5031 }
 0x2f4   : > { %11004 = vst [vmem:[#allocation71_spill] sm:$0xff] %v8414_v48  ;;  %v2033_v48 = vcombine.low %v7984_v16, %v8196_v15 }
 0x2f5   : > { %v8416_v17 = vpop.permute.xlu0 %3272 }
 0x2f6   : > { %11005 = vst [vmem:[#allocation72_spill] sm:$0xff] %v8416_v17 }
 0x2f7   : > { %v8418_v29 = vpop.permute.xlu1 %3708 }
 0x2f8   : > { %11006 = vst [vmem:[#allocation73_spill] sm:$0xff] %v8418_v29 }
 0x2f9   : > { %v8420_v31 = vpop.permute.xlu0 %5037 }
 0x2fa   : > { %11007 = vst [vmem:[#allocation74_spill] sm:$0xff] %v8420_v31  ;;  %v2473_v31 = vcombine.low %v7990_v6, %v8205_v39 }
 0x2fb   : > { %v8422_v63 = vpop.permute.xlu1 %4593 }
 0x2fc   : > { %11008 = vst [vmem:[#allocation75_spill] sm:$0xff] %v8422_v63  ;;  %v2034_v63 = vcombine.high %v7984_v16, %v8196_v15 }
 0x2fd   : > { %v8424_v11 = vpop.permute.xlu0 %6413 }
 0x2fe   : > { %11009 = vst [vmem:[#allocation76_spill] sm:$0xff] %v8424_v11  ;;  %v2048_v56 = vrot.slane %v2034_v63, %v10989_v26 }
 0x2ff   : > { %v8426_v2 = vpop.permute.xlu1 %3268 }
 0x300   : > { %11010 = vst [vmem:[#allocation77_spill] sm:$0xff] %v8426_v2 }
 0x301   : > { %v8428_v5 = vpop.permute.xlu0 %3714 }
 0x302   : > { %11011 = vst [vmem:[#allocation78_spill] sm:$0xff] %v8428_v5 }
 0x303   : > { %v8430_v23 = vpop.permute.xlu1 %5033 }
 0x304   : > { %11012 = vst [vmem:[#allocation79_spill] sm:$0xff] %v8430_v23 }
 0x305   : > { %v8432_v44 = vpop.permute.xlu0 %4599 }
 0x306   : > { %11013 = vst [vmem:[#allocation80_spill] sm:$0xff] %v8432_v44  ;;  %v2041_v44 = vrot.slane %v2033_v48, %v10989_v26 }
 0x307   : > { %v1944_v53 = vpop.permute.xlu1 %1943 }
 0x308   : > { %v2049_v29 = vcombine.low %v8227_v4, %v1944_v53  ;;  %v2050_v58 = vcombine.high %v8227_v4, %v1944_v53  ;;  %v2474_v53 = vcombine.high %v7990_v6, %v8205_v39  ;;  %v2101_v6 = vcombine.low %v7994_v9, %v8060_v50 }
 0x309   : > { %v8441_v2 = vpop.permute.xlu0 %3274  ;;  %v2481_v39 = vrot.slane %v2473_v31, %v10989_v26  ;;  %v11020_v31 = vcombine.high %v7464_v19, %v7625_v8 }
 0x30a   : > { %v2057_v11 = vrot.slane %v2049_v29, %v10989_v26  ;;  %11014 = vst [vmem:[#allocation81_spill] sm:$0xff] %v8441_v2  ;;  %v2064_v5 = vrot.slane %v2050_v58, %v10989_v26  ;;  %v3751_v29 = vcombine.high %v8075_v61, %v8339_v49 }
 0x30b   : > { %v2384_v23 = vpop.permute.xlu1 %2383 }
 0x30c   : > { %v2065_v4 = vcombine.low %v2041_v44, %v2057_v11  ;;  %v2489_v16 = vcombine.low %v8241_v47, %v2384_v23  ;;  %v2490_v15 = vcombine.high %v8241_v47, %v2384_v23  ;;  %v2081_v58 = vcombine.low %v2048_v56, %v2064_v5 }
 0x30d   : > { %v2066_v48 = vcombine.high %v2041_v44, %v2057_v11  ;;  %v8458_v33 = vpop.permute.xlu0 %5039  ;;  %v3735_v47 = vcombine.high %v7998_v10, %v8260_v43  ;;  %v2488_v23 = vrot.slane %v2474_v53, %v10989_v26  ;;  %v2082_v11 = vcombine.high %v2048_v56, %v2064_v5 }
 0x30e   : > { %v2497_v63 = vrot.slane %v2489_v16, %v10989_v26  ;;  %v2504_v17 = vrot.slane %v2490_v15, %v10989_v26  ;;  %11016 = vst [vmem:[#allocation83_spill] sm:$0xff] %v8458_v33  ;;  %v8467_v36 = vrot.slane %v2065_v4, %v7356_v22  ;;  %v8470_v44 = vrot.slane %v3751_v29, %v10989_v26 }
 0x30f   : > { %v8454_v2 = vpop.permute.xlu1 %6408  ;;  %v8473_v16 = vrot.slane %v2081_v58, %v7356_v22  ;;  %v4636_v53 = vcombine.high %v8083_v35, %v8354_v24  ;;  %v2080_v56 = vrot.slane %v2066_v48, %v7356_v22  ;;  %v11021_v5 = vcombine.low %v7461_v27, %v7622_v52 }
 0x310   : > { %11015 = vst [vmem:[#allocation82_spill] sm:$0xff] %v8454_v2  ;;  %11017 = vst [vmem:[#allocation84_spill] sm:$0xff] %v8467_v36  ;;  %v2506_v15 = vcombine.high %v2481_v39, %v2497_v63  ;;  %v8481_v2 = vrot.slane %v11020_v31, %v7356_v22  ;;  %v2522_v4 = vcombine.high %v2488_v23, %v2504_v17 }
 0x311   : > { %11018 = vst [vmem:[#allocation85_spill] sm:$0xff] %v8473_v16  ;;  %v8490_v29 = vrot.slane %v11021_v5, %v7356_v22  ;;  %v2102_v58 = vcombine.high %v7994_v9, %v8060_v50  ;;  %v8498_v31 = vrot.slane %v3735_v47, %v10989_v26  ;;  %v8504_v48 = vrot.slane %v11023_v14, %v7356_v22  ;;  %v8508_v42 = vpop.permute.xlu0 %6428 }
 0x312   : > { %v2505_v5 = vcombine.low %v2481_v39, %v2497_v63  ;;  %11024 = vst [vmem:[#allocation88_spill] sm:$0xff] %v8508_v42  ;;  %v2096_v9 = vrot.slane %v2082_v11, %v7356_v22  ;;  %v2097_v50 = vcombine.high %v8467_v36, %v10849_v20  ;;  %v2521_v47 = vcombine.low %v2488_v23, %v2504_v17 }
 0x313   : > { %v8475_v33 = vpop.permute.xlu1 %1947  ;;  %11022 = vst [vmem:[#allocation87_spill] sm:$0xff] %v8490_v29  ;;  %v2099_v27 = vcombine.high %v8473_v16, %v10849_v20  ;;  %v2520_v52 = vrot.slane %v2506_v15, %v7356_v22  ;;  %v8521_v63 = vrot.slane %v4636_v53, %v10989_v26  ;;  %v3311_v39 = vcombine.high %v8091_v38, %v8364_v28 }
 0x314   : > { %11019 = vst [vmem:[#allocation86_spill] sm:$0xff] %v8475_v33  ;;  %v8495_v33 = vrot.slane %v2101_v6, %v10989_v26  ;;  %v3783_v6 = vcombine.high %v8498_v31, %v8470_v44  ;;  %v6517_v11 = vpack.i.bf16 %v2096_v9, %v2080_v56  ;;  %v2536_v36 = vrot.slane %v2522_v4, %v7356_v22 }
 0x315   : > { %v3734_v42 = vcombine.low %v7998_v10, %v8260_v43  ;;  %v4619_v17 = vcombine.low %v8006_v30, %v8274_v54  ;;  %v4635_v23 = vcombine.low %v8083_v35, %v8354_v24  ;;  %v6527_v15 = vpack.i.bf16 %v2099_v27, %v2097_v50  ;;  %v8557_v24 = vpop.permute.xlu0 %6448 }
 0x316   : > { %v8533_v16 = vrot.slane %v4620_v37, %v10989_v26  ;;  %v3295_v53 = vcombine.high %v8014_v34, %v8283_v46  ;;  %v8540_v4 = vrot.slane %v2505_v5, %v7356_v22  ;;  %6518 = vrot.lane.b32.xlu0 %v6517_v11, %s6916_s25  ;;  %v3310_v10 = vcombine.low %v8091_v38, %v8364_v28 }
 0x317   : > { %v8518_v14 = vpop.permute.xlu1 %2387  ;;  %v8546_v30 = vrot.slane %v2521_v47, %v7356_v22  ;;  %6528 = vrot.lane.b32.xlu1 %v6527_v15, %s6917_s26  ;;  %v6522_v35 = vpack.i.bf16 %v2536_v36, %v2520_v52  ;;  %v2098_v43 = vcombine.high %v2080_v56, %v10849_v20  ;;  %11029 = vst [vmem:[#allocation93_spill] sm:$0xff] %v8557_v24 }
 0x318   : > { %11025 = vst [vmem:[#allocation89_spill] sm:$0xff] %v8518_v14  ;;  %v3750_v14 = vcombine.low %v8075_v61, %v8339_v49  ;;  %11026 = vst [vmem:[#allocation90_spill] sm:$0xff] %v8540_v4  ;;  %v4668_v61 = vcombine.high %v8533_v16, %v8521_v63  ;;  %v8555_v49 = vrot.slane %v3311_v39, %v10989_v26 }
 0x319   : > { %11027 = vst [vmem:[#allocation91_spill] sm:$0xff] %v8546_v30  ;;  %v2100_v38 = vcombine.high %v2096_v9, %v10849_v20  ;;  %v8561_v28 = vrot.slane %v3783_v6, %v7356_v22  ;;  %v3294_v37 = vcombine.low %v8014_v34, %v8283_v46  ;;  %v8566_v56 = vrot.slane %v4635_v23, %v10989_v26 }
 0x31a   : > { %v2117_v5 = vcombine.low %v8109_v41, %v8394_v7  ;;  %v2118_v50 = vcombine.high %v8109_v41, %v8394_v7  ;;  %v8573_v47 = vrot.slane %v2102_v58, %v10989_v26  ;;  %v8576_v9 = vrot.slane %v3295_v53, %v10989_v26  ;;  %6523 = vrot.lane.b32.xlu0 %v6522_v35, %s6916_s25 }
 0x31b   : > { %v8550_v54 = vpop.permute.xlu1 %6418  ;;  %v6532_v6 = vpack.i.bf16 %v2100_v38, %v2098_v43  ;;  %v2537_v34 = vcombine.high %v8540_v4, %v10849_v20  ;;  %v8582_v46 = vrot.slane %v3734_v42, %v10989_v26  ;;  %v8585_v27 = vrot.slane %v4619_v17, %v10989_v26  ;;  %v8620_v43 = vpop.permute.xlu0 %6453 }
 0x31c   : > { %11028 = vst [vmem:[#allocation92_spill] sm:$0xff] %v8550_v54  ;;  %v8588_v41 = vrot.slane %v3750_v14, %v10989_v26  ;;  %v2539_v7 = vcombine.high %v8546_v30, %v10849_v20  ;;  %v8593_v58 = vrot.slane %v3310_v10, %v10989_v26  ;;  %v3343_v39 = vcombine.high %v8576_v9, %v8555_v49 }
 0x31d   : > { %6533 = vrot.lane.b32.xlu1 %v6532_v6, %s6918_s27  ;;  %v6547_v42 = vpack.i.bf16 %v8561_v28, %v8481_v2  ;;  %v8601_v11 = vrot.slane %v4668_v61, %v7356_v22  ;;  %v8604_v14 = vrot.slane %v3294_v37, %v10989_v26  ;;  %v4652_v17 = vcombine.high %v8585_v27, %v8566_v56 }
 0x31e   : > { %v8609_v23 = vrot.slane %v2117_v5, %v10989_v26  ;;  %v8612_v15 = vrot.slane %v2118_v50, %v10989_v26  ;;  %v2557_v10 = vcombine.low %v8117_v57, %v8399_v62  ;;  %v2558_v35 = vcombine.high %v8117_v57, %v8399_v62  ;;  %11031 = vst [vmem:[#allocation95_spill] sm:$0xff] %v8620_v43 }
 0x31f   : > { %v8614_v53 = vpop.permute.xlu1 %6423  ;;  %6548 = vrot.lane.b32.xlu0 %v6547_v42, %s6916_s25  ;;  %v6537_v61 = vpack.i.bf16 %v2539_v7, %v2537_v34  ;;  %v2538_v38 = vcombine.high %v2520_v52, %v10849_v20  ;;  %v2541_v37 = vcombine.low %v8002_v45, %v8067_v1  ;;  %v2542_v5 = vcombine.high %v8002_v45, %v8067_v1 }
 0x320   : > { %11030 = vst [vmem:[#allocation94_spill] sm:$0xff] %v8614_v53  ;;  %v3767_v50 = vcombine.high %v8582_v46, %v8588_v41  ;;  %v2540_v6 = vcombine.high %v2536_v36, %v10849_v20  ;;  %v3327_v57 = vcombine.high %v8604_v14, %v8593_v58  ;;  %v5076_v62 = vcombine.high %v8099_v51, %v8375_v40 }
 0x321   : > { %6538 = vrot.lane.b32.xlu1 %v6537_v61, %s6917_s26  ;;  %v6552_v52 = vpack.i.bf16 %v8504_v48, %v8601_v11  ;;  %v8639_v34 = vrot.slane %v3343_v39, %v7356_v22  ;;  %v5060_v45 = vcombine.high %v8022_v3, %v8307_v0  ;;  %v2134_v1 = vcombine.high %v8495_v33, %v8609_v23 }
 0x322   : > { %v11032_v36 = vcombine.high %v7428_v32, %v7554_v59  ;;  %v8650_v42 = vrot.slane %v4652_v17, %v7356_v22  ;;  %v2150_v61 = vcombine.high %v8573_v47, %v8612_v15  ;;  %v8655_v39 = vrot.slane %v2557_v10, %v10989_v26 }
 0x323   : > { %v8658_v43 = vrot.slane %v2558_v35, %v10989_v26  ;;  %6553 = vrot.lane.b32.xlu0 %v6552_v52, %s6916_s25  ;;  %v6542_v30 = vpack.i.bf16 %v2540_v6, %v2538_v38  ;;  %v8662_v4 = vrot.slane %v2541_v37, %v10989_v26  ;;  %v8667_v17 = vpop.permute.xlu1 %6433  ;;  %v8670_v53 = vrot.slane %v3767_v50, %v7356_v22  ;;  %v8681_v37 = vpop.permute.xlu0 %3716 }
 0x324   : > { %v4242_v7 = vrot.slane %v11032_v36, %v7356_v22  ;;  %v8665_v36 = vrot.slane %v2542_v5, %v10989_v26  ;;  %11033 = vst [vmem:[#allocation96_spill] sm:$0xff] %v8667_v17  ;;  %v11034_v10 = vcombine.high %v7425_v12, %v7551_v55  ;;  %v5075_v52 = vcombine.low %v8099_v51, %v8375_v40 }
 0x325   : > { %v8679_v38 = vrot.slane %v5076_v62, %v10989_v26  ;;  %11035 = vst [vmem:[#allocation97_spill] sm:$0xff] %v8681_v37  ;;  %6543 = vrot.lane.b32.xlu1 %v6542_v30, %s6918_s27  ;;  %v8686_v50 = vrot.slane %v3327_v57, %v7356_v22  ;;  %v5059_v6 = vcombine.low %v8022_v3, %v8307_v0  ;;  %v11055_v37 = vld [vmem:[#allocation22_spill] sm:$0xff] }
 0x326   : > { %v4226_v35 = vrot.slane %v11034_v10, %v7356_v22  ;;  %v6562_v5 = vpack.i.bf16 %v4242_v7, %v8639_v34  ;;  %v8691_v10 = vrot.slane %v5060_v45, %v10989_v26  ;;  %v4667_v51 = vcombine.low %v8533_v16, %v8521_v63 }
 0x327   : > { %v6557_v40 = vpack.i.bf16 %v8650_v42, %v8670_v53  ;;  %v2574_v30 = vcombine.high %v8662_v4, %v8655_v39  ;;  %v2590_v62 = vcombine.high %v8665_v36, %v8658_v43  ;;  %v8703_v57 = vrot.slane %v2134_v1, %v7356_v22 }
 0x328   : > { %6563 = vrot.lane.b32.xlu0 %v6562_v5, %s6916_s25  ;;  %v8706_v3 = vrot.slane %v2150_v61, %v7356_v22  ;;  %v2986_v0 = vcombine.high %v8490_v29, %v10849_v20  ;;  %v11036_v16 = vcombine.low %v7464_v19, %v7625_v8  ;;  %v3782_v45 = vcombine.low %v8498_v31, %v8470_v44  ;;  %v8730_v19 = vpop.permute.xlu1 %6438 }
 0x329   : > { %v8719_v5 = vrot.slane %v5075_v52, %v10989_v26  ;;  %v5108_v1 = vcombine.high %v8691_v10, %v8679_v38  ;;  %6558 = vrot.lane.b32.xlu1 %v6557_v40, %s6916_s25  ;;  %v6567_v61 = vpack.i.bf16 %v4226_v35, %v8686_v50  ;;  %v8726_v29 = vrot.slane %v5059_v6, %v10989_v26 }
 0x32a   : > { %v8714_v63 = vrot.slane %v11036_v16, %v7356_v22  ;;  %v4651_v8 = vcombine.low %v8585_v27, %v8566_v56  ;;  %v11038_v44 = vcombine.low %v7428_v32, %v7554_v59  ;;  %v11040_v52 = vcombine.low %v7425_v12, %v7551_v55  ;;  %v8747_v16 = vpop.permute.xlu0 %4601 }
 0x32b   : > { %v8745_v6 = vrot.slane %v4667_v51, %v7356_v22  ;;  %11043 = vst [vmem:[#allocation102_spill] sm:$0xff] %v8747_v16  ;;  %v6572_v56 = vpack.i.bf16 %v8706_v3, %v8703_v57  ;;  %v8753_v32 = vrot.slane %v2574_v30, %v7356_v22  ;;  %v8756_v59 = vrot.slane %v2590_v62, %v7356_v22 }
 0x32c   : > { %11037 = vst [vmem:[#allocation98_spill] sm:$0xff] %v8714_v63  ;;  %v8736_v31 = vrot.slane %v11038_v44, %v7356_v22  ;;  %v8742_v40 = vrot.slane %v11040_v52, %v7356_v22  ;;  %6568 = vrot.lane.b32.xlu0 %v6567_v61, %s6916_s25  ;;  %v3766_v12 = vcombine.low %v8582_v46, %v8588_v41  ;;  %v11046_v44 = vld [vmem:[#allocation30_spill] sm:$0xff]  ;;  %v11047_v52 = vld [vmem:[#allocation45_spill] sm:$0xff]  ;;  %v8818_v16 = vpop.permute.xlu1 %6443 }
 0x32d   : > { %11042 = vst [vmem:[#allocation101_spill] sm:$0xff] %v8745_v6  ;;  %v2988_v55 = vcombine.high %v8714_v63, %v10849_v20  ;;  %v8764_v27 = vcombine.high %v8481_v2, %v10849_v20  ;;  %v8768_v51 = vcombine.high %v8504_v48, %v10849_v20  ;;  %v8771_v30 = vrot.slane %v3782_v45, %v7356_v22 }
 0x32e   : > { %11039 = vst [vmem:[#allocation99_spill] sm:$0xff] %v8736_v31  ;;  %11041 = vst [vmem:[#allocation100_spill] sm:$0xff] %v8742_v40  ;;  %v3342_v62 = vcombine.low %v8576_v9, %v8555_v49  ;;  %v5092_v46 = vcombine.high %v8726_v29, %v8719_v5  ;;  %6573 = vrot.lane.b32.xlu1 %v6572_v56, %s6916_s25  ;;  %v8779_v41 = vrot.slane %v5108_v1, %v7356_v22  ;;  %v8826_v24 = vpop.permute.xlu0 %3276 }
 0x32f   : > { %11044 = vst [vmem:[#allocation103_spill] sm:$0xff] %v8771_v30  ;;  %v8783_v2 = vcombine.high %v8736_v31, %v10849_v20  ;;  %v8787_v48 = vcombine.high %v8742_v40, %v10849_v20  ;;  %v8790_v45 = vcombine.high %v4242_v7, %v10849_v20  ;;  %v8793_v49 = vcombine.high %v4226_v35, %v10849_v20  ;;  %v11049_v35 = vld [vmem:[#allocation14_spill] sm:$0xff] }
 0x330   : > { %v8796_v9 = vrot.slane %v4651_v8, %v7356_v22  ;;  %5348 = vrot.lane.b32.xlu0 %v8779_v41, %s6916_s25  ;;  %v6577_v1 = vpack.i.bf16 %v8756_v59, %v8753_v32  ;;  %v4685_v61 = vcombine.high %v8745_v6, %v10849_v20  ;;  %v11048_v7 = vcombine.high %v11046_v44, %v11047_v52  ;;  %v11050_v31 = vld [vmem:[#allocation6_spill] sm:$0xff] }
 0x331   : > { %v3802_v40 = vcombine.low %v11049_v35, %v8323_v60  ;;  %v3803_v8 = vcombine.high %v11049_v35, %v8323_v60  ;;  %v4687_v63 = vcombine.low %v11050_v31, %v8334_v21  ;;  %v4688_v17 = vcombine.high %v11050_v31, %v8334_v21  ;;  %11053 = vst [vmem:[#allocation6_spill] sm:$0xff] %v8826_v24  ;;  %v11054_v21 = vld [vmem:[#allocation7_spill] sm:$0xff] }
 0x332   : > { %11045 = vst [vmem:[#allocation104_spill] sm:$0xff] %v8796_v9  ;;  %v8808_v56 = vrot.slane %v11048_v7, %v7356_v22  ;;  %v8821_v6 = vrot.slane %v3766_v12, %v7356_v22  ;;  %v8824_v7 = vrot.slane %v3342_v62, %v7356_v22  ;;  %6578 = vrot.lane.b32.xlu1 %v6577_v1, %s6916_s25 }
 0x333   : > { %v8830_v60 = vrot.slane %v5092_v46, %v7356_v22  ;;  %v3800_v35 = vcombine.high %v8771_v30, %v10849_v20  ;;  %v3362_v31 = vcombine.low %v11054_v21, %v8348_v25  ;;  %v3363_v12 = vcombine.high %v11054_v21, %v8348_v25  ;;  %v11056_v46 = vld [vmem:[#allocation23_spill] sm:$0xff] }
 0x334   : > { %11051 = vst [vmem:[#allocation30_spill] sm:$0xff] %v8821_v6  ;;  %11052 = vst [vmem:[#allocation14_spill] sm:$0xff] %v8824_v7  ;;  %v5127_v62 = vcombine.low %v11055_v37, %v8359_v18  ;;  %v5128_v24 = vcombine.high %v11055_v37, %v8359_v18  ;;  %v3326_v1 = vcombine.low %v8604_v14, %v8593_v58 }
 0x335   : > { %v2169_v54 = vcombine.low %v11056_v46, %v8367_v13  ;;  %5336 = vrot.lane.b32.xlu0 %v8830_v60, %s6916_s25  ;;  %v6587_v30 = vpack.i.bf16 %v2986_v0, %v4685_v61  ;;  %v4683_v25 = vcombine.high %v8796_v9, %v10849_v20  ;;  %v8851_v21 = vrot.slane %v3802_v40, %v10989_v26 }
 0x336   : > { %v8854_v52 = vrot.slane %v3803_v8, %v10989_v26  ;;  %v8857_v18 = vrot.slane %v4687_v63, %v10989_v26  ;;  %v2170_v58 = vcombine.high %v11056_v46, %v8367_v13  ;;  %v8862_v14 = vrot.slane %v4688_v17, %v10989_v26  ;;  %v11060_v46 = vld [vmem:[#allocation26_spill] sm:$0xff] }
 0x337   : > { %6588 = vrot.lane.b32.xlu1 %v6587_v30, %s6917_s26  ;;  %v6582_v37 = vpack.i.bf16 %v3800_v35, %v2988_v55  ;;  %v3798_v0 = vcombine.high %v8821_v6, %v10849_v20  ;;  %v3360_v40 = vcombine.high %v8824_v7, %v10849_v20  ;;  %v8870_v61 = vrot.slane %v3362_v31, %v10989_v26  ;;  %v8881_v30 = vpop.permute.xlu1 %6463  ;;  %v8889_v35 = vpop.permute.xlu0 %5041 }
 0x338   : > { %v8873_v63 = vrot.slane %v3363_v12, %v10989_v26  ;;  %v8876_v13 = vrot.slane %v5127_v62, %v10989_v26  ;;  %v8879_v17 = vrot.slane %v5128_v24, %v10989_v26  ;;  %11057 = vst [vmem:[#allocation7_spill] sm:$0xff] %v8881_v30  ;;  %v8884_v55 = vrot.slane %v3326_v1, %v7356_v22  ;;  %v11059_v1 = vld [vmem:[#allocation62_spill] sm:$0xff] }
 0x339   : > { %v8887_v8 = vrot.slane %v2169_v54, %v10989_v26  ;;  %6583 = vrot.lane.b32.xlu0 %v6582_v37, %s6917_s26  ;;  %v6592_v31 = vpack.i.bf16 %v4683_v25, %v3798_v0  ;;  %v3801_v12 = vcombine.high %v8561_v28, %v10849_v20  ;;  %v8895_v24 = vrot.slane %v2170_v58, %v10989_v26  ;;  %v11061_v37 = vld [vmem:[#allocation3_spill] sm:$0xff]  ;;  %v11062_v62 = vld [vmem:[#allocation66_spill] sm:$0xff] }
 0x33a   : > { %11058 = vst [vmem:[#allocation22_spill] sm:$0xff] %v8884_v55  ;;  %v2133_v54 = vcombine.low %v8495_v33, %v8609_v23  ;;  %v5107_v7 = vcombine.low %v8691_v10, %v8679_v38  ;;  %v2149_v25 = vcombine.low %v8573_v47, %v8612_v15  ;;  %v6602_v28 = vpack.i.bf16 %v8783_v2, %v3360_v40  ;;  %v11063_v10 = vld [vmem:[#allocation68_spill] sm:$0xff] }
 0x33b   : > { %6593 = vrot.lane.b32.xlu1 %v6592_v31, %s6917_s26  ;;  %v4686_v58 = vcombine.high %v8601_v11, %v10849_v20  ;;  %v2573_v30 = vcombine.low %v8662_v4, %v8655_v39  ;;  %v6406_v33 = vunpack.i.h.bf16 %v11062_v62  ;;  %v6405_v23 = vunpack.i.l.bf16 %v11062_v62  ;;  %v11064_v47 = vld [vmem:[#allocation8_spill] sm:$0xff]  ;;  %v11066_v39 = vld [vmem:[#allocation70_spill] sm:$0xff]  ;;  %v11067_v31 = vld [vmem:[#allocation33_spill] sm:$0xff]  ;;  %v8932_v6 = vpop.permute.xlu1 %6468 }
 0x33c   : > { %v6400_v38 = vunpack.i.l.bf16 %v11061_v37  ;;  %v3818_v15 = vcombine.low %v11064_v47, %v11063_v10  ;;  %v6597_v2 = vpack.i.bf16 %v3801_v12, %v8764_v27  ;;  %v3358_v11 = vcombine.high %v8884_v55, %v10849_v20  ;;  %11068 = vst [vmem:[#allocation62_spill] sm:$0xff] %v8932_v6  ;;  %v8939_v12 = vpop.permute.xlu0 %6458 }
 0x33d   : > { %6603 = vrot.lane.b32.xlu0 %v6602_v28, %s6917_s26  ;;  %v8924_v40 = vrot.slane %v2133_v54, %v7356_v22  ;;  %v3819_v4 = vcombine.high %v11064_v47, %v11063_v10  ;;  %v4703_v62 = vcombine.low %v11067_v31, %v11066_v39  ;;  %v4704_v0 = vcombine.high %v11067_v31, %v11066_v39  ;;  %v11073_v39 = vld [vmem:[#allocation5_spill] sm:$0xff] }
 0x33e   : > { %v8935_v28 = vrot.slane %v2149_v25, %v7356_v22  ;;  %v2589_v27 = vcombine.low %v8665_v36, %v8658_v43  ;;  %11070 = vst [vmem:[#allocation3_spill] sm:$0xff] %v8939_v12  ;;  %v6607_v54 = vpack.i.bf16 %v8768_v51, %v4686_v58  ;;  %v8944_v10 = vrot.slane %v5107_v7, %v7356_v22  ;;  %v11074_v25 = vld [vmem:[#allocation4_spill] sm:$0xff]  ;;  %v11076_v36 = vld [vmem:[#allocation38_spill] sm:$0xff]  ;;  %v11078_v7 = vld [vmem:[#allocation43_spill] sm:$0xff] }
 0x33f   : > { %11065 = vst [vmem:[#allocation23_spill] sm:$0xff] %v8924_v40  ;;  %6598 = vrot.lane.b32.xlu1 %v6597_v2, %s6918_s27  ;;  %v8947_v47 = vrot.slane %v2573_v30, %v7356_v22  ;;  %v8951_v31 = vsel %vm1874_vm6, %v11073_v39, %v6406_v33  ;;  %v1875_v6 = vsel %vm1874_vm6, %v11074_v25, %v6405_v23  ;;  %v11075_v43 = vld [vmem:[#allocation72_spill] sm:$0xff]  ;;  %v11077_v51 = vld [vmem:[#allocation74_spill] sm:$0xff] }
 0x340   : > { %11069 = vst [vmem:[#allocation26_spill] sm:$0xff] %v8935_v28  ;;  %11071 = vst [vmem:[#allocation66_spill] sm:$0xff] %v8944_v10  ;;  %v3379_v12 = vcombine.high %v11076_v36, %v11075_v43  ;;  %v8958_v2 = vrot.slane %v3818_v15, %v10989_v26  ;;  %v5143_v58 = vcombine.low %v11078_v7, %v11077_v51 }
 0x341   : > { %11072 = vst [vmem:[#allocation68_spill] sm:$0xff] %v8947_v47  ;;  %6608 = vrot.lane.b32.xlu0 %v6607_v54, %s6918_s27  ;;  %v6612_v30 = vpack.i.bf16 %v8787_v48, %v3358_v11  ;;  %v4684_v33 = vcombine.high %v8650_v42, %v10849_v20  ;;  %v8967_v39 = vrot.slane %v3819_v4, %v10989_v26 }
 0x342   : > { %v8970_v23 = vrot.slane %v4703_v62, %v10989_v26  ;;  %v8973_v25 = vrot.slane %v4704_v0, %v10989_v26  ;;  %v5144_v15 = vcombine.high %v11078_v7, %v11077_v51  ;;  %v5125_v48 = vcombine.high %v8944_v10, %v10849_v20  ;;  %v8995_v7 = vpop.permute.xlu1 %6473 }
 0x343   : > { %6613 = vrot.lane.b32.xlu1 %v6612_v30, %s6917_s26  ;;  %v3799_v42 = vcombine.high %v8670_v53, %v10849_v20  ;;  %v2165_v11 = vcombine.high %v8924_v40, %v10849_v20  ;;  %v2167_v4 = vcombine.high %v8935_v28, %v10849_v20  ;;  %v8987_v0 = vrot.slane %v2589_v27, %v7356_v22  ;;  %v9002_v28 = vpop.permute.xlu0 %6483 }
 0x344   : > { %v3378_v62 = vcombine.low %v11076_v36, %v11075_v43  ;;  %v8992_v54 = vrot.slane %v3379_v12, %v10989_v26  ;;  %v1877_v51 = vsel %vm1876_vm7, %v1875_v6, %v6400_v38  ;;  %11080 = vst [vmem:[#allocation70_spill] sm:$0xff] %v8995_v7  ;;  %v9000_v30 = vrot.slane %v5143_v58, %v10989_v26  ;;  %v11084_v12 = vld [vmem:[#allocation63_spill] sm:$0xff] }
 0x345   : > { %11079 = vst [vmem:[#allocation8_spill] sm:$0xff] %v8987_v0  ;;  %11081 = vst [vmem:[#allocation33_spill] sm:$0xff] %v9002_v28  ;;  %5344 = vrot.lane.b32.xlu0 %v5125_v48, %s6917_s26  ;;  %v6617_v27 = vpack.i.bf16 %v4684_v33, %v3799_v42  ;;  %v3361_v43 = vcombine.high %v8639_v34, %v10849_v20  ;;  %v9010_v6 = vrot.slane %v5144_v15, %v10989_v26  ;;  %v11082_v48 = vld [vmem:[#allocation82_spill] sm:$0xff] }
 0x346   : > { %v2166_v38 = vcombine.high %v8703_v57, %v10849_v20  ;;  %v2168_v36 = vcombine.high %v8706_v3, %v10849_v20  ;;  %v6410_v34 = vunpack.i.l.bf16 %v11082_v48  ;;  %v6632_v42 = vpack.i.bf16 %v2167_v4, %v2165_v11  ;;  %v11083_v33 = vld [vmem:[#allocation86_spill] sm:$0xff]  ;;  %v9043_v58 = vpop.permute.xlu1 %6478 }
 0x347   : > { %6618 = vrot.lane.b32.xlu1 %v6617_v27, %s6918_s27  ;;  %v9025_v53 = vrot.slane %v3378_v62, %v10989_v26  ;;  %v3411_v57 = vcombine.high %v8873_v63, %v8992_v54  ;;  %v6441_v3 = vunpack.i.h.bf16 %v8730_v19  ;;  %v2185_v10 = vcombine.low %v11084_v12, %v11083_v33  ;;  %v6499_v11 = vpop.permute.xlu0 %6498  ;;  %11085 = vst [vmem:[#allocation5_spill] sm:$0xff] %v9043_v58 }
 0x348   : > { %v6622_v4 = vpack.i.bf16 %v8790_v45, %v3361_v43  ;;  %v3359_v62 = vcombine.high %v8686_v50, %v10849_v20  ;;  %v2186_v15 = vcombine.high %v11084_v12, %v11083_v33  ;;  %v6440_v40 = vunpack.i.l.bf16 %v8730_v19  ;;  %v11086_v43 = vld [vmem:[#allocation88_spill] sm:$0xff] }
 0x349   : > { %6633 = vrot.lane.b32.xlu0 %v6632_v42, %s6917_s26  ;;  %v6637_v55 = vpack.i.bf16 %v2168_v36, %v2166_v38  ;;  %v9047_v42 = vsel %vm1878_vm8, %v1877_v51, %v6410_v34  ;;  %v2605_v50 = vcombine.high %v8947_v47, %v10849_v20  ;;  %v2607_v45 = vcombine.high %v8987_v0, %v10849_v20  ;;  %v11087_v33 = vld [vmem:[#allocation24_spill] sm:$0xff] }
 0x34a   : > { %v6431_v12 = vunpack.i.h.bf16 %v11086_v43  ;;  %v3222_v19 = vsel %vm1874_vm6, %v11087_v33, %v6441_v3  ;;  %v6501_v27 = vunpack.i.h.bf16 %v6499_v11  ;;  %v6500_v38 = vunpack.i.l.bf16 %v6499_v11  ;;  %v11090_v3 = vld [vmem:[#allocation16_spill] sm:$0xff]  ;;  %v6489_v33 = vpop.permute.xlu1 %6488 }
 0x34b   : > { %6623 = vrot.lane.b32.xlu1 %v6622_v4, %s6918_s27  ;;  %v6430_v36 = vunpack.i.l.bf16 %v11086_v43  ;;  %v9059_v51 = vrot.slane %v2185_v10, %v10989_v26  ;;  %v6627_v34 = vpack.i.bf16 %v8793_v49, %v3359_v62  ;;  %v11088_v4 = vcombine.low %v8726_v29, %v8719_v5 }
 0x34c   : > { %v9070_v0 = vrot.slane %v2186_v15, %v10989_v26  ;;  %v3225_v11 = vsel %vm1874_vm6, %v11090_v3, %v6440_v40  ;;  %v6446_v43 = vunpack.i.h.bf16 %v8818_v16  ;;  %v6445_v10 = vunpack.i.l.bf16 %v8818_v16  ;;  %v11091_v15 = vld [vmem:[#allocation44_spill] sm:$0xff] }
 0x34d   : > { %6638 = vrot.lane.b32.xlu0 %v6637_v55, %s6918_s27  ;;  %v9067_v9 = vrot.slane %v11088_v4, %v7356_v22  ;;  %v6504_v55 = vpop.permute.xlu0 %6503  ;;  %v3223_v49 = vsel %vm1876_vm7, %v3222_v19, %v6431_v12  ;;  %v6642_v62 = vpack.i.bf16 %v2607_v45, %v2605_v50  ;;  %v2606_v29 = vcombine.high %v8753_v32, %v10849_v20  ;;  %v11092_v4 = vld [vmem:[#allocation29_spill] sm:$0xff]  ;;  %v11094_v45 = vld [vmem:[#allocation64_spill] sm:$0xff] }
 0x34e   : > { %v2608_v5 = vcombine.high %v8756_v59, %v10849_v20  ;;  %v2336_v40 = vsel %vm1874_vm6, %v11091_v15, %v6501_v27  ;;  %v2333_v3 = vsel %vm1874_vm6, %v11092_v4, %v6500_v38  ;;  %v6506_v16 = vunpack.i.h.bf16 %v6504_v55  ;;  %v11093_v50 = vld [vmem:[#allocation89_spill] sm:$0xff]  ;;  %v6494_v15 = vpop.permute.xlu1 %6493 }
 0x34f   : > { %11089 = vst [vmem:[#allocation4_spill] sm:$0xff] %v9067_v9  ;;  %6628 = vrot.lane.b32.xlu1 %v6627_v34, %s6918_s27  ;;  %v6505_v47 = vunpack.i.l.bf16 %v6504_v55  ;;  %v3226_v28 = vsel %vm1876_vm7, %v3225_v11, %v6430_v36  ;;  %v6491_v12 = vunpack.i.h.bf16 %v6489_v33  ;;  %v6490_v19 = vunpack.i.l.bf16 %v6489_v33 }
 0x350   : > { %v5123_v32 = vcombine.high %v9067_v9, %v10849_v20  ;;  %v2625_v59 = vcombine.low %v11094_v45, %v11093_v50  ;;  %v3224_v34 = vsel %vm1878_vm8, %v3223_v49, %v6446_v43  ;;  %v3227_v27 = vsel %vm1878_vm8, %v3226_v28, %v6445_v10 }
 0x351   : > { %6643 = vrot.lane.b32.xlu0 %v6642_v62, %s6917_s26  ;;  %v9095_v38 = vrot.slane %v3411_v57, %v7356_v22  ;;  %v2202_v36 = vcombine.high %v8887_v8, %v9059_v51  ;;  %v2334_v11 = vsel %vm1876_vm7, %v2333_v3, %v6490_v19  ;;  %v2337_v33 = vsel %vm1876_vm7, %v2336_v40, %v6491_v12  ;;  %v6509_v55 = vpop.permute.xlu0 %6508  ;;  %v11095_v3 = vld [vmem:[#allocation40_spill] sm:$0xff] }
 0x352   : > { %v6647_v62 = vpack.i.bf16 %v2608_v5, %v2606_v29  ;;  %v2335_v4 = vsel %vm1878_vm8, %v2334_v11, %v6505_v47  ;;  %v2338_v43 = vsel %vm1878_vm8, %v2337_v33, %v6506_v16  ;;  %v6511_v28 = vunpack.i.h.bf16 %v6509_v55  ;;  %v11096_v5 = vld [vmem:[#allocation18_spill] sm:$0xff] }
 0x353   : > { %5332 = vrot.lane.b32.xlu1 %v5123_v32, %s6917_s26  ;;  %v6510_v10 = vunpack.i.l.bf16 %v6509_v55  ;;  %v2218_v57 = vcombine.high %v8895_v24, %v9070_v0  ;;  %v5483_v49 = vrot.slane %v3224_v34, 4  ;;  %v5484_v9 = vrot.slane %v3227_v27, 4 }
 0x354   : > { %v5126_v40 = vcombine.high %v8779_v41, %v10849_v20  ;;  %v2776_v29 = vsel %vm1874_vm6, %v11095_v3, %v6511_v28  ;;  %v6662_v16 = vpack.i.bf16 %v9095_v38, %v8808_v56  ;;  %v5124_v12 = vcombine.high %v8830_v60, %v10849_v20 }
 0x355   : > { %6648 = vrot.lane.b32.xlu0 %v6647_v62, %s6918_s27  ;;  %v2773_v47 = vsel %vm1874_vm6, %v11096_v5, %v6510_v10  ;;  %v6496_v19 = vunpack.i.h.bf16 %v6494_v15  ;;  %v6495_v32 = vunpack.i.l.bf16 %v6494_v15  ;;  %v5459_v34 = vrot.slane %v2335_v4, 4  ;;  %v6514_v11 = vpop.permute.xlu0 %6513 }
 0x356   : > { %v5460_v27 = vrot.slane %v2338_v43, 4  ;;  %v6516_v41 = vunpack.i.h.bf16 %v6514_v11  ;;  %v6515_v33 = vunpack.i.l.bf16 %v6514_v11  ;;  %v11097_v55 = vcombine.high %v8879_v17, %v9010_v6 }
 0x357   : > { %5352 = vrot.lane.b32.xlu1 %v5126_v40, %s6918_s27  ;;  %v2774_v28 = vsel %vm1876_vm7, %v2773_v47, %v6495_v32  ;;  %v11098_v60 = vunpack.i.h.bf16 %v11061_v37  ;;  %v2777_v4 = vsel %vm1876_vm7, %v2776_v29, %v6496_v19  ;;  %v11099_v43 = vcombine.high %v8862_v14, %v8973_v25 }
 0x358   : > { %v9122_v62 = vrot.slane %v11097_v55, %v7356_v22  ;;  %v2775_v40 = vsel %vm1878_vm8, %v2774_v28, %v6515_v33  ;;  %v11100_v3 = vunpack.i.h.bf16 %v11082_v48  ;;  %v2778_v47 = vsel %vm1878_vm8, %v2777_v4, %v6516_v41  ;;  %v11109_v4 = vld [vmem:[#allocation17_spill] sm:$0xff] }
 0x359   : > { %6663 = vrot.lane.b32.xlu0 %v6662_v16, %s6916_s25  ;;  %v1881_v15 = vsel %vm1876_vm7, %v8951_v31, %v11098_v60  ;;  %v9135_v10 = vrot.slane %v11099_v43, %v7356_v22  ;;  %v11101_v37 = vcombine.high %v8854_v52, %v8967_v39  ;;  %v5557_v16 = vsel %vm5547_vm9, %v2778_v47, %v5484_v9  ;;  %v11110_v43 = vld [vmem:[#allocation39_spill] sm:$0xff] }
 0x35a   : > { %v1882_v5 = vsel %vm1878_vm8, %v1881_v15, %v11100_v3  ;;  %v5548_v19 = vsel %vm5547_vm9, %v9047_v42, %v5459_v34  ;;  %v5556_v48 = vsel %vm5547_vm9, %v2775_v40, %v5483_v49  ;;  %v3850_v32 = vcombine.low %v8854_v52, %v8967_v39 }
 0x35b   : > { %v9146_v31 = vrot.slane %v11101_v37, %v7356_v22  ;;  %5340 = vrot.lane.b32.xlu1 %v5124_v12, %s6918_s27  ;;  %v5549_v29 = vsel %vm5547_vm9, %v1882_v5, %v5460_v27  ;;  %v6332_v41 = vpack.c.bf16 %v5556_v48, %v5548_v19  ;;  %v3395_v33 = vcombine.high %v8870_v61, %v9025_v53  ;;  %v11114_v37 = vld [vmem:[#allocation45_spill] sm:$0xff] }
 0x35c   : > { %v6330_v11 = vpack.c.bf16 %v5557_v16, %v5549_v29  ;;  %v9159_v55 = vrot.slane %v2625_v59, %v10989_v26  ;;  %v11102_v42 = vcombine.high %v8857_v18, %v8970_v23  ;;  %v11103_v52 = vcombine.low %v11060_v46, %v11059_v1  ;;  %v11117_v29 = vld [vmem:[#allocation32_spill] sm:$0xff] }
 0x35d   : > { %5372 = vrot.lane.b32.xlu0 %v9122_v62, %s6916_s25  ;;  %v6652_v9 = vpack.i.bf16 %v9135_v10, %v9146_v31  ;;  %v4719_v59 = vcombine.low %v8857_v18, %v8970_v23  ;;  %v11104_v12 = vcombine.low %v8862_v14, %v8973_v25  ;;  %v11106_v27 = vcombine.high %v8876_v13, %v9000_v30  ;;  %v11118_v16 = vld [vmem:[#allocation48_spill] sm:$0xff] }
 0x35e   : > { %v9169_v49 = vrot.slane %v11102_v42, %v7356_v22  ;;  %v9175_v39 = vrot.slane %v11103_v52, %v10989_v26  ;;  %6331 = vmatprep.subr.bf16.mxu0 %v6330_v11  ;;  %v11107_v18 = vcombine.high %v8851_v21, %v8958_v2  ;;  %v9199_v14 = vrot.slane %v2202_v36, %v7356_v22 }
 0x35f   : > { %v9183_v34 = vrot.slane %v11104_v12, %v7356_v22  ;;  %v9189_v28 = vrot.slane %v11106_v27, %v7356_v22  ;;  %6653 = vrot.lane.b32.xlu1 %v6652_v9, %s6916_s25  ;;  %6333 = vmatpush1.bf16.msra.mxu0 %v6332_v41  ;;  %v9202_v25 = vrot.slane %v2218_v57, %v7356_v22 }
 0x360   : > { %v9196_v23 = vrot.slane %v11107_v18, %v7356_v22  ;;  %v3834_v60 = vcombine.low %v8851_v21, %v8958_v2  ;;  %v9207_v15 = vrot.slane %v3850_v32, %v7356_v22  ;;  %v11111_v40 = vcombine.low %v11109_v4, %v11110_v43 }
 0x361   : > { %11105 = vst [vmem:[#allocation72_spill] sm:$0xff] %v9183_v34  ;;  %v3394_v5 = vcombine.low %v8870_v61, %v9025_v53  ;;  %v2642_v36 = vcombine.high %v9175_v39, %v9159_v55  ;;  %5360 = vrot.lane.b32.xlu0 %v9189_v28, %s6916_s25  ;;  %v3409_v2 = vrot.slane %v3395_v33, %v7356_v22 }
 0x362   : > { %11108 = vst [vmem:[#allocation38_spill] sm:$0xff] %v9207_v15  ;;  %v9213_v3 = vrot.slane %v11111_v40, %v7356_v22  ;;  %v6657_v21 = vpack.i.bf16 %v9169_v49, %v9196_v23  ;;  %v11113_v57 = vcombine.high %v11109_v4, %v11110_v43  ;;  %v11115_v61 = vcombine.low %v11046_v44, %v11114_v37 }
 0x363   : > { %v11119_v19 = vcombine.low %v11117_v29, %v11118_v16  ;;  %v9241_v32 = vrot.slane %v4719_v59, %v7356_v22  ;;  %v3410_v11 = vcombine.low %v8873_v63, %v8992_v54  ;;  %v6672_v41 = vpack.i.bf16 %v9202_v25, %v9199_v14  ;;  %v11124_v63 = vld [vmem:[#allocation53_spill] sm:$0xff]  ;;  %v11125_v54 = vld [vmem:[#allocation58_spill] sm:$0xff] }
 0x364   : > { %11112 = vst [vmem:[#allocation74_spill] sm:$0xff] %v9213_v3  ;;  %v4294_v47 = vrot.slane %v11113_v57, %v7356_v22  ;;  %v9232_v53 = vrot.slane %v11115_v61, %v7356_v22  ;;  %6658 = vrot.lane.b32.xlu1 %v6657_v21, %s6916_s25  ;;  %v4753_v44 = vcombine.high %v9183_v34, %v10849_v20  ;;  %v11128_v21 = vld [vmem:[#allocation31_spill] sm:$0xff]  ;;  %v11166_v34 = vld [vmem:[#allocation20_spill] sm:$0xff] }
 0x365   : > { %v9238_v48 = vrot.slane %v11119_v19, %v7356_v22  ;;  %11121 = vst [vmem:[#allocation86_spill] sm:$0xff] %v9241_v32  ;;  %v9251_v33 = vrot.slane %v3834_v60, %v7356_v22  ;;  %v11123_v9 = vcombine.high %v11117_v29, %v11118_v16  ;;  %v4311_v52 = vcombine.high %v9213_v3, %v10849_v20  ;;  %v11131_v61 = vld [vmem:[#allocation51_spill] sm:$0xff]  ;;  %v11132_v29 = vld [vmem:[#allocation57_spill] sm:$0xff]  ;;  %v11147_v3 = vld [vmem:[#allocation60_spill] sm:$0xff] }
 0x366   : > { %11116 = vst [vmem:[#allocation43_spill] sm:$0xff] %v9232_v53  ;;  %v11126_v59 = vcombine.high %v11124_v63, %v11125_v54  ;;  %v9266_v27 = vrot.slane %v3394_v5, %v7356_v22  ;;  %6673 = vrot.lane.b32.xlu0 %v6672_v41, %s6916_s25  ;;  %v6667_v18 = vpack.i.bf16 %v4294_v47, %v3409_v2  ;;  %v11129_v5 = vld [vmem:[#allocation47_spill] sm:$0xff] }
 0x367   : > { %11120 = vst [vmem:[#allocation82_spill] sm:$0xff] %v9238_v48  ;;  %11122 = vst [vmem:[#allocation63_spill] sm:$0xff] %v9251_v33  ;;  %v4378_v42 = vrot.slane %v11123_v9, %v7356_v22  ;;  %v3868_v60 = vcombine.high %v9207_v15, %v10849_v20  ;;  %v9272_v4 = vrot.slane %v2642_v36, %v7356_v22 }
 0x368   : > { %v9263_v12 = vrot.slane %v11126_v59, %v7356_v22  ;;  %11127 = vst [vmem:[#allocation88_spill] sm:$0xff] %v9266_v27  ;;  %v3056_v43 = vcombine.high %v9232_v53, %v10849_v20  ;;  %v9278_v40 = vcombine.high %v9238_v48, %v10849_v20  ;;  %v11130_v57 = vcombine.high %v11128_v21, %v11129_v5  ;;  %v11146_v53 = vld [vmem:[#allocation56_spill] sm:$0xff] }
 0x369   : > { %v11133_v16 = vcombine.low %v11131_v61, %v11132_v29  ;;  %v9293_v36 = vrot.slane %v3410_v11, %v7356_v22  ;;  %6668 = vrot.lane.b32.xlu1 %v6667_v18, %s6916_s25  ;;  %v6682_v41 = vpack.i.bf16 %v4753_v44, %v3868_v60  ;;  %v4751_v9 = vcombine.high %v9241_v32, %v10849_v20 }
 0x36a   : > { %v9284_v37 = vrot.slane %v11130_v57, %v7356_v22  ;;  %v11136_v59 = vcombine.low %v11124_v63, %v11125_v54  ;;  %v4312_v48 = vcombine.high %v4294_v47, %v10849_v20  ;;  %v9310_v11 = vcombine.high %v4378_v42, %v10849_v20 }
 0x36b   : > { %v9290_v19 = vrot.slane %v11133_v16, %v7356_v22  ;;  %11135 = vst [vmem:[#allocation16_spill] sm:$0xff] %v9293_v36  ;;  %v9307_v16 = vcombine.high %v8808_v56, %v10849_v20  ;;  %v11138_v44 = vcombine.low %v11128_v21, %v11129_v5  ;;  %6683 = vrot.lane.b32.xlu0 %v6682_v41, %s6917_s26  ;;  %v11143_v41 = vld [vmem:[#allocation61_spill] sm:$0xff] }
 0x36c   : > { %v9302_v57 = vrot.slane %v11136_v59, %v7356_v22  ;;  %v6677_v63 = vpack.i.bf16 %v9272_v4, %v4378_v42  ;;  %v3866_v47 = vcombine.high %v9251_v33, %v10849_v20  ;;  %v3426_v56 = vcombine.high %v9266_v27, %v10849_v20  ;;  %v11142_v42 = vld [vmem:[#allocation59_spill] sm:$0xff] }
 0x36d   : > { %11134 = vst [vmem:[#allocation24_spill] sm:$0xff] %v9290_v19  ;;  %v9316_v18 = vrot.slane %v11138_v44, %v7356_v22  ;;  %v9326_v54 = vcombine.high %v9263_v12, %v10849_v20  ;;  %v11140_v60 = vcombine.high %v11131_v61, %v11132_v29  ;;  %v9336_v5 = vcombine.high %v9284_v37, %v10849_v20 }
 0x36e   : > { %11137 = vst [vmem:[#allocation44_spill] sm:$0xff] %v9302_v57  ;;  %v11144_v59 = vcombine.low %v11142_v42, %v11143_v41  ;;  %v11148_v27 = vcombine.low %v11146_v53, %v11147_v3  ;;  %6678 = vrot.lane.b32.xlu1 %v6677_v63, %s6916_s25  ;;  %v6687_v61 = vpack.i.bf16 %v4751_v9, %v3866_v47 }
 0x36f   : > { %11139 = vst [vmem:[#allocation29_spill] sm:$0xff] %v9316_v18  ;;  %v9332_v21 = vrot.slane %v11140_v60, %v7356_v22  ;;  %11141 = vst [vmem:[#allocation89_spill] sm:$0xff] %v9336_v5  ;;  %v3428_v29 = vcombine.high %v9293_v36, %v10849_v20  ;;  %v9355_v60 = vcombine.high %v9290_v19, %v10849_v20  ;;  %v11155_v36 = vld [vmem:[#allocation10_spill] sm:$0xff] }
 0x370   : > { %v9342_v44 = vrot.slane %v11144_v59, %v7356_v22  ;;  %v9348_v33 = vrot.slane %v11148_v27, %v7356_v22  ;;  %v9359_v59 = vcombine.high %v9302_v57, %v10849_v20  ;;  %v2610_v32 = vcombine.high %v11060_v46, %v11059_v1  ;;  %v11154_v57 = vld [vmem:[#allocation65_spill] sm:$0xff]  ;;  %6688 = vrot.lane.b32.xlu0 %v6687_v61, %s6917_s26 }
 0x371   : > { %v9365_v27 = vcombine.high %v9316_v18, %v10849_v20  ;;  %v11150_v9 = vcombine.high %v11142_v42, %v11143_v41  ;;  %v11152_v47 = vcombine.high %v11146_v53, %v11147_v3  ;;  %v3870_v15 = vcombine.low %v11155_v36, %v11154_v57  ;;  %v11160_v61 = vld [vmem:[#allocation69_spill] sm:$0xff] }
 0x372   : > { %11145 = vst [vmem:[#allocation64_spill] sm:$0xff] %v9342_v44  ;;  %11149 = vst [vmem:[#allocation40_spill] sm:$0xff] %v9348_v33  ;;  %v5159_v1 = vcombine.low %v8876_v13, %v9000_v30  ;;  %v6702_v46 = vpack.i.bf16 %v4311_v52, %v3426_v56  ;;  %v3427_v18 = vcombine.high %v3409_v2, %v10849_v20  ;;  %v11158_v13 = vld [vmem:[#allocation67_spill] sm:$0xff] }
 0x373   : > { %v9371_v63 = vrot.slane %v11150_v9, %v7356_v22  ;;  %v9377_v19 = vrot.slane %v11152_v47, %v7356_v22  ;;  %v3871_v42 = vcombine.high %v11155_v36, %v11154_v57  ;;  %v9389_v41 = vcombine.high %v9332_v21, %v10849_v20  ;;  %v11159_v30 = vld [vmem:[#allocation19_spill] sm:$0xff] }
 0x374   : > { %v9393_v3 = vcombine.high %v9342_v44, %v10849_v20  ;;  %v9397_v53 = vcombine.high %v9348_v33, %v10849_v20  ;;  %v4755_v52 = vcombine.low %v11159_v30, %v11158_v13  ;;  %v4756_v2 = vcombine.high %v11159_v30, %v11158_v13  ;;  %6703 = vrot.lane.b32.xlu1 %v6702_v46, %s6917_s26  ;;  %v11161_v9 = vld [vmem:[#allocation11_spill] sm:$0xff] }
 0x375   : > { %11151 = vst [vmem:[#allocation18_spill] sm:$0xff] %v9371_v63  ;;  %11153 = vst [vmem:[#allocation17_spill] sm:$0xff] %v9377_v19  ;;  %v6692_v36 = vpack.i.bf16 %v3428_v29, %v3056_v43  ;;  %v4754_v57 = vcombine.high %v9135_v10, %v10849_v20  ;;  %v9407_v56 = vrot.slane %v2610_v32, %v10989_v26  ;;  %v11165_v30 = vld [vmem:[#allocation71_spill] sm:$0xff] }
 0x376   : > { %11156 = vst [vmem:[#allocation39_spill] sm:$0xff] %v9393_v3  ;;  %11157 = vst [vmem:[#allocation45_spill] sm:$0xff] %v9397_v53  ;;  %v3430_v47 = vcombine.low %v11161_v9, %v11160_v61  ;;  %v9413_v33 = vcombine.high %v9371_v63, %v10849_v20  ;;  %v9417_v44 = vcombine.high %v9377_v19, %v10849_v20  ;;  %v11209_v3 = vld [vmem:[#allocation46_spill] sm:$0xff] }
 0x377   : > { %v9420_v46 = vrot.slane %v3870_v15, %v10989_v26  ;;  %6693 = vrot.lane.b32.xlu0 %v6692_v36, %s6917_s26  ;;  %v6717_v10 = vpack.i.bf16 %v4312_v48, %v3427_v18  ;;  %v3869_v32 = vcombine.high %v9146_v31, %v10849_v20  ;;  %v9426_v43 = vrot.slane %v5159_v1, %v7356_v22  ;;  %v11167_v36 = vld [vmem:[#allocation73_spill] sm:$0xff] }
 0x378   : > { %11162 = vst [vmem:[#allocation32_spill] sm:$0xff] %v9413_v33  ;;  %11163 = vst [vmem:[#allocation48_spill] sm:$0xff] %v9417_v44  ;;  %v9429_v29 = vrot.slane %v3871_v42, %v10989_v26  ;;  %v3431_v13 = vcombine.high %v11161_v9, %v11160_v61  ;;  %v5195_v44 = vcombine.low %v11166_v34, %v11165_v30  ;;  %v11168_v61 = vld [vmem:[#allocation9_spill] sm:$0xff] }
 0x379   : > { %11164 = vst [vmem:[#allocation53_spill] sm:$0xff] %v9426_v43  ;;  %v5196_v15 = vcombine.high %v11166_v34, %v11165_v30  ;;  %v9438_v48 = vrot.slane %v4755_v52, %v10989_v26  ;;  %v9441_v31 = vrot.slane %v4756_v2, %v10989_v26  ;;  %6718 = vrot.lane.b32.xlu1 %v6717_v10, %s6918_s27  ;;  %v11169_v52 = vld [vmem:[#allocation75_spill] sm:$0xff] }
 0x37a   : > { %v6697_v18 = vpack.i.bf16 %v4754_v57, %v3869_v32  ;;  %v4752_v1 = vcombine.high %v9169_v49, %v10849_v20  ;;  %v9447_v42 = vrot.slane %v3430_v47, %v10989_v26  ;;  %v3938_v9 = vcombine.low %v11168_v61, %v11167_v36  ;;  %v11170_v30 = vld [vmem:[#allocation35_spill] sm:$0xff] }
 0x37b   : > { %v3939_v34 = vcombine.high %v11168_v61, %v11167_v36  ;;  %v4823_v33 = vcombine.low %v11170_v30, %v11169_v52  ;;  %v2201_v2 = vcombine.low %v8887_v8, %v9059_v51  ;;  %v2217_v57 = vcombine.low %v8895_v24, %v9070_v0  ;;  %v11171_v0 = vld [vmem:[#allocation80_spill] sm:$0xff]  ;;  %v11172_v51 = vld [vmem:[#allocation15_spill] sm:$0xff]  ;;  %v11173_v61 = vld [vmem:[#allocation77_spill] sm:$0xff] }
 0x37c   : > { %6698 = vrot.lane.b32.xlu0 %v6697_v18, %s6918_s27  ;;  %v5191_v49 = vcombine.high %v9426_v43, %v10849_v20  ;;  %v3867_v47 = vcombine.high %v9196_v23, %v10849_v20  ;;  %v9465_v10 = vrot.slane %v3431_v13, %v10989_v26  ;;  %v9468_v32 = vrot.slane %v5195_v44, %v10989_v26  ;;  %v11175_v43 = vld [vmem:[#allocation78_spill] sm:$0xff] }
 0x37d   : > { %v9471_v36 = vrot.slane %v5196_v15, %v10989_v26  ;;  %v4824_v8 = vcombine.high %v11170_v30, %v11169_v52  ;;  %v5175_v24 = vcombine.low %v8879_v17, %v9010_v6  ;;  %v4771_v18 = vcombine.low %v11172_v51, %v11171_v0  ;;  %v11174_v52 = vld [vmem:[#allocation42_spill] sm:$0xff] }
 0x37e   : > { %5356 = vrot.lane.b32.xlu1 %v5191_v49, %s6917_s26  ;;  %v6707_v23 = vpack.i.bf16 %v4752_v1, %v3867_v47  ;;  %v3429_v13 = vcombine.high %v9095_v38, %v10849_v20  ;;  %v9483_v44 = vrot.slane %v3938_v9, %v10989_v26  ;;  %v9486_v15 = vrot.slane %v3939_v34, %v10989_v26  ;;  %v11176_v17 = vld [vmem:[#allocation50_spill] sm:$0xff]  ;;  %v11179_v49 = vld [vmem:[#allocation76_spill] sm:$0xff] }
 0x37f   : > { %v3498_v30 = vcombine.low %v11174_v52, %v11173_v61  ;;  %v3886_v6 = vcombine.low %v11176_v17, %v11175_v43  ;;  %v9493_v53 = vrot.slane %v4823_v33, %v10989_v26  ;;  %v9496_v1 = vrot.slane %v2201_v2, %v7356_v22 }
 0x380   : > { %v9499_v38 = vrot.slane %v2217_v57, %v7356_v22  ;;  %6708 = vrot.lane.b32.xlu0 %v6707_v23, %s6918_s27  ;;  %v5194_v9 = vcombine.high %v9122_v62, %v10849_v20  ;;  %v9505_v34 = vrot.slane %v4824_v8, %v10989_v26  ;;  %v3887_v33 = vcombine.high %v11176_v17, %v11175_v43  ;;  %v11182_v17 = vld [vmem:[#allocation25_spill] sm:$0xff] }
 0x381   : > { %11177 = vst [vmem:[#allocation58_spill] sm:$0xff] %v9496_v1  ;;  %v9512_v2 = vrot.slane %v4771_v18, %v10989_v26  ;;  %v2626_v57 = vcombine.high %v11094_v45, %v11093_v50  ;;  %v6712_v62 = vpack.i.bf16 %v3429_v13, %v9307_v16  ;;  %v9519_v8 = vrot.slane %v5175_v24, %v7356_v22  ;;  %v11181_v18 = vld [vmem:[#allocation81_spill] sm:$0xff] }
 0x382   : > { %11178 = vst [vmem:[#allocation31_spill] sm:$0xff] %v9499_v38  ;;  %5376 = vrot.lane.b32.xlu1 %v5194_v9, %s6918_s27  ;;  %v3499_v23 = vcombine.high %v11174_v52, %v11173_v61  ;;  %v9524_v47 = vrot.slane %v3498_v30, %v10989_v26  ;;  %v3894_v43 = vrot.slane %v3886_v6, %v10989_v26  ;;  %v11183_v61 = vld [vmem:[#allocation79_spill] sm:$0xff]  ;;  %v11184_v52 = vld [vmem:[#allocation49_spill] sm:$0xff] }
 0x383   : > { %11180 = vst [vmem:[#allocation47_spill] sm:$0xff] %v9519_v8  ;;  %v3447_v19 = vcombine.high %v11182_v17, %v11181_v18  ;;  %v2641_v50 = vcombine.low %v9175_v39, %v9159_v55  ;;  %v5192_v45 = vcombine.high %v9189_v28, %v10849_v20  ;;  %v2233_v16 = vcombine.high %v9496_v1, %v10849_v20 }
 0x384   : > { %6713 = vrot.lane.b32.xlu0 %v6712_v62, %s6918_s27  ;;  %v2235_v24 = vcombine.high %v9499_v38, %v10849_v20  ;;  %v3901_v13 = vrot.slane %v3887_v33, %v10989_v26  ;;  %v5263_v30 = vcombine.low %v11184_v52, %v11183_v61  ;;  %v4772_v6 = vcombine.high %v11172_v51, %v11171_v0 }
 0x385   : > { %v3446_v55 = vcombine.low %v11182_v17, %v11181_v18  ;;  %v4788_v39 = vcombine.high %v9438_v48, %v9512_v2  ;;  %v9548_v28 = vrot.slane %v2626_v57, %v10989_v26  ;;  %v5193_v9 = vcombine.high %v9519_v8, %v10849_v20 }
 0x386   : > { %5364 = vrot.lane.b32.xlu1 %v5192_v45, %s6918_s27  ;;  %v2674_v33 = vcombine.high %v9272_v4, %v10849_v20  ;;  %v3902_v62 = vcombine.low %v9420_v46, %v3894_v43  ;;  %v3903_v0 = vcombine.high %v9420_v46, %v3894_v43  ;;  %v5264_v51 = vcombine.high %v11184_v52, %v11183_v61 }
 0x387   : > { %v3461_v18 = vrot.slane %v3447_v19, %v10989_v26  ;;  %v9561_v57 = vrot.slane %v2641_v50, %v7356_v22  ;;  %v6722_v17 = vpack.i.bf16 %v2235_v24, %v2233_v16  ;;  %v2234_v45 = vcombine.high %v9199_v14, %v10849_v20 }
 0x388   : > { %5368 = vrot.lane.b32.xlu0 %v5193_v9, %s6917_s26  ;;  %v2236_v4 = vcombine.high %v9202_v25, %v10849_v20  ;;  %v9569_v1 = vrot.slane %v3499_v23, %v10989_v26  ;;  %v3918_v46 = vcombine.low %v9429_v29, %v3901_v13  ;;  %v4786_v43 = vrot.slane %v4772_v6, %v10989_v26 }
 0x389   : > { %11185 = vst [vmem:[#allocation51_spill] sm:$0xff] %v9561_v57  ;;  %v3454_v19 = vrot.slane %v3446_v55, %v10989_v26  ;;  %v3919_v50 = vcombine.high %v9429_v29, %v3901_v13  ;;  %v2658_v16 = vcombine.high %v9407_v56, %v9548_v28  ;;  %v6737_v14 = vpack.i.bf16 %v2674_v33, %v9310_v11  ;;  %v11188_v29 = vld [vmem:[#allocation83_spill] sm:$0xff]  ;;  %v11189_v13 = vld [vmem:[#allocation52_spill] sm:$0xff] }
 0x38a   : > { %6723 = vrot.lane.b32.xlu1 %v6722_v17, %s6917_s26  ;;  %v9580_v25 = vrot.slane %v4788_v39, %v7356_v22  ;;  %v9583_v23 = vrot.slane %v3902_v62, %v7356_v22  ;;  %v9586_v24 = vrot.slane %v5263_v30, %v10989_v26  ;;  %v9589_v61 = vrot.slane %v5264_v51, %v10989_v26 }
 0x38b   : > { %v5211_v52 = vcombine.low %v11189_v13, %v11188_v29  ;;  %v3479_v6 = vcombine.high %v9465_v10, %v3461_v18  ;;  %v6727_v11 = vpack.i.bf16 %v2236_v4, %v2234_v45  ;;  %v9596_v55 = vrot.slane %v3903_v0, %v7356_v22  ;;  %v11192_v4 = vld [vmem:[#allocation97_spill] sm:$0xff] }
 0x38c   : > { %11186 = vst [vmem:[#allocation57_spill] sm:$0xff] %v9583_v23  ;;  %11187 = vst [vmem:[#allocation59_spill] sm:$0xff] %v9589_v61  ;;  %6738 = vrot.lane.b32.xlu0 %v6737_v14, %s6918_s27  ;;  %v2673_v39 = vcombine.high %v9561_v57, %v10849_v20  ;;  %v4787_v30 = vcombine.low %v9438_v48, %v9512_v2  ;;  %v4803_v9 = vcombine.low %v9441_v31, %v4786_v43 }
 0x38d   : > { %v3462_v33 = vcombine.low %v9447_v42, %v3454_v19  ;;  %v3463_v62 = vcombine.high %v9447_v42, %v3454_v19  ;;  %v3478_v51 = vcombine.low %v9465_v10, %v3461_v18  ;;  %v5212_v17 = vcombine.high %v11189_v13, %v11188_v29  ;;  %v11191_v10 = vld [vmem:[#allocation92_spill] sm:$0xff]  ;;  %v11193_v19 = vld [vmem:[#allocation13_spill] sm:$0xff] }
 0x38e   : > { %6728 = vrot.lane.b32.xlu1 %v6727_v11, %s6918_s27  ;;  %v6752_v0 = vpack.i.bf16 %v9580_v25, %v9596_v55  ;;  %v9612_v45 = vrot.slane %v2658_v16, %v7356_v22  ;;  %v9615_v48 = vrot.slane %v3918_v46, %v7356_v22  ;;  %v4804_v2 = vcombine.high %v9441_v31, %v4786_v43 }
 0x38f   : > { %v9619_v42 = vrot.slane %v5211_v52, %v10989_v26  ;;  %v6420_v18 = vunpack.i.l.bf16 %v11191_v10  ;;  %v3954_v14 = vcombine.low %v11193_v19, %v11192_v4  ;;  %v6732_v29 = vpack.i.bf16 %v2673_v39, %v9278_v40 }
 0x390   : > { %11190 = vst [vmem:[#allocation61_spill] sm:$0xff] %v9615_v48  ;;  %6753 = vrot.lane.b32.xlu0 %v6752_v0, %s6916_s25  ;;  %v9627_v16 = vrot.slane %v3479_v6, %v7356_v22  ;;  %v9630_v46 = vrot.slane %v3919_v50, %v7356_v22  ;;  %v9633_v31 = vrot.slane %v4787_v30, %v7356_v22  ;;  %v9649_v50 = vpop.permute.xlu0 %6518  ;;  %v9663_v0 = vpop.permute.xlu1 %6528 }
 0x391   : > { %v9636_v43 = vrot.slane %v4803_v9, %v7356_v22  ;;  %v9639_v13 = vrot.slane %v3462_v33, %v7356_v22  ;;  %v3955_v52 = vcombine.high %v11193_v19, %v11192_v4  ;;  %v9644_v40 = vrot.slane %v3478_v51, %v7356_v22  ;;  %11198 = vst [vmem:[#allocation67_spill] sm:$0xff] %v9649_v50  ;;  %v11199_v9 = vld [vmem:[#allocation93_spill] sm:$0xff] }
 0x392   : > { %11194 = vst [vmem:[#allocation56_spill] sm:$0xff] %v9633_v31  ;;  %v9647_v6 = vrot.slane %v5212_v17, %v10989_v26  ;;  %6733 = vrot.lane.b32.xlu1 %v6732_v29, %s6917_s26  ;;  %v6757_v11 = vpack.i.bf16 %v9627_v16, %v9612_v45  ;;  %v9655_v39 = vrot.slane %v3463_v62, %v7356_v22  ;;  %v6450_v33 = vunpack.i.l.bf16 %v11199_v9  ;;  %v11200_v4 = vld [vmem:[#allocation21_spill] sm:$0xff] }
 0x393   : > { %11195 = vst [vmem:[#allocation60_spill] sm:$0xff] %v9636_v43  ;;  %11196 = vst [vmem:[#allocation65_spill] sm:$0xff] %v9639_v13  ;;  %v2657_v51 = vcombine.low %v9407_v56, %v9548_v28  ;;  %v6421_v17 = vunpack.i.h.bf16 %v11191_v10  ;;  %v1883_v19 = vsel %vm1874_vm6, %v11200_v4, %v6420_v18  ;;  %v9668_v29 = vrot.slane %v3954_v14, %v10989_v26  ;;  %v11202_v28 = vld [vmem:[#allocation102_spill] sm:$0xff]  ;;  %v11203_v10 = vld [vmem:[#allocation28_spill] sm:$0xff] }
 0x394   : > { %11197 = vst [vmem:[#allocation10_spill] sm:$0xff] %v9644_v40  ;;  %6758 = vrot.lane.b32.xlu0 %v6757_v11, %s6916_s25  ;;  %v6742_v62 = vpack.i.bf16 %v9630_v46, %v9263_v12  ;;  %v9674_v30 = vrot.slane %v4804_v2, %v7356_v22  ;;  %v9677_v56 = vrot.slane %v3955_v52, %v10989_v26  ;;  %v11204_v4 = vld [vmem:[#allocation6_spill] sm:$0xff]  ;;  %v11205_v14 = vld [vmem:[#allocation41_spill] sm:$0xff]  ;;  %v9690_v9 = vpop.permute.xlu0 %6523 }
 0x395   : > { %11201 = vst [vmem:[#allocation19_spill] sm:$0xff] %v9668_v29  ;;  %v4839_v57 = vcombine.low %v11203_v10, %v11202_v28  ;;  %v4840_v18 = vcombine.high %v11203_v10, %v11202_v28  ;;  %v3514_v38 = vcombine.low %v11205_v14, %v11204_v4  ;;  %v5228_v11 = vcombine.high %v9468_v32, %v9619_v42  ;;  %v11206_v2 = vld [vmem:[#allocation94_spill] sm:$0xff] }
 0x396   : > { %v5244_v12 = vcombine.high %v9471_v36, %v9647_v6  ;;  %v6425_v8 = vunpack.i.l.bf16 %v11206_v2  ;;  %11207 = vst [vmem:[#allocation69_spill] sm:$0xff] %v9690_v9  ;;  %6743 = vrot.lane.b32.xlu1 %v6742_v62, %s6916_s25  ;;  %v6762_v52 = vpack.i.bf16 %v9284_v37, %v9655_v39  ;;  %v11208_v10 = vld [vmem:[#allocation34_spill] sm:$0xff]  ;;  %v9701_v50 = vsel %vm1874_vm6, %v11209_v3, %v6421_v17 }
 0x397   : > { %v1889_v63 = vsel %vm1874_vm6, %v11208_v10, %v6450_v33  ;;  %v3515_v5 = vcombine.high %v11205_v14, %v11204_v4  ;;  %v9706_v9 = vrot.slane %v2657_v51, %v7356_v22  ;;  %v3970_v62 = vcombine.low %v9483_v44, %v9668_v29  ;;  %v9714_v33 = vpop.permute.xlu1 %6533 }
 0x398   : > { %v11211_v37 = vunpack.i.l.bf16 %v11179_v49  ;;  %6763 = vrot.lane.b32.xlu0 %v6762_v52, %s6916_s25  ;;  %v6747_v3 = vpack.i.bf16 %v9332_v21, %v9674_v30  ;;  %v3986_v17 = vcombine.low %v9486_v15, %v9677_v56  ;;  %v9721_v51 = vrot.slane %v4839_v57, %v10989_v26  ;;  %v9733_v10 = vpop.permute.xlu0 %6548 }
 0x399   : > { %11210 = vst [vmem:[#allocation11_spill] sm:$0xff] %v9706_v9  ;;  %v9724_v4 = vrot.slane %v4840_v18, %v10989_v26  ;;  %v9727_v14 = vrot.slane %v3514_v38, %v10989_v26  ;;  %11213 = vst [vmem:[#allocation20_spill] sm:$0xff] %v9733_v10  ;;  %v9737_v21 = vrot.slane %v5244_v12, %v7356_v22  ;;  %v11216_v12 = vld [vmem:[#allocation96_spill] sm:$0xff] }
 0x39a   : > { %v1884_v28 = vsel %vm1876_vm7, %v1883_v19, %v11211_v37  ;;  %6748 = vrot.lane.b32.xlu1 %v6747_v3, %s6916_s25  ;;  %v4821_v57 = vcombine.high %v9636_v43, %v10849_v20  ;;  %v9746_v37 = vrot.slane %v3515_v5, %v10989_v26  ;;  %v9751_v3 = vrot.slane %v3970_v62, %v7356_v22 }
 0x39b   : > { %v9731_v52 = vsel %vm1878_vm8, %v1884_v28, %v6425_v8  ;;  %v11214_v8 = vld [vmem:[#allocation55_spill] sm:$0xff]  ;;  %v6435_v19 = vunpack.i.l.bf16 %v11216_v12  ;;  %v9756_v43 = vpop.permute.xlu1 %6538  ;;  %v9759_v18 = vrot.slane %v5228_v11, %v7356_v22  ;;  %v3936_v5 = vcombine.high %v9615_v48, %v10849_v20 }
 0x39c   : > { %11212 = vst [vmem:[#allocation71_spill] sm:$0xff] %v9731_v52  ;;  %v5279_v28 = vcombine.low %v11214_v8, %v8889_v35  ;;  %11215 = vst [vmem:[#allocation73_spill] sm:$0xff] %v9751_v3  ;;  %5396 = vrot.lane.b32.xlu0 %v9737_v21, %s6916_s25  ;;  %v9764_v38 = vrot.slane %v3986_v17, %v7356_v22  ;;  %v4855_v62 = vcombine.low %v9493_v53, %v9721_v51 }
 0x39d   : > { %11217 = vst [vmem:[#allocation9_spill] sm:$0xff] %v9756_v43  ;;  %v4871_v12 = vcombine.low %v9505_v34, %v9724_v4  ;;  %v3530_v52 = vcombine.low %v9524_v47, %v9727_v14  ;;  %v6481_v11 = vunpack.i.h.bf16 %v9043_v58  ;;  %v9775_v43 = vpop.permute.xlu0 %6553  ;;  %v6772_v17 = vpack.i.bf16 %v9355_v60, %v4821_v57 }
 0x39e   : > { %11218 = vst [vmem:[#allocation75_spill] sm:$0xff] %v9764_v38  ;;  %11219 = vst [vmem:[#allocation35_spill] sm:$0xff] %v9775_v43  ;;  %5384 = vrot.lane.b32.xlu1 %v9759_v18, %s6916_s25  ;;  %v4819_v48 = vcombine.high %v9633_v31, %v10849_v20  ;;  %v4872_v38 = vcombine.high %v9505_v34, %v9724_v4  ;;  %v3546_v2 = vcombine.low %v9569_v1, %v9746_v37 }
 0x39f   : > { %v5280_v10 = vcombine.high %v11214_v8, %v8889_v35  ;;  %v9789_v58 = vrot.slane %v5279_v28, %v10989_v26  ;;  %v9792_v43 = vsel %vm1876_vm7, %v1889_v63, %v6435_v19  ;;  %v9794_v29 = vpop.permute.xlu1 %6543  ;;  %v6767_v60 = vpack.i.bf16 %v3936_v5, %v9359_v59  ;;  %v11222_v8 = vld [vmem:[#allocation37_spill] sm:$0xff] }
 0x3a0   : > { %6773 = vrot.lane.b32.xlu0 %v6772_v17, %s6917_s26  ;;  %v3934_v34 = vcombine.high %v9583_v23, %v10849_v20  ;;  %v3937_v4 = vcombine.high %v9630_v46, %v10849_v20  ;;  %v9803_v35 = vrot.slane %v4855_v62, %v7356_v22  ;;  %v9806_v57 = vrot.slane %v4871_v12, %v7356_v22 }
 0x3a1   : > { %v9811_v19 = vrot.slane %v3530_v52, %v7356_v22  ;;  %v3234_v28 = vsel %vm1874_vm6, %v11222_v8, %v6481_v11  ;;  %v9817_v5 = vpop.permute.xlu0 %6563  ;;  %v2675_v12 = vcombine.high %v9706_v9, %v10849_v20  ;;  %v9823_v62 = vrot.slane %v3546_v2, %v7356_v22  ;;  %v11251_v9 = vld [vmem:[#allocation91_spill] sm:$0xff] }
 0x3a2   : > { %11220 = vst [vmem:[#allocation80_spill] sm:$0xff] %v9803_v35  ;;  %6768 = vrot.lane.b32.xlu1 %v6767_v60, %s6917_s26  ;;  %v6777_v46 = vpack.i.bf16 %v4819_v48, %v3934_v34  ;;  %v9826_v52 = vrot.slane %v5280_v10, %v10989_v26  ;;  %v6476_v63 = vunpack.i.h.bf16 %v8995_v7  ;;  %v6787_v48 = vpack.i.bf16 %v3937_v4, %v9326_v54  ;;  %v11225_v10 = vld [vmem:[#allocation33_spill] sm:$0xff] }
 0x3a3   : > { %11221 = vst [vmem:[#allocation15_spill] sm:$0xff] %v9811_v19  ;;  %11223 = vst [vmem:[#allocation77_spill] sm:$0xff] %v9823_v62  ;;  %v9831_v11 = vpop.permute.xlu1 %6558  ;;  %v3496_v60 = vcombine.high %v9644_v40, %v10849_v20  ;;  %v3494_v2 = vcombine.high %v9639_v13, %v10849_v20  ;;  %v4822_v26 = vcombine.high %v9674_v30, %v10849_v20  ;;  %v6486_v34 = vunpack.i.h.bf16 %v11225_v10 }
 0x3a4   : > { %11224 = vst [vmem:[#allocation42_spill] sm:$0xff] %v9826_v52  ;;  %6778 = vrot.lane.b32.xlu0 %v6777_v46, %s6917_s26  ;;  %v3235_v8 = vsel %vm1876_vm7, %v3234_v28, %v6476_v63  ;;  %v2676_v17 = vcombine.high %v9612_v45, %v10849_v20  ;;  %v4820_v46 = vcombine.high %v9580_v25, %v10849_v20 }
 0x3a5   : > { %v9847_v54 = vpop.permute.xlu0 %6568  ;;  %v6782_v4 = vpack.i.bf16 %v3496_v60, %v2675_v12  ;;  %v3495_v59 = vcombine.high %v9655_v39, %v10849_v20  ;;  %v11226_v30 = vcombine.low %v9471_v36, %v9647_v6  ;;  %v11228_v45 = vcombine.low %v9468_v32, %v9619_v42 }
 0x3a6   : > { %6788 = vrot.lane.b32.xlu1 %v6787_v48, %s6918_s27  ;;  %v5312_v28 = vcombine.high %v9589_v61, %v9826_v52  ;;  %v3497_v39 = vcombine.high %v9627_v16, %v10849_v20  ;;  %v3935_v36 = vcombine.high %v9596_v55, %v10849_v20  ;;  %v9873_v6 = vsel %vm1878_vm8, %v3235_v8, %v6486_v34  ;;  %v11230_v8 = vld [vmem:[#allocation89_spill] sm:$0xff]  ;;  %v11254_v61 = vld [vmem:[#allocation87_spill] sm:$0xff] }
 0x3a7   : > { %v9856_v13 = vrot.slane %v11226_v30, %v7356_v22  ;;  %v9862_v63 = vrot.slane %v11228_v45, %v7356_v22  ;;  %v6531_v12 = vunpack.i.h.bf16 %v9663_v0  ;;  %v9876_v32 = vpop.permute.xlu1 %6573  ;;  %v6797_v42 = vpack.i.bf16 %v9365_v27, %v3494_v2 }
 0x3a8   : > { %6783 = vrot.lane.b32.xlu0 %v6782_v4, %s6917_s26  ;;  %v6792_v48 = vpack.i.bf16 %v9389_v41, %v4822_v26  ;;  %v6530_v60 = vunpack.i.l.bf16 %v9663_v0  ;;  %v6807_v30 = vpack.i.bf16 %v3497_v39, %v2676_v17  ;;  %v6802_v16 = vpack.i.bf16 %v4820_v46, %v3935_v36  ;;  %v11232_v26 = vld [vmem:[#allocation85_spill] sm:$0xff]  ;;  %v11234_v39 = vld [vmem:[#allocation67_spill] sm:$0xff] }
 0x3a9   : > { %11227 = vst [vmem:[#allocation78_spill] sm:$0xff] %v9856_v13  ;;  %11229 = vst [vmem:[#allocation50_spill] sm:$0xff] %v9862_v63  ;;  %v9884_v55 = vcombine.high %v9737_v21, %v10849_v20  ;;  %v9886_v34 = vpop.permute.xlu0 %5348  ;;  %v6812_v45 = vpack.i.bf16 %v11230_v8, %v3495_v59  ;;  %v5261_v4 = vcombine.high %v9856_v13, %v10849_v20  ;;  %v6536_v46 = vunpack.i.h.bf16 %v9714_v33 }
 0x3aa   : > { %6798 = vrot.lane.b32.xlu1 %v6797_v42, %s6917_s26  ;;  %v5259_v27 = vcombine.high %v9862_v63, %v10849_v20  ;;  %v9896_v41 = vcombine.high %v9759_v18, %v10849_v20  ;;  %v9899_v0 = vrot.slane %v5312_v28, %v7356_v22  ;;  %v11231_v21 = vcombine.high %v9486_v15, %v9677_v56  ;;  %v11235_v42 = vld [vmem:[#allocation84_spill] sm:$0xff] }
 0x3ab   : > { %v9908_v59 = vrot.slane %v4872_v38, %v7356_v22  ;;  %v9912_v2 = vcombine.high %v9803_v35, %v10849_v20  ;;  %v2342_v18 = vsel %vm1874_vm6, %v11232_v26, %v6531_v12  ;;  %v9917_v28 = vpop.permute.xlu1 %6578  ;;  %v9922_v15 = vcombine.high %v9751_v3, %v10849_v20  ;;  %v11249_v3 = vld [vmem:[#allocation90_spill] sm:$0xff]  ;;  %v11250_v63 = vld [vmem:[#allocation20_spill] sm:$0xff] }
 0x3ac   : > { %v9905_v17 = vrot.slane %v11231_v21, %v7356_v22  ;;  %6793 = vrot.lane.b32.xlu0 %v6792_v48, %s6918_s27  ;;  %v11233_v56 = vcombine.high %v9493_v53, %v9721_v51  ;;  %v6521_v36 = vunpack.i.h.bf16 %v11234_v39  ;;  %v2339_v12 = vsel %vm1874_vm6, %v11235_v42, %v6530_v60  ;;  %v11238_v60 = vld [vmem:[#allocation19_spill] sm:$0xff] }
 0x3ad   : > { %v6535_v8 = vunpack.i.l.bf16 %v9714_v33  ;;  %v9936_v48 = vcombine.high %v9823_v62, %v10849_v20  ;;  %v6520_v21 = vunpack.i.l.bf16 %v11234_v39  ;;  %v9939_v26 = vpop.permute.xlu0 %5336  ;;  %v11237_v53 = vunpack.i.h.bf16 %v11179_v49  ;;  %v11248_v49 = vld [vmem:[#allocation69_spill] sm:$0xff] }
 0x3ae   : > { %v9928_v38 = vrot.slane %v11233_v56, %v7356_v22  ;;  %11236 = vst [vmem:[#allocation76_spill] sm:$0xff] %v9939_v26  ;;  %6808 = vrot.lane.b32.xlu1 %v6807_v30, %s6918_s27  ;;  %v11239_v56 = vcombine.high %v9483_v44, %v11238_v60  ;;  %v11240_v42 = vcombine.high %v9569_v1, %v9746_v37  ;;  %v11241_v30 = vld [vmem:[#allocation94_spill] sm:$0xff]  ;;  %v6551_v13 = vunpack.i.h.bf16 %v11250_v63 }
 0x3af   : > { %v1887_v51 = vsel %vm1876_vm7, %v9701_v50, %v11237_v53  ;;  %v2343_v25 = vsel %vm1876_vm7, %v2342_v18, %v6521_v36  ;;  %v11242_v53 = vunpack.i.h.bf16 %v11241_v30  ;;  %v2340_v60 = vsel %vm1876_vm7, %v2339_v12, %v6520_v21  ;;  %v6589_v62 = vpop.permute.xlu1 %6588  ;;  %v11243_v36 = vld [vmem:[#allocation9_spill] sm:$0xff]  ;;  %v11245_v12 = vld [vmem:[#allocation18_spill] sm:$0xff] }
 0x3b0   : > { %v9950_v33 = vrot.slane %v11239_v56, %v7356_v22  ;;  %v9956_v39 = vrot.slane %v11240_v42, %v7356_v22  ;;  %v2344_v56 = vsel %vm1878_vm8, %v2343_v25, %v6536_v46  ;;  %6803 = vrot.lane.b32.xlu0 %v6802_v16, %s6918_s27  ;;  %v9973_v37 = vcombine.high %v9908_v59, %v10849_v20 }
 0x3b1   : > { %v1888_v44 = vsel %vm1878_vm8, %v1887_v51, %v11242_v53  ;;  %v2341_v18 = vsel %vm1878_vm8, %v2340_v60, %v6535_v8  ;;  %v6540_v42 = vunpack.i.l.bf16 %v11243_v36  ;;  %v11244_v51 = vld [vmem:[#allocation39_spill] sm:$0xff]  ;;  %v9981_v25 = vcombine.high %v9905_v17, %v10849_v20  ;;  %v6584_v46 = vpop.permute.xlu0 %6583 }
 0x3b2   : > { %v6541_v16 = vunpack.i.h.bf16 %v11243_v36  ;;  %6813 = vrot.lane.b32.xlu1 %v6812_v45, %s6918_s27  ;;  %v11246_v8 = vcombine.high %v9524_v47, %v9727_v14  ;;  %v9995_v60 = vcombine.high %v9811_v19, %v10849_v20  ;;  %v5462_v30 = vrot.slane %v2344_v56, 4 }
 0x3b3   : > { %v6585_v1 = vunpack.i.l.bf16 %v6584_v46  ;;  %v11247_v36 = vcombine.high %v9586_v24, %v9789_v58  ;;  %v10005_v21 = vcombine.high %v9950_v33, %v10849_v20  ;;  %v5461_v50 = vrot.slane %v2341_v18, 4  ;;  %v6594_v14 = vpop.permute.xlu1 %6593 }
 0x3b4   : > { %v9991_v53 = vrot.slane %v11246_v8, %v7356_v22  ;;  %v6591_v47 = vunpack.i.h.bf16 %v6589_v62  ;;  %5392 = vrot.lane.b32.xlu0 %v5261_v4, %s6917_s26  ;;  %v10012_v56 = vcombine.high %v9928_v38, %v10849_v20  ;;  %v6526_v19 = vunpack.i.h.bf16 %v11248_v49 }
 0x3b5   : > { %v10001_v45 = vrot.slane %v11247_v36, %v7356_v22  ;;  %v6525_v36 = vunpack.i.l.bf16 %v11248_v49  ;;  %v2779_v35 = vsel %vm1874_vm6, %v11249_v3, %v6540_v42  ;;  %v6545_v18 = vunpack.i.l.bf16 %v9794_v29  ;;  %v6604_v23 = vpop.permute.xlu0 %6603  ;;  %v11252_v49 = vld [vmem:[#allocation98_spill] sm:$0xff]  ;;  %v11253_v42 = vld [vmem:[#allocation35_spill] sm:$0xff] }
 0x3b6   : > { %v2782_v4 = vsel %vm1874_vm6, %v11251_v9, %v6541_v16  ;;  %v6546_v8 = vunpack.i.h.bf16 %v9794_v29  ;;  %v6590_v40 = vunpack.i.l.bf16 %v6589_v62  ;;  %5380 = vrot.lane.b32.xlu1 %v5259_v27, %s6917_s26  ;;  %v6550_v31 = vunpack.i.l.bf16 %v11250_v63  ;;  %v11255_v62 = vld [vmem:[#allocation71_spill] sm:$0xff] }
 0x3b7   : > { %v6586_v10 = vunpack.i.h.bf16 %v6584_v46  ;;  %v3231_v7 = vsel %vm1874_vm6, %v11252_v49, %v6585_v1  ;;  %v5551_v3 = vsel %vm5547_vm9, %v1888_v44, %v5462_v30  ;;  %v6556_v26 = vunpack.i.h.bf16 %v11253_v42  ;;  %v6599_v29 = vpop.permute.xlu1 %6598  ;;  %v11256_v46 = vld [vmem:[#allocation101_spill] sm:$0xff] }
 0x3b8   : > { %v2780_v52 = vsel %vm1876_vm7, %v2779_v35, %v6525_v36  ;;  %v3228_v9 = vsel %vm1874_vm6, %v11254_v61, %v6591_v47  ;;  %5400 = vrot.lane.b32.xlu0 %v9884_v55, %s6918_s27  ;;  %v5550_v63 = vsel %vm5547_vm9, %v11255_v62, %v5461_v50  ;;  %v6555_v27 = vunpack.i.l.bf16 %v11253_v42  ;;  %v11257_v50 = vld [vmem:[#allocation103_spill] sm:$0xff] }
 0x3b9   : > { %v2781_v1 = vsel %vm1878_vm8, %v2780_v52, %v6545_v18  ;;  %v2783_v44 = vsel %vm1876_vm7, %v2782_v4, %v6526_v19  ;;  %v6600_v30 = vunpack.i.l.bf16 %v6599_v29  ;;  %v6566_v35 = vunpack.i.h.bf16 %v9817_v5  ;;  %v6609_v55 = vpop.permute.xlu0 %6608 }
 0x3ba   : > { %v2784_v16 = vsel %vm1878_vm8, %v2783_v44, %v6546_v8  ;;  %v4990_v61 = vsel %vm1874_vm6, %v11256_v46, %v6590_v40  ;;  %v3232_v47 = vsel %vm1876_vm7, %v3231_v7, %v6550_v31  ;;  %5388 = vrot.lane.b32.xlu1 %v9896_v41, %s6918_s27  ;;  %v4105_v36 = vsel %vm1874_vm6, %v11257_v50, %v6586_v10  ;;  %v11260_v50 = vld [vmem:[#allocation30_spill] sm:$0xff] }
 0x3bb   : > { %v3233_v52 = vsel %vm1878_vm8, %v3232_v47, %v6600_v30  ;;  %v6611_v19 = vunpack.i.h.bf16 %v6609_v55  ;;  %v3229_v18 = vsel %vm1876_vm7, %v3228_v9, %v6556_v26  ;;  %v6596_v8 = vunpack.i.h.bf16 %v6594_v14  ;;  %v6614_v62 = vpop.permute.xlu1 %6613 }
 0x3bc   : > { %v6595_v4 = vunpack.i.l.bf16 %v6594_v14  ;;  %v6606_v49 = vunpack.i.h.bf16 %v6604_v23  ;;  %v5486_v42 = vrot.slane %v3233_v52, 4  ;;  %5420 = vrot.lane.b32.xlu0 %v9899_v0, %s6916_s25  ;;  %v6605_v7 = vunpack.i.l.bf16 %v6604_v23 }
 0x3bd   : > { %v6601_v31 = vunpack.i.h.bf16 %v6599_v29  ;;  %v6610_v40 = vunpack.i.l.bf16 %v6609_v55  ;;  %v3230_v41 = vsel %vm1878_vm8, %v3229_v18, %v6611_v19  ;;  %v6565_v10 = vunpack.i.l.bf16 %v9817_v5  ;;  %v10055_v46 = vpop.permute.xlu0 %5344  ;;  %v11259_v5 = vld [vmem:[#allocation104_spill] sm:$0xff]  ;;  %v11261_v19 = vld [vmem:[#allocation99_spill] sm:$0xff] }
 0x3be   : > { %v6561_v44 = vunpack.i.h.bf16 %v9831_v11  ;;  %v5485_v30 = vrot.slane %v3230_v41, 4  ;;  %v11258_v26 = vpack.i.bf16 %v9908_v59, %v9905_v17  ;;  %v5559_v14 = vsel %vm5547_vm9, %v2784_v16, %v5486_v42 }
 0x3bf   : > { %v6560_v23 = vunpack.i.l.bf16 %v9831_v11  ;;  %v4106_v9 = vsel %vm1876_vm7, %v4105_v36, %v6551_v13  ;;  %v4991_v29 = vsel %vm1876_vm7, %v4990_v61, %v6555_v27  ;;  %v6338_v47 = vpack.c.bf16 %v5559_v14, %v5551_v3  ;;  %v6619_v17 = vpop.permute.xlu1 %6618  ;;  %v11263_v11 = vld [vmem:[#allocation14_spill] sm:$0xff] }
 0x3c0   : > { %6818 = vrot.lane.b32.xlu1 %v11258_v26, %s6916_s25  ;;  %v4987_v55 = vsel %vm1874_vm6, %v11259_v5, %v6596_v8  ;;  %v4102_v52 = vsel %vm1874_vm6, %v11260_v50, %v6595_v4  ;;  %v4550_v18 = vsel %vm1874_vm6, %v11261_v19, %v6606_v49  ;;  %v11262_v59 = vpack.i.bf16 %v9912_v2, %v9922_v15 }
 0x3c1   : > { %v5558_v13 = vsel %vm5547_vm9, %v2781_v1, %v5485_v30  ;;  %v3665_v3 = vsel %vm1874_vm6, %v11263_v11, %v6605_v7  ;;  %v4107_v27 = vsel %vm1878_vm8, %v4106_v9, %v6601_v31  ;;  %v4992_v16 = vsel %vm1878_vm8, %v4991_v29, %v6610_v40  ;;  %6339 = vmatprep.subr.bf16.mxu1 %v6338_v47  ;;  %v10080_v42 = vpop.permute.xlu0 %6633  ;;  %v11267_v29 = vld [vmem:[#allocation100_spill] sm:$0xff]  ;;  %v11272_v11 = vld [vmem:[#allocation45_spill] sm:$0xff] }
 0x3c2   : > { %6843 = vrot.lane.b32.xlu0 %v11262_v59, %s6917_s26  ;;  %v6340_v61 = vpack.c.bf16 %v5558_v13, %v5550_v63  ;;  %v6616_v36 = vunpack.i.h.bf16 %v6614_v62  ;;  %v6615_v8 = vunpack.i.l.bf16 %v6614_v62  ;;  %v6621_v4 = vunpack.i.h.bf16 %v6619_v17  ;;  %v11265_v63 = vld [vmem:[#allocation17_spill] sm:$0xff] }
 0x3c3   : > { %v6620_v49 = vunpack.i.l.bf16 %v6619_v17  ;;  %v11264_v2 = vpack.i.bf16 %v9928_v38, %v9950_v33  ;;  %v6571_v15 = vunpack.i.h.bf16 %v9847_v54  ;;  %v6570_v1 = vunpack.i.l.bf16 %v9847_v54  ;;  %v6624_v38 = vpop.permute.xlu1 %6623 }
 0x3c4   : > { %v6635_v7 = vunpack.i.l.bf16 %v10080_v42  ;;  %6341 = vmatpush1.bf16.msra.mxu1 %v6340_v61  ;;  %v6832_v31 = vpack.i.bf16 %v11265_v63, %v9991_v53  ;;  %v4103_v62 = vsel %vm1876_vm7, %v4102_v52, %v6560_v23  ;;  %v4988_v40 = vsel %vm1876_vm7, %v4987_v55, %v6561_v44  ;;  %v11268_v23 = vld [vmem:[#allocation22_spill] sm:$0xff] }
 0x3c5   : > { %6823 = vrot.lane.b32.xlu1 %v11264_v2, %s6916_s25  ;;  %v3666_v41 = vsel %vm1876_vm7, %v3665_v3, %v6565_v10  ;;  %v4551_v30 = vsel %vm1876_vm7, %v4550_v18, %v6566_v35  ;;  %v11266_v33 = vpack.i.bf16 %v11244_v51, %v9936_v48  ;;  %v5508_v54 = vrot.slane %v4107_v27, 4  ;;  %v10105_v5 = vpop.permute.xlu0 %6638  ;;  %v11270_v51 = vld [vmem:[#allocation23_spill] sm:$0xff] }
 0x3c6   : > { %v5532_v26 = vrot.slane %v4992_v16, 4  ;;  %v6626_v14 = vunpack.i.h.bf16 %v6624_v38  ;;  %v6625_v9 = vunpack.i.l.bf16 %v6624_v38  ;;  %v4547_v47 = vsel %vm1874_vm6, %v11267_v29, %v6616_v36 }
 0x3c7   : > { %6848 = vrot.lane.b32.xlu0 %v11266_v33, %s6917_s26  ;;  %v3662_v44 = vsel %vm1874_vm6, %v11268_v23, %v6615_v8  ;;  %v4104_v10 = vsel %vm1878_vm8, %v4103_v62, %v6620_v49  ;;  %v4989_v35 = vsel %vm1878_vm8, %v4988_v40, %v6621_v4  ;;  %v11269_v48 = vpack.i.bf16 %v11245_v12, %v9956_v39  ;;  %v6629_v17 = vpop.permute.xlu1 %6628  ;;  %v11275_v33 = vld [vmem:[#allocation68_spill] sm:$0xff] }
 0x3c8   : > { %v2345_v55 = vsel %vm1874_vm6, %v11270_v51, %v6635_v7  ;;  %v4552_v50 = vsel %vm1878_vm8, %v4551_v30, %v6626_v14  ;;  %v3667_v52 = vsel %vm1878_vm8, %v3666_v41, %v6625_v9  ;;  %v6640_v19 = vunpack.i.l.bf16 %v10105_v5  ;;  %v11274_v30 = vld [vmem:[#allocation66_spill] sm:$0xff]  ;;  %v11276_v14 = vld [vmem:[#allocation75_spill] sm:$0xff] }
 0x3c9   : > { %6828 = vrot.lane.b32.xlu1 %v11269_v48, %s6916_s25  ;;  %v6575_v18 = vunpack.i.l.bf16 %v9876_v32  ;;  %v11271_v59 = vpack.i.bf16 %v9973_v37, %v9981_v25  ;;  %v5565_v12 = vsel %vm5547_vm9, %v3667_v52, %v5508_v54  ;;  %v5573_v13 = vsel %vm5547_vm9, %v4552_v50, %v5532_v26  ;;  %v10128_v2 = vpop.permute.xlu0 %6643  ;;  %v11278_v52 = vld [vmem:[#allocation59_spill] sm:$0xff] }
 0x3ca   : > { %v6857_v3 = vpack.i.bf16 %v11272_v11, %v9995_v60  ;;  %v6631_v27 = vunpack.i.h.bf16 %v6629_v17  ;;  %v6630_v16 = vunpack.i.l.bf16 %v6629_v17  ;;  %v3663_v61 = vsel %vm1876_vm7, %v3662_v44, %v6570_v1  ;;  %v11273_v1 = vld [vmem:[#allocation95_spill] sm:$0xff] }
 0x3cb   : > { %6853 = vrot.lane.b32.xlu0 %v11271_v59, %s6918_s27  ;;  %v4548_v36 = vsel %vm1876_vm7, %v4547_v47, %v6571_v15  ;;  %v5507_v8 = vrot.slane %v4104_v10, 4  ;;  %v5531_v4 = vrot.slane %v4989_v35, 4  ;;  %v2346_v49 = vsel %vm1876_vm7, %v2345_v55, %v6575_v18  ;;  %v5333_v15 = vpop.permute.xlu1 %5332 }
 0x3cc   : > { %v6334_v37 = vpack.c.bf16 %v5573_v13, %v5565_v12  ;;  %v2347_v25 = vsel %vm1878_vm8, %v2346_v49, %v6640_v19  ;;  %v3664_v7 = vsel %vm1878_vm8, %v3663_v61, %v6630_v16  ;;  %v4549_v60 = vsel %vm1878_vm8, %v4548_v36, %v6631_v27  ;;  %v11279_v19 = vld [vmem:[#allocation42_spill] sm:$0xff]  ;;  %v11283_v61 = vld [vmem:[#allocation48_spill] sm:$0xff] }
 0x3cd   : > { %6833 = vrot.lane.b32.xlu1 %v6832_v31, %s6916_s25  ;;  %v6645_v63 = vunpack.i.l.bf16 %v10128_v2  ;;  %v6455_v62 = vunpack.i.l.bf16 %v11273_v1  ;;  %v5564_v40 = vsel %vm5547_vm9, %v3664_v7, %v5507_v8  ;;  %v5572_v41 = vsel %vm5547_vm9, %v4549_v60, %v5531_v4  ;;  %v10149_v23 = vpop.permute.xlu0 %6648  ;;  %v10202_v4 = vld [vmem:[%s10565_s3] sm:$0xff] }
 0x3ce   : > { %6335 = vmatprep.subr.bf16.mxu0 %v6334_v37  ;;  %v4889_v31 = vcombine.high %v9806_v57, %v10849_v20  ;;  %v5430_v38 = vsel %vm1874_vm6, %v11274_v30, %v10055_v46  ;;  %v6336_v26 = vpack.c.bf16 %v5572_v41, %v5564_v40  ;;  %v4004_v9 = vcombine.high %v11276_v14, %v10849_v20  ;;  %v11284_v30 = vld [vmem:[#allocation5_spill] sm:$0xff] }
 0x3cf   : > { %6858 = vrot.lane.b32.xlu0 %v6857_v3, %s6917_s26  ;;  %v2785_v54 = vsel %vm1874_vm6, %v11275_v33, %v6645_v63  ;;  %v6580_v29 = vunpack.i.l.bf16 %v9917_v28  ;;  %v5463_v47 = vrot.slane %v2347_v25, 4  ;;  %v6862_v44 = vpack.i.bf16 %v10012_v56, %v10005_v21  ;;  %v5353_v21 = vpop.permute.xlu1 %5352  ;;  %v11277_v56 = vld [vmem:[#allocation4_spill] sm:$0xff] }
 0x3d0   : > { %v3565_v46 = vcombine.high %v9956_v39, %v10849_v20  ;;  %v1891_v10 = vsel %vm1878_vm8, %v9792_v43, %v6455_v62  ;;  %v5295_v35 = vcombine.low %v9586_v24, %v9789_v58  ;;  %v5487_v48 = vrot.slane %v9873_v6, 4  ;;  %6337 = vmatpush1.bf16.msra.mxu0 %v6336_v26  ;;  %v11282_v3 = vld [vmem:[#allocation76_spill] sm:$0xff] }
 0x3d1   : > { %5408 = vrot.lane.b32.xlu1 %v10001_v45, %s6916_s25  ;;  %v6650_v51 = vunpack.i.l.bf16 %v10149_v23  ;;  %v2786_v55 = vsel %vm1876_vm7, %v2785_v54, %v6580_v29  ;;  %v5431_v50 = vsel %vm1876_vm7, %v5430_v38, %v9886_v34  ;;  %v6837_v39 = vpack.i.bf16 %v4889_v31, %v4004_v9  ;;  %v10179_v34 = vpop.permute.xlu0 %6663  ;;  %v11286_v29 = vld [vmem:[#allocation54_spill] sm:$0xff] }
 0x3d2   : > { %v3563_v43 = vcombine.high %v9991_v53, %v10849_v20  ;;  %v5427_v58 = vsel %vm1874_vm6, %v11277_v56, %v5333_v15  ;;  %v5432_v6 = vsel %vm1878_vm8, %v5431_v50, %v5353_v21  ;;  %v11280_v18 = vcombine.low %v11278_v52, %v11279_v19  ;;  %v11281_v53 = vld [vmem:[#allocation32_spill] sm:$0xff] }
 0x3d3   : > { %6863 = vrot.lane.b32.xlu0 %v6862_v44, %s6918_s27  ;;  %v2787_v24 = vsel %vm1878_vm8, %v2786_v55, %v6650_v51  ;;  %6142 = vmatprep.subr.msk.mxu0 %vm5547_vm9, %v5432_v6  ;;  %v6867_v59 = vpack.i.bf16 %v11281_v53, %v3565_v46  ;;  %v10185_v12 = vsel %vm5547_vm9, %v1891_v10, %v5463_v47  ;;  %v5341_v16 = vpop.permute.xlu1 %5340  ;;  %v6636_v31 = vunpack.i.h.bf16 %v10080_v42  ;;  %v11287_v46 = vld [vmem:[#allocation93_spill] sm:$0xff]  ;;  %v11291_v6 = vld [vmem:[#allocation36_spill] sm:$0xff] }
 0x3d4   : > { %v10177_v17 = vrot.slane %v11280_v18, %v7356_v22  ;;  %v10188_v13 = vsel %vm5547_vm9, %v2787_v24, %v5487_v48  ;;  %v5428_v27 = vsel %vm1876_vm7, %v5427_v58, %v11282_v3  ;;  %v6872_v36 = vpack.i.bf16 %v11283_v61, %v3563_v43  ;;  %v11289_v48 = vld [vmem:[#allocation96_spill] sm:$0xff]  ;;  %v11290_v43 = vld [vmem:[#allocation33_spill] sm:$0xff] }
 0x3d5   : > { %6838 = vrot.lane.b32.xlu1 %v6837_v39, %s6917_s26  ;;  %v6348_v11 = vpack.c.bf16 %v10188_v13, %v10185_v12  ;;  %v10197_v8 = vrot.slane %v5295_v35, %v7356_v22  ;;  %v5429_v49 = vsel %vm1878_vm8, %v5428_v27, %v5341_v16  ;;  %v10205_v37 = vpop.permute.xlu0 %5372  ;;  %v5330_v63 = vcombine.high %v9899_v0, %v10849_v20  ;;  %v11285_v0 = vld [vmem:[#allocation26_spill] sm:$0xff]  ;;  %v11292_v61 = vld [vmem:[#allocation8_spill] sm:$0xff] }
 0x3d6   : > { %6143 = vmatpush1.msk.msra.mxu0 %vm5547_vm9, %v5429_v49  ;;  %v5329_v25 = vcombine.high %v10177_v17, %v10849_v20  ;;  %v5328_v15 = vcombine.high %v10001_v45, %v10849_v20  ;;  %v6480_v38 = vunpack.i.l.bf16 %v11284_v30  ;;  %v2348_v26 = vsel %vm1874_vm6, %v11285_v0, %v6636_v31  ;;  %v11288_v35 = vld [vmem:[#allocation70_spill] sm:$0xff]  ;;  %v11293_v31 = vld [vmem:[#allocation72_spill] sm:$0xff] }
 0x3d7   : > { %6868 = vrot.lane.b32.xlu0 %v6867_v59, %s6918_s27  ;;  %6144 = vmatmul.mubr.msk.f32.vlgmr.msra.gmra.mrb[28].mxu0 %vm5581_vm10, %v10202_v4  ;;  %v10213_v22 = vpop.permute.xlu1 %6653  ;;  %v5327_v7 = vcombine.high %v10197_v8, %v10849_v20  ;;  %v6641_v9 = vunpack.i.h.bf16 %v10105_v5  ;;  %v6576_v47 = vunpack.i.h.bf16 %v9876_v32  ;;  %v6451_v10 = vunpack.i.h.bf16 %v11287_v46 }
 0x3d8   : > { %5815 = vmatprep.mubr.f32.mxu0 %v10849_v20  ;;  %v4556_v45 = vsel %vm1874_vm6, %v11286_v29, %v6480_v38  ;;  %v6475_v42 = vunpack.i.l.bf16 %v11288_v35  ;;  %v6436_v51 = vunpack.i.h.bf16 %v11289_v48  ;;  %v6646_v5 = vunpack.i.h.bf16 %v10128_v2  ;;  %v11294_v38 = vld [vmem:[#allocation38_spill] sm:$0xff]  ;;  %v11296_v29 = vld [vmem:[#allocation63_spill] sm:$0xff] }
 0x3d9   : > { %6873 = vrot.lane.b32.xlu1 %v6872_v36, %s6918_s27  ;;  %v10219_v60 = vpop.permute.xlu0 %5360  ;;  %v2349_v55 = vsel %vm1876_vm7, %v2348_v26, %v6576_v47  ;;  %v6485_v56 = vunpack.i.l.bf16 %v11290_v43  ;;  %v1892_v52 = vsel %vm1874_vm6, %v11291_v6, %v6451_v10  ;;  %v6456_v19 = vunpack.i.h.bf16 %v11273_v1  ;;  %v11295_v26 = vld [vmem:[#allocation86_spill] sm:$0xff] }
 0x3da   : > { %v10249_v21 = vsel %vm1878_vm8, %v2349_v55, %v6641_v9  ;;  %v4557_v39 = vsel %vm1876_vm7, %v4556_v45, %v6475_v42  ;;  %v10258_v59 = vsel %vm1876_vm7, %v1892_v52, %v6436_v51  ;;  %v6581_v3 = vunpack.i.h.bf16 %v9917_v28 }
 0x3db   : > { %5416 = vrot.lane.b32.xlu0 %v5329_v25, %s6917_s26  ;;  %v10224_v62 = vpop.permute.xlu1 %6658  ;;  %v5464_v2 = vrot.slane %v10249_v21, 4  ;;  %v10263_v16 = vsel %vm1878_vm8, %v4557_v39, %v6485_v56  ;;  %v2788_v36 = vsel %vm1874_vm6, %v11292_v61, %v6646_v5  ;;  %v6651_v49 = vunpack.i.h.bf16 %v10149_v23 }
 0x3dc   : > { %v6666_v25 = vunpack.i.h.bf16 %v10179_v34  ;;  %v6660_v46 = vunpack.i.l.bf16 %v10224_v62  ;;  %v1894_v28 = vsel %vm1878_vm8, %v10258_v59, %v6456_v19 }
 0x3dd   : > { %5404 = vrot.lane.b32.xlu1 %v5327_v7, %s6917_s26  ;;  %v10229_v40 = vpop.permute.xlu0 %6673  ;;  %v6665_v7 = vunpack.i.l.bf16 %v10179_v34  ;;  %v6661_v34 = vunpack.i.h.bf16 %v10224_v62  ;;  %v5553_v23 = vsel %vm5547_vm9, %v1894_v28, %v5464_v2  ;;  %v11311_v28 = vld [vmem:[#allocation82_spill] sm:$0xff] }
 0x3df   : > { %5424 = vrot.lane.b32.xlu0 %v5330_v63, %s6918_s27  ;;  %v10232_v41 = vpop.permute.xlu1 %6668  ;;  %v6656_v63 = vunpack.i.h.bf16 %v10213_v22 }
 0x3e0   : > { %v6671_v42 = vunpack.i.h.bf16 %v10232_v41  ;;  %v6670_v48 = vunpack.i.l.bf16 %v10232_v41 }
 0x3e1   : > { %5412 = vrot.lane.b32.xlu1 %v5328_v15, %s6918_s27  ;;  %v6684_v33 = vpop.permute.xlu0 %6683  ;;  %v6655_v15 = vunpack.i.l.bf16 %v10213_v22 }
 0x3e2   : > { %v6686_v32 = vunpack.i.h.bf16 %v6684_v33  ;;  %v6685_v58 = vunpack.i.l.bf16 %v6684_v33 }
 0x3e3   : > { %v10236_v54 = vpop.permute.xlu1 %6678 }
 0x3e4   : > { %v4996_v30 = vsel %vm1874_vm6, %v11293_v31, %v6686_v32  ;;  %v4111_v33 = vsel %vm1874_vm6, %v11294_v38, %v6685_v58  ;;  %v11297_v58 = vld [vmem:[#allocation88_spill] sm:$0xff] }
 0x3e5   : > { %v6689_v44 = vpop.permute.xlu0 %6688  ;;  %v4112_v5 = vsel %vm1876_vm7, %v4111_v33, %v6655_v15  ;;  %v4997_v39 = vsel %vm1876_vm7, %v4996_v30, %v6656_v63  ;;  %v11300_v31 = vld [vmem:[#allocation16_spill] sm:$0xff] }
 0x3e6   : > { %v6691_v18 = vunpack.i.h.bf16 %v6689_v44  ;;  %v6690_v53 = vunpack.i.l.bf16 %v6689_v44 }
 0x3e7   : > { %v6704_v50 = vpop.permute.xlu1 %6703 }
 0x3e8   : > { %v4993_v9 = vsel %vm1874_vm6, %v11295_v26, %v6691_v18  ;;  %v4108_v45 = vsel %vm1874_vm6, %v11296_v29, %v6690_v53  ;;  %v6705_v47 = vunpack.i.l.bf16 %v6704_v50  ;;  %v6706_v22 = vunpack.i.h.bf16 %v6704_v50  ;;  %v11298_v18 = vld [vmem:[#allocation74_spill] sm:$0xff] }
 0x3e9   : > { %v6694_v24 = vpop.permute.xlu0 %6693  ;;  %v4109_v56 = vsel %vm1876_vm7, %v4108_v45, %v6660_v46  ;;  %v4994_v32 = vsel %vm1876_vm7, %v4993_v9, %v6661_v34 }
 0x3ea   : > { %v6695_v10 = vunpack.i.l.bf16 %v6694_v24  ;;  %v6696_v51 = vunpack.i.h.bf16 %v6694_v24  ;;  %v3668_v62 = vsel %vm1874_vm6, %v11297_v58, %v6705_v47  ;;  %v4553_v41 = vsel %vm1874_vm6, %v11298_v18, %v6706_v22  ;;  %v11299_v24 = vld [vmem:[#allocation43_spill] sm:$0xff] }
 0x3eb   : > { %v6719_v27 = vpop.permute.xlu1 %6718  ;;  %v3669_v26 = vsel %vm1876_vm7, %v3668_v62, %v6670_v48 }
 0x3ec   : > { %v3237_v53 = vsel %vm1874_vm6, %v11299_v24, %v6695_v10  ;;  %v6721_v61 = vunpack.i.h.bf16 %v6719_v27  ;;  %v6720_v63 = vunpack.i.l.bf16 %v6719_v27  ;;  %v3671_v30 = vsel %vm1874_vm6, %v11300_v31, %v6696_v51 }
 0x3ed   : > { %v3238_v46 = vsel %vm1876_vm7, %v3237_v53, %v6665_v7  ;;  %v2789_v7 = vsel %vm1876_vm7, %v2788_v36, %v6581_v3 }
 0x3ee   : > { %v6699_v0 = vpop.permute.xlu0 %6698  ;;  %v3670_v22 = vsel %vm1878_vm8, %v3669_v26, %v6720_v63  ;;  %v2790_v62 = vsel %vm1878_vm8, %v2789_v7, %v6651_v49  ;;  %v11302_v49 = vld [vmem:[#allocation53_spill] sm:$0xff]  ;;  %v11303_v63 = vld [vmem:[#allocation7_spill] sm:$0xff]  ;;  %v6675_v26 = vunpack.i.l.bf16 %v10229_v40 }
 0x3ef   : > { %v6701_v44 = vunpack.i.h.bf16 %v6699_v0  ;;  %v6700_v55 = vunpack.i.l.bf16 %v6699_v0  ;;  %v6465_v12 = vunpack.i.l.bf16 %v11303_v63 }
 0x3f0   : > { %v5357_v35 = vpop.permute.xlu1 %5356 }
 0x3f1   : > { %v4998_v50 = vsel %vm1878_vm8, %v4997_v39, %v6701_v44  ;;  %v4113_v38 = vsel %vm1878_vm8, %v4112_v5, %v6700_v55  ;;  %v4554_v44 = vsel %vm1876_vm7, %v4553_v41, %v6671_v42  ;;  %v3672_v55 = vsel %vm1876_vm7, %v3671_v30, %v6666_v25  ;;  %v11305_v30 = vld [vmem:[#allocation58_spill] sm:$0xff] }
 0x3f2   : > { %v6709_v43 = vpop.permute.xlu0 %6708  ;;  %v5534_v9 = vrot.slane %v4998_v50, 4  ;;  %v4555_v10 = vsel %vm1878_vm8, %v4554_v44, %v6721_v61  ;;  %v5510_v51 = vrot.slane %v4113_v38, 4  ;;  %v11301_v50 = vld [vmem:[#allocation47_spill] sm:$0xff]  ;;  %v5433_v41 = vsel %vm1874_vm6, %v11302_v49, %v5357_v35 }
 0x3f3   : > { %v6711_v6 = vunpack.i.h.bf16 %v6709_v43  ;;  %v6710_v52 = vunpack.i.l.bf16 %v6709_v43  ;;  %v11306_v44 = vld [vmem:[#allocation27_spill] sm:$0xff] }
 0x3f4   : > { %v5377_v15 = vpop.permute.xlu1 %5376  ;;  %v5575_v25 = vsel %vm5547_vm9, %v10263_v16, %v5534_v9 }
 0x3f5   : > { %v4110_v33 = vsel %vm1878_vm8, %v4109_v56, %v6710_v52  ;;  %v4995_v0 = vsel %vm1878_vm8, %v4994_v32, %v6711_v6 }
 0x3f6   : > { %v5509_v29 = vrot.slane %v4110_v33, 4  ;;  %v5533_v45 = vrot.slane %v4995_v0, 4  ;;  %v6714_v47 = vpop.permute.xlu0 %6713 }
 0x3f7   : > { %v6716_v34 = vunpack.i.h.bf16 %v6714_v47  ;;  %v6715_v27 = vunpack.i.l.bf16 %v6714_v47 }
 0x3f8   : > { %v5365_v5 = vpop.permute.xlu1 %5364  ;;  %v5566_v43 = vsel %vm5547_vm9, %v3670_v22, %v5509_v29  ;;  %v5574_v42 = vsel %vm5547_vm9, %v4555_v10, %v5533_v45 }
 0x3f9   : > { %v3239_v48 = vsel %vm1878_vm8, %v3238_v46, %v6715_v27  ;;  %v3673_v39 = vsel %vm1878_vm8, %v3672_v55, %v6716_v34  ;;  %v6344_v18 = vpack.c.bf16 %v5574_v42, %v5566_v43  ;;  %v11307_v27 = vld [vmem:[#allocation12_spill] sm:$0xff]  ;;  %v11309_v43 = vld [vmem:[#allocation3_spill] sm:$0xff] }
 0x3fa   : > { %v5488_v56 = vrot.slane %v3239_v48, 4  ;;  %v5369_v32 = vpop.permute.xlu0 %5368  ;;  %v5567_v58 = vsel %vm5547_vm9, %v3673_v39, %v5510_v51  ;;  %v1895_v46 = vsel %vm1874_vm6, %v11307_v27, %v6465_v12  ;;  %v11308_v51 = vld [vmem:[#allocation62_spill] sm:$0xff]  ;;  %v6461_v42 = vunpack.i.h.bf16 %v11309_v43 }
 0x3fb   : > { %v5436_v6 = vsel %vm1874_vm6, %v11301_v50, %v5369_v32  ;;  %v6342_v52 = vpack.c.bf16 %v5575_v25, %v5567_v58  ;;  %v6470_v55 = vunpack.i.l.bf16 %v11308_v51  ;;  %v6460_v7 = vunpack.i.l.bf16 %v11309_v43 }
 0x3fc   : > { %v5437_v3 = vsel %vm1876_vm7, %v5436_v6, %v10205_v37  ;;  %v6724_v36 = vpop.permute.xlu1 %6723  ;;  %v5561_v16 = vsel %vm5547_vm9, %v2790_v62, %v5488_v56  ;;  %v5434_v37 = vsel %vm1876_vm7, %v5433_v41, %v10219_v60  ;;  %v11310_v6 = vld [vmem:[#allocation51_spill] sm:$0xff] }
 0x3fd   : > { %6343 = vmatprep.subr.bf16.mxu1 %v6342_v52  ;;  %v5438_v1 = vsel %vm1878_vm8, %v5437_v3, %v5377_v15  ;;  %v6346_v24 = vpack.c.bf16 %v5561_v16, %v5553_v23  ;;  %v5435_v19 = vsel %vm1878_vm8, %v5434_v37, %v5365_v5  ;;  %v6726_v35 = vunpack.i.h.bf16 %v6724_v36 }
 0x3fe   : > { %v10334_v53 = vpop.permute.xlu0 %6738  ;;  %6345 = vmatpush1.bf16.msra.mxu1 %v6344_v18  ;;  %v6725_v61 = vunpack.i.l.bf16 %v6724_v36  ;;  %v6466_v15 = vunpack.i.h.bf16 %v11303_v63  ;;  %v1896_v25 = vsel %vm1876_vm7, %v1895_v46, %v6460_v7  ;;  %v6681_v23 = vunpack.i.h.bf16 %v10236_v54 }
 0x3ff   : > { %6145 = vmatprep.subr.msk.mxu1 %vm5547_vm9, %v5438_v1  ;;  %6347 = vmatprep.subr.bf16.mxu0 %v6346_v24  ;;  %v1897_v50 = vsel %vm1878_vm8, %v1896_v25, %v6470_v55  ;;  %v6680_v16 = vunpack.i.l.bf16 %v10236_v54  ;;  %v6741_v49 = vunpack.i.h.bf16 %v10334_v53  ;;  %v6740_v41 = vunpack.i.l.bf16 %v10334_v53 }
 0x400   : > { %v6729_v21 = vpop.permute.xlu1 %6728  ;;  %6349 = vmatpush1.bf16.msra.mxu0 %v6348_v11  ;;  %v11304_v11 = vld [vmem:[#allocation31_spill] sm:$0xff]  ;;  %v2351_v38 = vsel %vm1874_vm6, %v11305_v30, %v6725_v61  ;;  %v1898_v34 = vsel %vm1874_vm6, %v11306_v44, %v6466_v15  ;;  %v11313_v30 = vld [vmem:[#allocation44_spill] sm:$0xff] }
 0x401   : > { %v2354_v31 = vsel %vm1874_vm6, %v11304_v11, %v6726_v35  ;;  %v6731_v33 = vunpack.i.h.bf16 %v6729_v21  ;;  %v6730_v0 = vunpack.i.l.bf16 %v6729_v21  ;;  %v2352_v29 = vsel %vm1876_vm7, %v2351_v38, %v6675_v26  ;;  %v11312_v11 = vld [vmem:[#allocation61_spill] sm:$0xff] }
 0x402   : > { %v10343_v59 = vpop.permute.xlu0 %6753  ;;  %6146 = vmatpush1.msk.msra.mxu1 %vm5547_vm9, %v5435_v19  ;;  %v1899_v62 = vsel %vm1876_vm7, %v1898_v34, %v6461_v42  ;;  %v11317_v42 = vld [vmem:[#allocation57_spill] sm:$0xff] }
 0x403   : > { %6147 = vmatmul.mubr.msk.f32.vlgmr.msra.gmra.mrb[30].mxu1 %vm5581_vm10, %v10202_v4  ;;  %v2353_v22 = vsel %vm1878_vm8, %v2352_v29, %v6730_v0  ;;  %v6756_v1 = vunpack.i.h.bf16 %v10343_v59  ;;  %v6755_v24 = vunpack.i.l.bf16 %v10343_v59 }
 0x404   : > { %v6734_v2 = vpop.permute.xlu1 %6733  ;;  %5886 = vmatprep.mubr.f32.mxu1 %v10849_v20  ;;  %v6676_v20 = vunpack.i.h.bf16 %v10229_v40  ;;  %v6471_v40 = vunpack.i.h.bf16 %v11308_v51  ;;  %v5465_v56 = vrot.slane %v2353_v22, 4  ;;  %v11314_v22 = vld [vmem:[#allocation24_spill] sm:$0xff] }
 0x405   : > { %v6736_v5 = vunpack.i.h.bf16 %v6734_v2  ;;  %v6735_v48 = vunpack.i.l.bf16 %v6734_v2  ;;  %v11315_v51 = vld [vmem:[#allocation60_spill] sm:$0xff] }
 0x406   : > { %v10349_v60 = vpop.permute.xlu0 %6758  ;;  %v2355_v45 = vsel %vm1876_vm7, %v2354_v31, %v6676_v20  ;;  %v1900_v18 = vsel %vm1878_vm8, %v1899_v62, %v6471_v40  ;;  %v10399_v19 = vsel %vm5547_vm9, %v1897_v50, %v5465_v56 }
 0x407   : > { %v2356_v10 = vsel %vm1878_vm8, %v2355_v45, %v6731_v33  ;;  %v2791_v52 = vsel %vm1874_vm6, %v11310_v6, %v6736_v5  ;;  %v4562_v3 = vsel %vm1874_vm6, %v11311_v28, %v6735_v48  ;;  %v6761_v63 = vunpack.i.h.bf16 %v10349_v60  ;;  %v11316_v48 = vld [vmem:[#allocation56_spill] sm:$0xff] }
 0x408   : > { %v10353_v13 = vpop.permute.xlu1 %6743  ;;  %v5466_v32 = vrot.slane %v2356_v10, 4  ;;  %v2792_v2 = vsel %vm1876_vm7, %v2791_v52, %v6681_v23  ;;  %v4563_v35 = vsel %vm1876_vm7, %v4562_v3, %v6680_v16  ;;  %v6760_v53 = vunpack.i.l.bf16 %v10349_v60  ;;  %v11318_v52 = vld [vmem:[#allocation10_spill] sm:$0xff]  ;;  %v11319_v3 = vld [vmem:[#allocation11_spill] sm:$0xff] }
 0x409   : > { %v6746_v20 = vunpack.i.h.bf16 %v10353_v13  ;;  %v6745_v26 = vunpack.i.l.bf16 %v10353_v13  ;;  %v4564_v45 = vsel %vm1878_vm8, %v4563_v35, %v6740_v41  ;;  %v2793_v60 = vsel %vm1878_vm8, %v2792_v2, %v6741_v49  ;;  %v11320_v2 = vld [vmem:[#allocation29_spill] sm:$0xff] }
 0x40a   : > { %v10361_v9 = vpop.permute.xlu0 %6763  ;;  %v10396_v21 = vsel %vm5547_vm9, %v1900_v18, %v5466_v32 }
 0x40b   : > { %v6766_v44 = vunpack.i.h.bf16 %v10361_v9  ;;  %v6765_v34 = vunpack.i.l.bf16 %v10361_v9 }
 0x40c   : > { %v10365_v47 = vpop.permute.xlu1 %6748 }
 0x40d   : > { %v6751_v32 = vunpack.i.h.bf16 %v10365_v47  ;;  %v6750_v25 = vunpack.i.l.bf16 %v10365_v47 }
 0x40e   : > { %v10375_v39 = vpop.permute.xlu0 %5396 }
 0x410   : > { %v10379_v58 = vpop.permute.xlu1 %5384 }
 0x412   : > { %v6774_v36 = vpop.permute.xlu0 %6773 }
 0x413   : > { %v6776_v15 = vunpack.i.h.bf16 %v6774_v36  ;;  %v6775_v12 = vunpack.i.l.bf16 %v6774_v36 }
 0x414   : > { %v6769_v37 = vpop.permute.xlu1 %6768 }
 0x415   : > { %v6771_v54 = vunpack.i.h.bf16 %v6769_v37  ;;  %v6770_v61 = vunpack.i.l.bf16 %v6769_v37  ;;  %v3240_v10 = vsel %vm1874_vm6, %v11314_v22, %v6776_v15  ;;  %v5002_v40 = vsel %vm1874_vm6, %v11315_v51, %v6775_v12 }
 0x416   : > { %v6779_v59 = vpop.permute.xlu0 %6778  ;;  %v3241_v49 = vsel %vm1876_vm7, %v3240_v10, %v6751_v32  ;;  %v5003_v41 = vsel %vm1876_vm7, %v5002_v40, %v6750_v25 }
 0x417   : > { %v4117_v31 = vsel %vm1874_vm6, %v11312_v11, %v6771_v54  ;;  %v3243_v38 = vsel %vm1874_vm6, %v11313_v30, %v6770_v61  ;;  %v6781_v33 = vunpack.i.h.bf16 %v6779_v59  ;;  %v6780_v0 = vunpack.i.l.bf16 %v6779_v59  ;;  %v11321_v54 = vld [vmem:[#allocation65_spill] sm:$0xff] }
 0x418   : > { %v6789_v29 = vpop.permute.xlu1 %6788  ;;  %v3244_v55 = vsel %vm1876_vm7, %v3243_v38, %v6745_v26  ;;  %v4118_v13 = vsel %vm1876_vm7, %v4117_v31, %v6746_v20 }
 0x419   : > { %v6791_v27 = vunpack.i.h.bf16 %v6789_v29  ;;  %v6790_v46 = vunpack.i.l.bf16 %v6789_v29  ;;  %v4999_v43 = vsel %vm1874_vm6, %v11316_v48, %v6781_v33  ;;  %v4114_v7 = vsel %vm1874_vm6, %v11317_v42, %v6780_v0 }
 0x41a   : > { %v6784_v5 = vpop.permute.xlu0 %6783  ;;  %v4115_v47 = vsel %vm1876_vm7, %v4114_v7, %v6755_v24  ;;  %v5000_v37 = vsel %vm1876_vm7, %v4999_v43, %v6756_v1 }
 0x41b   : > { %v6786_v9 = vunpack.i.h.bf16 %v6784_v5  ;;  %v6785_v56 = vunpack.i.l.bf16 %v6784_v5  ;;  %v3245_v62 = vsel %vm1878_vm8, %v3244_v55, %v6790_v46  ;;  %v4119_v50 = vsel %vm1878_vm8, %v4118_v13, %v6791_v27 }
 0x41c   : > { %v6799_v6 = vpop.permute.xlu1 %6798  ;;  %v5490_v59 = vrot.slane %v3245_v62, 4  ;;  %v5512_v11 = vrot.slane %v4119_v50, 4  ;;  %v11322_v62 = vld [vmem:[#allocation78_spill] sm:$0xff] }
 0x41d   : > { %v3677_v28 = vsel %vm1874_vm6, %v11318_v52, %v6786_v9  ;;  %v2794_v36 = vsel %vm1874_vm6, %v11319_v3, %v6785_v56  ;;  %v6801_v18 = vunpack.i.h.bf16 %v6799_v6  ;;  %v6800_v23 = vunpack.i.l.bf16 %v6799_v6  ;;  %v11323_v3 = vld [vmem:[#allocation50_spill] sm:$0xff] }
 0x41e   : > { %v6794_v16 = vpop.permute.xlu0 %6793  ;;  %v2795_v30 = vsel %vm1876_vm7, %v2794_v36, %v6760_v53  ;;  %v3678_v38 = vsel %vm1876_vm7, %v3677_v28, %v6761_v63 }
 0x41f   : > { %v4559_v35 = vsel %vm1874_vm6, %v11320_v2, %v6801_v18  ;;  %v3674_v61 = vsel %vm1874_vm6, %v11321_v54, %v6800_v23  ;;  %v6796_v15 = vunpack.i.h.bf16 %v6794_v16  ;;  %v6795_v12 = vunpack.i.l.bf16 %v6794_v16 }
 0x420   : > { %v6809_v31 = vpop.permute.xlu1 %6808  ;;  %v3675_v27 = vsel %vm1876_vm7, %v3674_v61, %v6765_v34  ;;  %v4560_v46 = vsel %vm1876_vm7, %v4559_v35, %v6766_v44 }
 0x421   : > { %v3242_v33 = vsel %vm1878_vm8, %v3241_v49, %v6796_v15  ;;  %v5004_v24 = vsel %vm1878_vm8, %v5003_v41, %v6795_v12  ;;  %v6811_v1 = vunpack.i.h.bf16 %v6809_v31  ;;  %v6810_v0 = vunpack.i.l.bf16 %v6809_v31 }
 0x422   : > { %v5489_v20 = vrot.slane %v3242_v33, 4  ;;  %v5536_v26 = vrot.slane %v5004_v24, 4  ;;  %v6804_v29 = vpop.permute.xlu0 %6803 }
 0x423   : > { %v2796_v22 = vsel %vm1878_vm8, %v2795_v30, %v6810_v0  ;;  %v3679_v10 = vsel %vm1878_vm8, %v3678_v38, %v6811_v1  ;;  %v6806_v53 = vunpack.i.h.bf16 %v6804_v29  ;;  %v6805_v51 = vunpack.i.l.bf16 %v6804_v29  ;;  %v11324_v30 = vld [vmem:[#allocation80_spill] sm:$0xff] }
 0x424   : > { %v6814_v63 = vpop.permute.xlu1 %6813  ;;  %v5569_v40 = vsel %vm5547_vm9, %v3679_v10, %v5512_v11  ;;  %v5577_v55 = vsel %vm5547_vm9, %v4564_v45, %v5536_v26  ;;  %v5563_v13 = vsel %vm5547_vm9, %v2796_v22, %v5490_v59  ;;  %v5562_v5 = vsel %vm5547_vm9, %v2793_v60, %v5489_v20  ;;  %v11325_v26 = vld [vmem:[#allocation73_spill] sm:$0xff] }
 0x425   : > { %v4116_v48 = vsel %vm1878_vm8, %v4115_v47, %v6805_v51  ;;  %v5001_v34 = vsel %vm1878_vm8, %v5000_v37, %v6806_v53  ;;  %v6816_v44 = vunpack.i.h.bf16 %v6814_v63  ;;  %v6815_v43 = vunpack.i.l.bf16 %v6814_v63  ;;  %v11327_v22 = vld [vmem:[#allocation77_spill] sm:$0xff] }
 0x426   : > { %v5511_v42 = vrot.slane %v4116_v48, 4  ;;  %v5535_v7 = vrot.slane %v5001_v34, 4  ;;  %v5393_v9 = vpop.permute.xlu0 %5392  ;;  %v6350_v56 = vpack.c.bf16 %v5577_v55, %v5569_v40  ;;  %v6354_v32 = vpack.c.bf16 %v5563_v13, %v10396_v21 }
 0x427   : > { %v3676_v25 = vsel %vm1878_vm8, %v3675_v27, %v6815_v43  ;;  %v4561_v45 = vsel %vm1878_vm8, %v4560_v46, %v6816_v44  ;;  %v5442_v50 = vsel %vm1874_vm6, %v11322_v62, %v5393_v9  ;;  %v6356_v60 = vpack.c.bf16 %v5562_v5, %v10399_v19  ;;  %v11326_v27 = vld [vmem:[#allocation64_spill] sm:$0xff]  ;;  %v11328_v9 = vld [vmem:[#allocation15_spill] sm:$0xff] }
 0x428   : > { %6351 = vmatprep.subr.bf16.mxu0 %v6350_v56  ;;  %6355 = vmatprep.subr.bf16.mxu1 %v6354_v32  ;;  %v5381_v6 = vpop.permute.xlu1 %5380  ;;  %v5568_v52 = vsel %vm5547_vm9, %v3676_v25, %v5511_v42  ;;  %v5576_v28 = vsel %vm5547_vm9, %v4561_v45, %v5535_v7  ;;  %v5443_v18 = vsel %vm1876_vm7, %v5442_v50, %v10375_v39  ;;  %v11329_v50 = vld [vmem:[#allocation40_spill] sm:$0xff] }
 0x429   : > { %v5439_v36 = vsel %vm1874_vm6, %v11323_v3, %v5381_v6  ;;  %6357 = vmatpush1.bf16.msra.mxu1 %v6356_v60  ;;  %v6352_v21 = vpack.c.bf16 %v5576_v28, %v5568_v52 }
 0x42a   : > { %v5401_v23 = vpop.permute.xlu0 %5400  ;;  %v5440_v19 = vsel %vm1876_vm7, %v5439_v36, %v10379_v58 }
 0x42b   : > { %v5444_v16 = vsel %vm1878_vm8, %v5443_v18, %v5401_v23  ;;  %6353 = vmatpush1.bf16.msra.mxu0 %v6352_v21 }
 0x42c   : > { %v5389_v49 = vpop.permute.xlu1 %5388  ;;  %6148 = vmatprep.subr.msk.mxu0 %vm5547_vm9, %v5444_v16 }
 0x42d   : > { %v5441_v41 = vsel %vm1878_vm8, %v5440_v19, %v5389_v49 }
 0x42e   : > { %v10472_v47 = vpop.permute.xlu0 %5420 }
 0x42f   : > { %6149 = vmatpush1.msk.msra.mxu0 %vm5547_vm9, %v5441_v41 }
 0x430   : > { %6150 = vmatmul.mubr.msk.f32.vlgmr.msra.gmra.mrb[30].mxu0 %vm5581_vm10, %v10202_v4 }
 0x432   : > { %v6819_v37 = vpop.permute.xlu1 %6818 }
 0x433   : > { %v6821_v40 = vunpack.i.h.bf16 %v6819_v37  ;;  %v6820_v55 = vunpack.i.l.bf16 %v6819_v37 }
 0x434   : > { %v6844_v39 = vpop.permute.xlu0 %6843 }
 0x435   : > { %v6846_v15 = vunpack.i.h.bf16 %v6844_v39  ;;  %v6845_v12 = vunpack.i.l.bf16 %v6844_v39 }
 0x437   : > { %v6824_v2 = vpop.permute.xlu1 %6823  ;;  %v5005_v38 = vsel %vm1874_vm6, %v11324_v30, %v6846_v15  ;;  %v4120_v29 = vsel %vm1874_vm6, %v11325_v26, %v6845_v12 }
 0x438   : > { %v6826_v33 = vunpack.i.h.bf16 %v6824_v2  ;;  %v6825_v24 = vunpack.i.l.bf16 %v6824_v2 }
 0x439   : > { %v6849_v35 = vpop.permute.xlu0 %6848 }
 0x43a   : > { %v6851_v59 = vunpack.i.h.bf16 %v6849_v35  ;;  %v6850_v11 = vunpack.i.l.bf16 %v6849_v35  ;;  %v4121_v48 = vsel %vm1876_vm7, %v4120_v29, %v6825_v24  ;;  %v5006_v34 = vsel %vm1876_vm7, %v5005_v38, %v6826_v33 }
 0x43b   : > { %v6829_v54 = vpop.permute.xlu1 %6828 }
 0x43c   : > { %v6831_v1 = vunpack.i.h.bf16 %v6829_v54  ;;  %v6830_v0 = vunpack.i.l.bf16 %v6829_v54  ;;  %v4568_v46 = vsel %vm1874_vm6, %v11326_v27, %v6851_v59  ;;  %v3683_v10 = vsel %vm1874_vm6, %v11327_v22, %v6850_v11 }
 0x43d   : > { %v6854_v61 = vpop.permute.xlu0 %6853 }
 0x43e   : > { %v3684_v44 = vsel %vm1876_vm7, %v3683_v10, %v6830_v0  ;;  %v4569_v43 = vsel %vm1876_vm7, %v4568_v46, %v6831_v1  ;;  %v6856_v7 = vunpack.i.h.bf16 %v6854_v61  ;;  %v6855_v18 = vunpack.i.l.bf16 %v6854_v61 }
 0x43f   : > { %v6834_v58 = vpop.permute.xlu1 %6833 }
 0x440   : > { %v6836_v45 = vunpack.i.h.bf16 %v6834_v58  ;;  %v6835_v62 = vunpack.i.l.bf16 %v6834_v58 }
 0x441   : > { %v6859_v31 = vpop.permute.xlu0 %6858 }
 0x442   : > { %v6860_v53 = vunpack.i.l.bf16 %v6859_v31  ;;  %v6861_v51 = vunpack.i.h.bf16 %v6859_v31 }
 0x443   : > { %v10479_v20 = vpop.permute.xlu1 %5408 }
 0x444   : > { %v3680_v56 = vsel %vm1874_vm6, %v11328_v9, %v6860_v53  ;;  %v4565_v60 = vsel %vm1874_vm6, %v11329_v50, %v6861_v51 }
 0x445   : > { %v6864_v63 = vpop.permute.xlu0 %6863  ;;  %v3681_v49 = vsel %vm1876_vm7, %v3680_v56, %v6835_v62  ;;  %v4566_v2 = vsel %vm1876_vm7, %v4565_v60, %v6836_v45 }
 0x446   : > { %v6866_v13 = vunpack.i.h.bf16 %v6864_v63  ;;  %v6865_v5 = vunpack.i.l.bf16 %v6864_v63 }
 0x447   : > { %v6839_v42 = vpop.permute.xlu1 %6838 }
 0x448   : > { %v6841_v32 = vunpack.i.h.bf16 %v6839_v42  ;;  %v6840_v25 = vunpack.i.l.bf16 %v6839_v42  ;;  %v4122_v6 = vsel %vm1878_vm8, %v4121_v48, %v6865_v5  ;;  %v5007_v28 = vsel %vm1878_vm8, %v5006_v34, %v6866_v13 }
 0x449   : > { %v6869_v52 = vpop.permute.xlu0 %6868  ;;  %v5513_v35 = vrot.slane %v4122_v6, 4  ;;  %v5537_v54 = vrot.slane %v5007_v28, 4 }
 0x44a   : > { %v5008_v3 = vsel %vm1874_vm6, %v9806_v57, %v6841_v32  ;;  %v4123_v36 = vsel %vm1874_vm6, %v11276_v14, %v6840_v25  ;;  %v6870_v21 = vunpack.i.l.bf16 %v6869_v52  ;;  %v6871_v41 = vunpack.i.h.bf16 %v6869_v52 }
 0x44b   : > { %v4124_v23 = vsel %vm1876_vm7, %v4123_v36, %v6820_v55  ;;  %v5009_v16 = vsel %vm1876_vm7, %v5008_v3, %v6821_v40  ;;  %v6874_v19 = vpop.permute.xlu1 %6873 }
 0x44c   : > { %v6876_v37 = vunpack.i.h.bf16 %v6874_v19  ;;  %v6875_v39 = vunpack.i.l.bf16 %v6874_v19  ;;  %v4125_v15 = vsel %vm1878_vm8, %v4124_v23, %v6855_v18  ;;  %v5010_v14 = vsel %vm1878_vm8, %v5009_v16, %v6856_v7  ;;  %v11331_v19 = vld [vmem:[#allocation2_spill] sm:$0xff] }
 0x44d   : > { %v5417_v57 = vpop.permute.xlu0 %5416  ;;  %v3685_v61 = vsel %vm1878_vm8, %v3684_v44, %v6870_v21  ;;  %v5514_v59 = vrot.slane %v4125_v15, 4  ;;  %v5538_v30 = vrot.slane %v5010_v14, 4  ;;  %v4570_v24 = vsel %vm1878_vm8, %v4569_v43, %v6871_v41 }
 0x44e   : > { %v3682_v58 = vsel %vm1878_vm8, %v3681_v49, %v6875_v39  ;;  %v4567_v12 = vsel %vm1878_vm8, %v4566_v2, %v6876_v37  ;;  %v5448_v11 = vsel %vm1874_vm6, %v10177_v17, %v5417_v57  ;;  %v11330_v23 = vlaneseq }
 0x44f   : > { %v5405_v31 = vpop.permute.xlu1 %5404  ;;  %v5570_v38 = vsel %vm5547_vm9, %v3682_v58, %v5513_v35  ;;  %v5578_v33 = vsel %vm5547_vm9, %v4567_v12, %v5537_v54  ;;  %v5571_v1 = vsel %vm5547_vm9, %v3685_v61, %v5514_v59  ;;  %v5579_v26 = vsel %vm5547_vm9, %v4570_v24, %v5538_v30 }
 0x450   : > { %v6360_v29 = vpack.c.bf16 %v5578_v33, %v5570_v38  ;;  %v5449_v27 = vsel %vm1876_vm7, %v5448_v11, %v10472_v47  ;;  %v6358_v46 = vpack.c.bf16 %v5579_v26, %v5571_v1  ;;  %v5445_v22 = vsel %vm1874_vm6, %v10197_v8, %v5405_v31 }
 0x451   : > { %v5425_v0 = vpop.permute.xlu0 %5424  ;;  %v5446_v53 = vsel %vm1876_vm7, %v5445_v22, %v10479_v20  ;;  %v5912_v16 = vand.u32 127, %v11330_v23 }
 0x452   : > { %v5450_v17 = vsel %vm1878_vm8, %v5449_v27, %v5425_v0  ;;  %6359 = vmatprep.subr.bf16.mxu1 %v6358_v46 }
 0x453   : > { %v5413_v10 = vpop.permute.xlu1 %5412  ;;  %6361 = vmatpush1.bf16.msra.mxu1 %v6360_v29  ;;  %v5915_v49 = vsub.s32 %v5912_v16, %v11331_v19 }
 0x454   : > { %6151 = vmatprep.subr.msk.mxu1 %vm5547_vm9, %v5450_v17  ;;  %v5447_v51 = vsel %vm1878_vm8, %v5446_v53, %v5413_v10 }
 0x457   : > { %6152 = vmatpush1.msk.msra.mxu1 %vm5547_vm9, %v5447_v51 }
 0x458   : > { %6153 = vmatmul.mubr.msk.f32.vlgmr.msra.gmra.mrb[32].mxu1 %vm5581_vm10, %v10202_v4 }
 0x4aa   : > { %v5675_v8 = vpop.f32.mrb[28].mxu0 }
 0x4ab   : > { %5893 = vst [vmem:[%s10533_s9] sm:$0xff] %v5675_v8  ;;  %v5920_v47 = vmul.f32 %v5675_v8, %v5675_v8  ;;  %v5677_v20 = vpop.f32.mrb[29].mxu0 }
 0x4ac   : > { %5894 = vst [vmem:[%s10533_s9 + $0x8] sm:$0xff] %v5677_v20  ;;  %v5901_v63 = vadd.f32 %v5677_v20, %v5675_v8  ;;  %v5921_v40 = vmul.f32 %v5677_v20, %v5677_v20 }
 0x4ae   : > { %v5928_v55 = vadd.f32 %v5921_v40, %v5920_v47 }
 0x4d6   : > { %v5746_v4 = vpop.f32.mrb[30].mxu1 }
 0x4d7   : > { %5895 = vst [vmem:[%s10533_s9 + $0x10] sm:$0xff] %v5746_v4  ;;  %v5902_v13 = vadd.f32 %v5901_v63, %v5746_v4  ;;  %v5922_v5 = vmul.f32 %v5746_v4, %v5746_v4  ;;  %v5748_v48 = vpop.f32.mrb[31].mxu1 }
 0x4d8   : > { %5896 = vst [vmem:[%s10533_s9 + $0x18] sm:$0xff] %v5748_v48  ;;  %v5923_v34 = vmul.f32 %v5748_v48, %v5748_v48 }
 0x4d9   : > { %v5929_v44 = vadd.f32 %v5928_v55, %v5922_v5  ;;  %v5903_v43 = vadd.f32 %v5902_v13, %v5748_v48 }
 0x4db   : > { %v5930_v42 = vadd.f32 %v5929_v44, %v5923_v34 }
 0x503   : > { %v5817_v7 = vpop.f32.mrb[30].mxu0 }
 0x504   : > { %5897 = vst [vmem:[%s10533_s9 + $0x20] sm:$0xff] %v5817_v7  ;;  %v5904_v9 = vadd.f32 %v5903_v43, %v5817_v7  ;;  %v5924_v56 = vmul.f32 %v5817_v7, %v5817_v7  ;;  %v5819_v32 = vpop.f32.mrb[31].mxu0 }
 0x505   : > { %5898 = vst [vmem:[%s10533_s9 + $0x28] sm:$0xff] %v5819_v32  ;;  %v5925_v25 = vmul.f32 %v5819_v32, %v5819_v32 }
 0x506   : > { %v5931_v45 = vadd.f32 %v5930_v42, %v5924_v56  ;;  %v5905_v62 = vadd.f32 %v5904_v9, %v5819_v32 }
 0x508   : > { %v5932_v50 = vadd.f32 %v5931_v45, %v5925_v25 }
 0x52b   : > { %v5888_v60 = vpop.f32.mrb[32].mxu1 }
 0x52c   : > { %5899 = vst [vmem:[%s10533_s9 + $0x30] sm:$0xff] %v5888_v60  ;;  %v5906_v6 = vadd.f32 %v5905_v62, %v5888_v60  ;;  %v5926_v52 = vmul.f32 %v5888_v60, %v5888_v60  ;;  %v5890_v28 = vpop.f32.mrb[33].mxu1 }
 0x52d   : > { %5900 = vst [vmem:[%s10533_s9 + $0x38] sm:$0xff] %v5890_v28  ;;  %v5927_v3 = vmul.f32 %v5890_v28, %v5890_v28 }
 0x52e   : > { %v5933_v36 = vadd.f32 %v5932_v50, %v5926_v52  ;;  %v5907_v21 = vadd.f32 %v5906_v6, %v5890_v28 }
 0x530   : > { %v5934_v18 = vadd.f32 %v5933_v36, %v5927_v3  ;;  %5908 = vadd.xlane.f32.xlu0 %v5907_v21 }
 0x532   : > { %5935 = vadd.xlane.f32.xlu1 %v5934_v18 }
 0x5bd   : > { %v5909_v41 = vpop.xlane.xlu0 %5908 }
 0x5be   : > { %v5916_v37 = vrot.slane %v5909_v41, %v5915_v49 }
 0x5bf   : > { %v5936_v39 = vpop.xlane.xlu1 %5935 }
 0x5c0   : > { %5919 = vst.msk [vmem:[%s301_s12] sm:$0x1] %vm5918_vm11, %v5916_v37  ;;  %v5941_v2 = vrot.slane %v5936_v39, %v5915_v49 }
 0x5c2   : > { %5943 = vst.msk [vmem:[%s307_s15] sm:$0x1] %vm5918_vm11, %v5941_v2 }
 0x5c3 PF: > { %s17_s23 = sadd.s32 1, %s6907_s23   ;;  %s11332_s21 = smov %s6903_s22 }
 0x5c4   : > { %p14_p5 = scmp.ge.s32.totalorder %s17_s23, 4   ;;  %s11333_s22 = smov %s11335_s24 }
 0x5c6   :  { %16 = sbr.rel (!%p14_p5) target bundleno = 2 (0x2), region = 91 }

</bundles_post_ra>
